<compile_context>
chip_gen: v7x
topology: tpu7x:2x2x1
jax: 0.10.0
libtpu: 0.0.40
codegen_flags: <defaults>
</compile_context>

<pallas_src>
import jax
import jax.numpy as jnp
from jax.experimental import pallas as pl
from jax.experimental.pallas import tpu as pltpu

IN_FEATURES = 512 * 7    # 3584
OUT_FEATURES = 512


def _multifusion_kernel(x_ref, w_ref, b_ref, o_ref):
    """Grid = (head,): head 0 = image, head 1 = text ("parallel" axis).

    x_ref : (1, B, 3584)   this head's flattened input (input dtype)
    w_ref : (1, 3584, 512) this head's full weight (possibly bf16-stored)
    b_ref : (1, 1, 512)    this head's bias (f32)
    o_ref : (B, 512)       this head's 512-wide column block of the (B, 1024)
                           pre-transposed output, in the final output dtype
    """
    x = x_ref[0].astype(jnp.float32)      # keep activation precision
    w = w_ref[0].astype(jnp.float32)      # promote streamed (bf16) weights
    acc = jnp.dot(x, w, preferred_element_type=jnp.float32)
    o_ref[...] = (acc + b_ref[0]).astype(o_ref.dtype)


def multifusion_forward(image_embedding, text_embedding, params):
    """image_embedding, text_embedding: (B, 7, 512) -> out: (B, 2, 512).

    params = (w, b) with w: (2, 3584, 512) (any dtype, bf16 recommended and
    pre-cast at init) and b: (2, 512) f32.
    """
    w, b = params
    B = image_embedding.shape[0]
    out_dtype = image_embedding.dtype

    # Stack the two flattened inputs along a leading head axis: (2, B, 3584).
    # Tiny (~57 KB); fuses under the caller's jit.
    x = jnp.stack([image_embedding.reshape(B, IN_FEATURES),
                   text_embedding.reshape(B, IN_FEATURES)])
    b3 = b.reshape(2, 1, OUT_FEATURES).astype(jnp.float32)

    flops = 2 * (2 * B * IN_FEATURES * OUT_FEATURES)
    bytes_accessed = (
        w.size * w.dtype.itemsize
        + x.size * x.dtype.itemsize
        + b3.size * 4
        + B * 2 * OUT_FEATURES * jnp.dtype(out_dtype).itemsize
    )

    out = pl.pallas_call(
        _multifusion_kernel,
        out_shape=jax.ShapeDtypeStruct((B, 2 * OUT_FEATURES), out_dtype),
        grid=(2,),
        in_specs=[
            pl.BlockSpec((1, B, IN_FEATURES), lambda h: (h, 0, 0)),             # x
            pl.BlockSpec((1, IN_FEATURES, OUT_FEATURES), lambda h: (h, 0, 0)),  # W
            pl.BlockSpec((1, 1, OUT_FEATURES), lambda h: (h, 0, 0)),            # bias
        ],
        # Pre-transposed, lane-dense output: head h writes columns
        # [h*512, (h+1)*512) of the (B, 1024) slab (512 = 4x128 -> unmasked vst).
        out_specs=pl.BlockSpec((B, OUT_FEATURES), lambda h: (0, h)),
        compiler_params=pltpu.CompilerParams(
            dimension_semantics=("parallel",),
            vmem_limit_bytes=32 * 1024 * 1024,
        ),
        cost_estimate=pl.CostEstimate(
            flops=flops, transcendentals=0, bytes_accessed=bytes_accessed),
    )(x, w, b3)

    # Free reshape: (B, 1024) -> (B, 2, 512); slot 0 = image, slot 1 = text,
    # matching torch.cat((img.unsqueeze(1), txt.unsqueeze(1)), dim=1).
    return out.reshape(B, 2, OUT_FEATURES)


def init_params(key, weight_dtype=jnp.bfloat16):
    """Deterministic init mirroring nn.Linear (uniform +/- 1/sqrt(fan_in)).

    Weights are stored (head, in_features, out_features) = (2, 3584, 512),
    transposed vs PyTorch, pre-stacked per head, and PRE-CAST to
    `weight_dtype` (bf16 by default) so the forward path never re-casts the
    streamed weight tensor.  head 0 = ffn_image, head 1 = ffn_text.
    Biases stay f32."""
    k1, k2, k3, k4 = jax.random.split(key, 4)
    bound = 1.0 / (IN_FEATURES ** 0.5)
    w_img = jax.random.uniform(k1, (IN_FEATURES, OUT_FEATURES), jnp.float32,
                               minval=-bound, maxval=bound)
    b_img = jax.random.uniform(k2, (OUT_FEATURES,), jnp.float32,
                               minval=-bound, maxval=bound)
    w_txt = jax.random.uniform(k3, (IN_FEATURES, OUT_FEATURES), jnp.float32,
                               minval=-bound, maxval=bound)
    b_txt = jax.random.uniform(k4, (OUT_FEATURES,), jnp.float32,
                               minval=-bound, maxval=bound)
    w = jnp.stack([w_img, w_txt]).astype(weight_dtype)   # (2, 3584, 512)
    b = jnp.stack([b_img, b_txt])                        # (2, 512) f32
    return (w, b)


if __name__ == "__main__":
    key = jax.random.PRNGKey(0)
    kp, ki, kt = jax.random.split(key, 3)

    # f32 master params (for reference math) and the bf16-stored streaming copy.
    w_f32, b_f32 = init_params(kp, weight_dtype=jnp.float32)
    params_bf16 = (w_f32.astype(jnp.bfloat16), b_f32)

    B = 2
    image_embedding = jax.random.normal(ki, (B, 7, 512), jnp.float32)
    text_embedding = jax.random.normal(kt, (B, 7, 512), jnp.float32)
    xi = image_embedding.reshape(B, -1)
    xt = text_embedding.reshape(B, -1)

    # --- default path: bf16-stored weights, f32 activations/accumulation ---
    out = multifusion_forward(image_embedding, text_embedding, params_bf16)
    out = jax.block_until_ready(out)

    wi = w_f32[0].astype(jnp.bfloat16).astype(jnp.float32)
    wt = w_f32[1].astype(jnp.bfloat16).astype(jnp.float32)
    ref_bf = jnp.stack([xi @ wi + b_f32[0], xt @ wt + b_f32[1]], axis=1)
    assert out.shape == (B, 2, OUT_FEATURES)
    assert jnp.allclose(out, ref_bf, atol=2e-2, rtol=2e-2)

    # --- full-f32 parity path (matches the PyTorch module numerics) --------
    out_f32 = multifusion_forward(image_embedding, text_embedding,
                                  (w_f32, b_f32))
    out_f32 = jax.block_until_ready(out_f32)
    ref = jnp.stack([xi @ w_f32[0] + b_f32[0], xt @ w_f32[1] + b_f32[1]],
                    axis=1)
    assert out_f32.shape == (B, 2, OUT_FEATURES)
    assert jnp.allclose(out_f32, ref, atol=1e-4, rtol=1e-4)

    print("KERNEL_OK")
</pallas_src>

<mosaic_0001>
module attributes {stable_mosaic.version = 11 : i64} {
  func.func @_multifusion_kernel(%arg0: i32, %arg1: memref<1x2x3584xf32, #tpu.memory_space<vmem>>, %arg2: memref<1x3584x512xbf16, #tpu.memory_space<vmem>>, %arg3: memref<1x1x512xf32, #tpu.memory_space<vmem>>, %arg4: memref<2x512xf32, #tpu.memory_space<vmem>>) attributes {dimension_semantics = [#tpu.dimension_semantics<parallel>], iteration_bounds = array<i64: 2>, scalar_prefetch = 0 : i64, scratch_operands = 0 : i64, tpu.core_type = #tpu.core_type<tc>, window_params = [{transform_indices = @transform_0, window_bounds = array<i64: 1, 2, 3584>}, {transform_indices = @transform_1, window_bounds = array<i64: 1, 3584, 512>}, {transform_indices = @transform_2, window_bounds = array<i64: 1, 1, 512>}, {transform_indices = @transform_3, window_bounds = array<i64: 2, 512>}]} {
    %c0 = arith.constant 0 : index
    %c0_0 = arith.constant 0 : index
    %c0_1 = arith.constant 0 : index
    %0 = vector.load %arg1[%c0, %c0_0, %c0_1] : memref<1x2x3584xf32, #tpu.memory_space<vmem>>, vector<1x2x3584xf32>
    %1 = vector.shape_cast %0 : vector<1x2x3584xf32> to vector<2x3584xf32>
    %c0_2 = arith.constant 0 : index
    %c0_3 = arith.constant 0 : index
    %c0_4 = arith.constant 0 : index
    %2 = vector.load %arg2[%c0_2, %c0_3, %c0_4] : memref<1x3584x512xbf16, #tpu.memory_space<vmem>>, vector<1x3584x512xbf16>
    %3 = vector.shape_cast %2 : vector<1x3584x512xbf16> to vector<3584x512xbf16>
    %4 = arith.extf %3 : vector<3584x512xbf16> to vector<3584x512xf32>
    %cst = arith.constant dense<0.000000e+00> : vector<2x512xf32>
    %5 = tpu.matmul %1, %4, %cst {dimension_numbers = #tpu.dot_dimension_numbers<[1], [0], [0], [1], [0, 0, 1, 1], [], []>} : vector<2x3584xf32>, vector<3584x512xf32>, vector<2x512xf32> -> vector<2x512xf32>
    %c0_5 = arith.constant 0 : index
    %c0_6 = arith.constant 0 : index
    %c0_7 = arith.constant 0 : index
    %6 = vector.load %arg3[%c0_5, %c0_6, %c0_7] : memref<1x1x512xf32, #tpu.memory_space<vmem>>, vector<1x1x512xf32>
    %7 = vector.shape_cast %6 : vector<1x1x512xf32> to vector<1x512xf32>
    %8 = vector.broadcast %7 : vector<1x512xf32> to vector<2x512xf32>
    %9 = arith.addf %5, %8 : vector<2x512xf32>
    %c0_8 = arith.constant 0 : index
    %c0_9 = arith.constant 0 : index
    %10 = vector.load %arg4[%c0_8, %c0_9] : memref<2x512xf32, #tpu.memory_space<vmem>>, vector<2x512xf32>
    tpu.vector_store %arg4[%c0_8, %c0_9], %9 {strides = array<i32>} : memref<2x512xf32, #tpu.memory_space<vmem>>, vector<2x512xf32>,
    return
  }
  func.func @transform_0(%arg0: i32) -> (i32, i32, i32) {
    %c0_i32 = arith.constant 0 : i32
    %c0_i32_0 = arith.constant 0 : i32
    %c0_i32_1 = arith.constant 0 : i32
    return %arg0, %c0_i32, %c0_i32_0 : i32, i32, i32
  }
  func.func @transform_1(%arg0: i32) -> (i32, i32, i32) {
    %c0_i32 = arith.constant 0 : i32
    %c0_i32_0 = arith.constant 0 : i32
    %c0_i32_1 = arith.constant 0 : i32
    return %arg0, %c0_i32, %c0_i32_0 : i32, i32, i32
  }
  func.func @transform_2(%arg0: i32) -> (i32, i32, i32) {
    %c0_i32 = arith.constant 0 : i32
    %c0_i32_0 = arith.constant 0 : i32
    %c0_i32_1 = arith.constant 0 : i32
    return %arg0, %c0_i32, %c0_i32_0 : i32, i32, i32
  }
  func.func @transform_3(%arg0: i32) -> (i32, i32) {
    %c0_i32 = arith.constant 0 : i32
    %c0_i32_0 = arith.constant 0 : i32
    return %c0_i32, %arg0 : i32, i32
  }
}

</mosaic_0001>

<bundles_post_ra>
// kernel: tpu_custom_call.1
= control target key start
LH: loop header
LB: loop body
LE: loop exit
PB: predicated region body
PF: predicated region fallthrough
CT: control target
= control target key end

     0   :  { %8 = vsyncpa [#allocation3], 0  ;;  %s10916_s0 = inlined_call_operand.hbm [shape: f32[2,2,3584], index: 0, kind: input, shape index: {}]   ;;  %s10917_s1 = inlined_call_operand.hbm [shape: bf16[2,3584,512], index: 1, kind: input, shape index: {}]   ;;  %s10918_s2 = inlined_call_operand.hbm [shape: f32[2,1,512], index: 2, kind: input, shape index: {}]   ;;  %s10919_s3 = inlined_call_operand.hbm [shape: f32[2,1024], index: 3, kind: output, shape index: {}]  }
   0x1   :  { %10 = vsyncpa [#allocation3 + $0x1], 0 }
   0x2   :  { %11 = vsyncpa [#allocation6], 0 }
   0x3   :  { %13 = vsyncpa [#allocation6 + $0x1], 0 }
   0x4   :  { %14 = vsyncpa [#allocation4], 0 }
   0x5   :  { %16 = vsyncpa [#allocation4 + $0x1], 0  ;;  %s9640_s12 = smov 0   ;;  %s9642_s13 = smov 0  }
   0x6   :  { %s9644_s14 = smov 0   ;;  %s9646_s15 = smov 0  }
   0x7 LB: > { %s9661_s16 = sadd.s32 4294967295, %s9611_s15   ;;  %s5273_s17 = sadd.s32 4294967294, %s9611_s15   ;;  %s9611_s15 = sphi %s9646_s15, %s10940_s15   ;;  %s9607_s14 = sphi %s9644_s14, %s10939_s14   ;;  %s9603_s13 = sphi %s9642_s13, %s10938_s13   ;;  %s9599_s12 = sphi %s9640_s12, %s10937_s12  }
   0x8   : > { %s9665_s18 = sadd.s32 1, %s9611_s15   ;;  %s29_s19 = sadd.s32 1, %s9607_s14 }
   0x9   : > { %s26_s20 = ssub.s32 %s9611_s15, %s9665_s18  ;;  %p36_p0 = scmp.ne.s32.totalorder %s9607_s14, %s9603_s13 }
   0xa   : > { %p27_p1 = scmp.eq.s32.totalorder %s26_s20, 0  ;;  %p37_p2 = scmp.eq.s32.totalorder %s9611_s15, 0 }
   0xb   : > { %p42_p3 = scmp.ne.s32.totalorder %s9603_s13, %s9599_s12  ;;  %p43_p4 = scmp.eq.s32.totalorder %s9661_s16, 0 }
   0xc   : > { %s9677_s21 = scalar_select %p27_p1, %s9607_s14, %s29_s19  }
   0xd   : > { %p38_p5 = por %p37_p2, %p36_p0  ;;  %p9679_p6 = por %p43_p4, %p42_p3 }
   0xe   : > { %p118_p7 = scmp.eq.s32.totalorder %s9661_s16, 1  ;;  %p124_p8 = scmp.eq.s32.totalorder %s5273_s17, 1 }
   0xf   : > { %s10923_s22 = scalar_select %p9679_p6, 1, 0 }
  0x10   : > { %p8063_p10 = scmp.lt.s32.totalorder %s9611_s15, 2  ;;  %p9686_p11 = por %p118_p7, %p36_p0 }
  0x11   : > { %p9690_p12 = por %p124_p8, %p42_p3  ;;  %s9695_s25 = sand.u32 1, %s9607_s14  }
  0x12   : > { %s10924_s23 = scalar_select %p9686_p11, 1, 0 }
  0x13   : > { %s10925_s24 = scalar_select %p9690_p12, 1, 0 }
  0x14   : > { %p9697_p13 = pnand %p8063_p10, %p38_p5  ;;  %s163_s27 = sand.u32 1, %s9611_s15  }
  0x15   : > { %s8037_s28 = smul.u32 7168, %s9695_s25  ;;  %s9712_s8 = scalar_lea.sflag [#allocation6], %s163_s27 }
  0x16   : > { %s10926_s26 = scalar_select %p9697_p13, 1, 0 }
  0x17   : > { %s8038_s29 = smul.u32 114688, %s9611_s15  ;;  %s167_s30 = scalar_lea.vmem [#allocation5], %s8037_s28 }
  0x18   : > { %s174_s4 = sshll.u32 %s167_s30, 4  ;;  %p9718_p2 = pneg %p9697_p13  ;;  %s9709_s4 = int_to_ptr.vmem [resolvable:$true] %s174_s4 }
  0x19   : > { %s9707_s7 = scalar_lea.hbm %s10917_s1, %s8038_s29  ;;  %s9456_s19 = scalar_lea.hbm %s10917_s1, 229376 }
  0x1a   : > { %s9451_s9 = scalar_lea.hbm %s9707_s7, 114688  ;;  %p9457_p5 = scmp.lt.u32.totalorder %s9707_s7, %s10917_s1 }
  0x1b   : > { %p9452_p1 = scmp.ne.s32.totalorder %s9707_s7, %s9451_s9  ;;  %p9458_p7 = scmp.lt.u32.totalorder %s9456_s19, %s9451_s9 }
  0x1c   : > { %p9460_p10 = scmp.lt.u32.totalorder %s9451_s9, %s9707_s7 }
  0x1d   : > { %p9454_p3 = pnand %p9718_p2, %p9452_p1  ;;  %p9459_p8 = por %p9458_p7, %p9457_p5 }
  0x1f   : > { %p9455_p4 = pneg %p9454_p3  ;;  %p9461_p9 = por %p9460_p10, %p9459_p8 }
  0x21   : > { %p9462_p0 = pnand %p9461_p9, %p9455_p4 }
  0x23   : > { %9465 = shalt.err (!%p9462_p0)
}
  0x24   : > { %s9466_s27 = scalar_lea.vmem %s9709_s4, 114688  ;;  %s9613_s29 = smov [#allocation5]  }
  0x25   : > { %p9467_p1 = scmp.ne.s32.totalorder %s9709_s4, %s9466_s27  ;;  %s9471_s30 = sshll.u32 %s9613_s29, 4  ;;  %s9472_s30 = int_to_ptr.vmem [resolvable:$false] %s9471_s30 }
  0x26   : > { %s9473_s5 = scalar_lea.vmem %s9472_s30, 229376  ;;  %p9474_p11 = scmp.lt.s32.totalorder %s9709_s4, %s9472_s30 }
  0x27   : > { %p9469_p3 = pnand %p9467_p1, %p9718_p2  ;;  %p9475_p6 = scmp.lt.s32.totalorder %s9473_s5, %s9466_s27 }
  0x29   : > { %p9470_p12 = pneg %p9469_p3  ;;  %p9476_p5 = por %p9475_p6, %p9474_p11 }
  0x2b   : > { %p9477_p7 = pnand %p9476_p5, %p9470_p12 }
  0x2d   : > { %9480 = shalt.err (!%p9477_p7)
}
  0x2e   : > { %s9614_s6 = smov 256   ;;  %s9615_s9 = smov 16  }
  0x2f   : > { %8055 = dma.hbm_to_vmem [thread:$0]  (!%p9697_p13), %s9707_s7, 114688, %s9709_s4, %s9712_s8, %s9614_s6, %s9614_s6, %s9615_s9  }
  0x30   : > { %p201_p9 = scmp.lt.s32.totalorder %s9611_s15, 3  ;;  %s8035_s11 = smul.u32 56, %s9695_s25 }
  0x31   : > { %p10928_p6 = scmp.ge.s32.totalorder %s9611_s15, 1  ;;  %s8036_s20 = smul.u32 896, %s9611_s15 }
  0x32   : > { %s148_s30 = scalar_lea.vmem [#allocation2], %s8035_s11  ;;  %s5289_s7 = sshll.u32 %s9611_s15, 6 }
  0x33   : > { %p9747_p11 = pnand %p10928_p6, %p201_p9  ;;  %s9755_s29 = scalar_lea.hbm %s10916_s0, %s8036_s20 }
  0x34   : > { %s156_s4 = sshll.u32 %s148_s30, 4  ;;  %s145_s5 = scalar_lea.sflag [#allocation3], %s9695_s25  ;;  %s9757_s4 = int_to_ptr.vmem [resolvable:$true] %s156_s4 }
  0x35   : > { %s10929_s19 = scalar_select %p9747_p11, 1, 0 }
  0x36   : > { %s9481_s6 = scalar_lea.hbm %s9755_s29, 896  ;;  %s9486_s20 = scalar_lea.hbm %s10916_s0, 1792 }
  0x37   : > { %p9482_p12 = scmp.ne.s32.totalorder %s9755_s29, %s9481_s6  ;;  %p9487_p8 = scmp.lt.u32.totalorder %s9755_s29, %s10916_s0 }
  0x38   : > { %p9488_p10 = scmp.lt.u32.totalorder %s9486_s20, %s9481_s6  ;;  %p9490_p3 = scmp.lt.u32.totalorder %s9481_s6, %s9755_s29 }
  0x39   : > { %p9484_p0 = pnand %p9482_p12, %p9718_p2 }
  0x3a   : > { %p9489_p1 = por %p9488_p10, %p9487_p8 }
  0x3b   : > { %p9485_p4 = pneg %p9484_p0 }
  0x3c   : > { %p9491_p5 = por %p9490_p3, %p9489_p1 }
  0x3e   : > { %p9492_p7 = pnand %p9491_p5, %p9485_p4 }
  0x40   : > { %9495 = shalt.err (!%p9492_p7)
}
  0x41   : > { %s9496_s11 = scalar_lea.vmem %s9757_s4, 896  ;;  %s9616_s17 = smov [#allocation2]  }
  0x42   : > { %p9497_p9 = scmp.ne.s32.totalorder %s9757_s4, %s9496_s11  ;;  %s9501_s30 = sshll.u32 %s9616_s17, 4  ;;  %s9502_s30 = int_to_ptr.vmem [resolvable:$false] %s9501_s30 }
  0x43   : > { %s9503_s9 = scalar_lea.vmem %s9502_s30, 1792  ;;  %p9504_p0 = scmp.lt.s32.totalorder %s9757_s4, %s9502_s30 }
  0x44   : > { %p9499_p6 = pnand %p9497_p9, %p9718_p2  ;;  %p9505_p11 = scmp.lt.s32.totalorder %s9503_s9, %s9496_s11 }
  0x46   : > { %p9500_p12 = pneg %p9499_p6  ;;  %p9506_p8 = por %p9505_p11, %p9504_p0 }
  0x48   : > { %p9507_p10 = pnand %p9506_p8, %p9500_p12 }
  0x4a   : > { %9510 = shalt.err (!%p9507_p10)
}
  0x4b   : > { %8052 = dma.hbm_to_vmem [thread:$0]  (!%p9697_p13), %s9755_s29, 896, %s9757_s4, %s145_s5  }
  0x4c   : > { %s9787_s28 = scalar_lea.hbm %s10918_s2, %s5289_s7  ;;  %s10930_s27 = sshll.u32 %s9695_s25, 2 }
  0x4d   : > { %s188_s11 = scalar_lea.vmem [#allocation7], %s10930_s27  ;;  %s9511_s30 = scalar_lea.hbm %s9787_s28, 64 }
  0x4e   : > { %s196_s17 = sshll.u32 %s188_s11, 4  ;;  %p9512_p11 = scmp.ne.s32.totalorder %s9787_s28, %s9511_s30  ;;  %s197_s17 = int_to_ptr.vmem [resolvable:$true] %s196_s17 }
  0x4f   : > { %s9516_s5 = scalar_lea.hbm %s10918_s2, 128  ;;  %p9517_p3 = scmp.lt.u32.totalorder %s9787_s28, %s10918_s2 }
  0x50   : > { %p9514_p4 = pnand %p9512_p11, %p9718_p2  ;;  %p9518_p5 = scmp.lt.u32.totalorder %s9516_s5, %s9511_s30 }
  0x51   : > { %p9520_p9 = scmp.lt.u32.totalorder %s9511_s30, %s9787_s28 }
  0x52   : > { %p9515_p1 = pneg %p9514_p4  ;;  %p9519_p7 = por %p9518_p5, %p9517_p3 }
  0x54   : > { %p9521_p6 = por %p9520_p9, %p9519_p7 }
  0x56   : > { %p9522_p12 = pnand %p9521_p6, %p9515_p1 }
  0x58   : > { %9525 = shalt.err (!%p9522_p12)
}
  0x59   : > { %s9526_s25 = scalar_lea.vmem %s197_s17, 64  ;;  %s9617_s6 = smov [#allocation7]  }
  0x5a   : > { %p9527_p0 = scmp.ne.s32.totalorder %s197_s17, %s9526_s25  ;;  %s9531_s20 = sshll.u32 %s9617_s6, 4  ;;  %s9532_s20 = int_to_ptr.vmem [resolvable:$false] %s9531_s20 }
  0x5b   : > { %s9533_s27 = scalar_lea.vmem %s9532_s20, 128  ;;  %p9534_p11 = scmp.lt.s32.totalorder %s197_s17, %s9532_s20 }
  0x5c   : > { %p9529_p8 = pnand %p9527_p0, %p9718_p2  ;;  %p9535_p4 = scmp.lt.s32.totalorder %s9533_s27, %s9526_s25 }
  0x5e   : > { %p9530_p10 = pneg %p9529_p8  ;;  %p9536_p13 = por %p9535_p4, %p9534_p11 }
  0x60   : > { %p9537_p3 = pnand %p9536_p13, %p9530_p10 }
  0x62   : > { %9540 = shalt.err (!%p9537_p3)
}
  0x63   : > { %p10931_p5 = scmp.ne.s32.totalorder %s10926_s26, 0  ;;  %p10932_p1 = scmp.ne.s32.totalorder %s10929_s19, 0 }
  0x64   : > { %s9812_s10 = sand.u32 (!%p10932_p1), 1, %s9603_s13   ;;  %p10933_p13 = scmp.ne.s32.totalorder (!%p10932_p1), %s10923_s22, 0 }
  0x65   : > { %8058 = dma.hbm_to_vmem [thread:$0]  (!%p10931_p5), %s9787_s28, 64, %s197_s17, %s9712_s8  }
  0x66   : > { %205 = sbr.rel (%p10932_p1) target bundleno = 1246 (0x4de), region = 32  ;;  %s208_s30 = scalar_lea.sflag (!%p10932_p1), [#allocation3], %s9812_s10 }
  0x67   : > { %s8039_s11 = smul.u32 (!%p10932_p1), 56, %s9812_s10 }
  0x69   : > { %s9816_s29 = scalar_lea.vmem (!%p10932_p1), [#allocation2], %s8039_s11 }
  0x6d   : > { %9586 = dma.done.wait (%p10933_p13), %s208_s30, 896  }
  0x6e   : > { %9588 = vsyncadd (%p10933_p13), %s208_s30, 4294966400  ;;  %s216_s26 = sand.u32 1, %s9661_s16   ;;  %s8040_s8 = smul.u32 7168, %s9812_s10 }
  0x6f   : > { %s217_s19 = scalar_lea.sflag [#allocation6], %s216_s26 }
  0x70   : > { %s9824_s28 = scalar_lea.vmem [#allocation5], %s8040_s8 }
  0x71   : > { %9590 = dma.done.wait (%p10933_p13), %s217_s19, 114752  }
  0x72   : > { %9592 = vsyncadd (%p10933_p13), %s217_s19, 4294852544  ;;  %v8100_v0 = vld [vmem:[%s9824_s28 + $0x4] ss:$16 sps:$4 sm:$0xff]   ;;  %v8102_v1 = vld [vmem:[%s9824_s28 + $0xc] ss:$16 sps:$4 sm:$0xff]   ;;  %v2960_v36 = vlaneseq  ;;  %s5282_s22 = sshll.u32 %s9812_s10, 2 }
  0x73   : > { %5292 = vmatprep.subr.bf16.mxu0 %v8100_v0  ;;  %v8104_v2 = vld [vmem:[%s9824_s28] ss:$16 sps:$4 sm:$0xff]   ;;  %v8105_v3 = vld [vmem:[%s9824_s28 + $0x8] ss:$16 sps:$4 sm:$0xff]   ;;  %6188 = vmatprep.subr.bf16.mxu1 %v8102_v1  ;;  %v8106_v4 = vld [vmem:[%s9824_s28 + $0x24] ss:$16 sps:$4 sm:$0xff]  }
  0x74   : > { %5294 = vmatpush1.bf16.msra.mxu0 %v8104_v2  ;;  %6190 = vmatpush1.bf16.msra.mxu1 %v8105_v3  ;;  %v8108_v5 = vld [vmem:[%s9824_s28 + $0x2c] ss:$16 sps:$4 sm:$0xff]   ;;  %v8110_v6 = vld [vmem:[%s9824_s28 + $0x20] ss:$16 sps:$4 sm:$0xff]   ;;  %v8111_v7 = vld [vmem:[%s9824_s28 + $0x28] ss:$16 sps:$4 sm:$0xff]  }
  0x75   : > { %5296 = vmatprep.subr.bf16.mxu0 %v8106_v4  ;;  %6192 = vmatprep.subr.bf16.mxu1 %v8108_v5  ;;  %v8112_v8 = vld [vmem:[%s9824_s28 + $0x44] ss:$16 sps:$4 sm:$0xff]   ;;  %v8114_v9 = vld [vmem:[%s9824_s28 + $0x4c] ss:$16 sps:$4 sm:$0xff]   ;;  %v8116_v10 = vld [vmem:[%s9824_s28 + $0x40] ss:$16 sps:$4 sm:$0xff]  }
  0x76   : > { %v8117_v11 = vld [vmem:[%s9824_s28 + $0x48] ss:$16 sps:$4 sm:$0xff]   ;;  %v8118_v12 = vld [vmem:[%s9824_s28 + $0x64] ss:$16 sps:$4 sm:$0xff]   ;;  %v8120_v13 = vld [vmem:[%s9824_s28 + $0x6c] ss:$16 sps:$4 sm:$0xff]  }
  0x77   : > { %v8122_v14 = vld [vmem:[%s9824_s28 + $0x60] ss:$16 sps:$4 sm:$0xff]   ;;  %v8123_v15 = vld [vmem:[%s9824_s28 + $0x68] ss:$16 sps:$4 sm:$0xff]   ;;  %v8124_v16 = vld [vmem:[%s9824_s28 + $0x84] ss:$16 sps:$4 sm:$0xff]  }
  0x78   : > { %5298 = vmatpush1.bf16.msra.mxu0 %v8110_v6  ;;  %6194 = vmatpush1.bf16.msra.mxu1 %v8111_v7  ;;  %v8126_v17 = vld [vmem:[%s9824_s28 + $0x8c] ss:$16 sps:$4 sm:$0xff]   ;;  %v8128_v18 = vld [vmem:[%s9824_s28 + $0x80] ss:$16 sps:$4 sm:$0xff]   ;;  %v8129_v19 = vld [vmem:[%s9824_s28 + $0x88] ss:$16 sps:$4 sm:$0xff]  }
  0x79   : > { %5300 = vmatprep.subr.bf16.mxu0 %v8112_v8  ;;  %6196 = vmatprep.subr.bf16.mxu1 %v8114_v9  ;;  %v8130_v20 = vld [vmem:[%s9824_s28 + $0xa4] ss:$16 sps:$4 sm:$0xff]   ;;  %v8132_v21 = vld [vmem:[%s9824_s28 + $0xac] ss:$16 sps:$4 sm:$0xff]   ;;  %v8134_v22 = vld [vmem:[%s9824_s28 + $0xa0] ss:$16 sps:$4 sm:$0xff]  }
  0x7a   : > { %v8135_v23 = vld [vmem:[%s9824_s28 + $0xa8] ss:$16 sps:$4 sm:$0xff]   ;;  %v8136_v24 = vld [vmem:[%s9824_s28 + $0xc4] ss:$16 sps:$4 sm:$0xff]   ;;  %v8138_v25 = vld [vmem:[%s9824_s28 + $0xcc] ss:$16 sps:$4 sm:$0xff]  }
  0x7b   : > { %v8140_v26 = vld [vmem:[%s9824_s28 + $0xc0] ss:$16 sps:$4 sm:$0xff]   ;;  %v8141_v27 = vld [vmem:[%s9824_s28 + $0xc8] ss:$16 sps:$4 sm:$0xff]   ;;  %v8142_v28 = vld [vmem:[%s9824_s28 + $0xe4] ss:$16 sps:$4 sm:$0xff]  }
  0x7c   : > { %5302 = vmatpush1.bf16.msra.mxu0 %v8116_v10  ;;  %6198 = vmatpush1.bf16.msra.mxu1 %v8117_v11  ;;  %v8144_v29 = vld [vmem:[%s9824_s28 + $0xec] ss:$16 sps:$4 sm:$0xff]   ;;  %v8146_v30 = vld [vmem:[%s9824_s28 + $0xe0] ss:$16 sps:$4 sm:$0xff]   ;;  %v8147_v31 = vld [vmem:[%s9824_s28 + $0xe8] ss:$16 sps:$4 sm:$0xff]  }
  0x7d   : > { %5304 = vmatprep.subr.bf16.mxu0 %v8118_v12  ;;  %6200 = vmatprep.subr.bf16.mxu1 %v8120_v13  ;;  %v8148_v32 = vld [vmem:[%s9824_s28 + $0x104] ss:$16 sps:$4 sm:$0xff]   ;;  %v8150_v33 = vld [vmem:[%s9824_s28 + $0x10c] ss:$16 sps:$4 sm:$0xff]   ;;  %v8152_v34 = vld [vmem:[%s9824_s28 + $0x100] ss:$16 sps:$4 sm:$0xff]  }
  0x7e   : > { %v8153_v35 = vld [vmem:[%s9824_s28 + $0x108] ss:$16 sps:$4 sm:$0xff]   ;;  %v9618_v37 = vmov 1983009808   ;;  %v8154_v39 = vld [vmem:[%s9824_s28 + $0x124] ss:$16 sps:$4 sm:$0xff]  }
  0x7f   : > { %v2989_v38 = vunpack.c.l.s4 %v9618_v37  ;;  %v8156_v40 = vld [vmem:[%s9824_s28 + $0x12c] ss:$16 sps:$4 sm:$0xff]   ;;  %v8158_v41 = vld [vmem:[%s9824_s28 + $0x120] ss:$16 sps:$4 sm:$0xff]   ;;  %v9869_v42 = vshrl.u32 %v2960_v36, 7  ;;  %s229_s17 = scalar_lea.vmem [#allocation7], %s5282_s22 }
  0x80   : > { %5306 = vmatpush1.bf16.msra.mxu0 %v8122_v14  ;;  %6202 = vmatpush1.bf16.msra.mxu1 %v8123_v15  ;;  %v8159_v44 = vld [vmem:[%s9824_s28 + $0x128] ss:$16 sps:$4 sm:$0xff]   ;;  %v8160_v45 = vld [vmem:[%s9824_s28 + $0x144] ss:$16 sps:$4 sm:$0xff]   ;;  %v8162_v46 = vld [vmem:[%s9824_s28 + $0x14c] ss:$16 sps:$4 sm:$0xff]  }
  0x81   : > { %5308 = vmatprep.subr.bf16.mxu0 %v8124_v16  ;;  %6204 = vmatprep.subr.bf16.mxu1 %v8126_v17  ;;  %v2990_v43 = vunpack.c.0.s8 %v2989_v38  ;;  %v8164_v47 = vld [vmem:[%s9824_s28 + $0x140] ss:$16 sps:$4 sm:$0xff]   ;;  %v8165_v48 = vld [vmem:[%s9824_s28 + $0x148] ss:$16 sps:$4 sm:$0xff]   ;;  %v8166_v50 = vld [vmem:[%s9824_s28 + $0x164] ss:$16 sps:$4 sm:$0xff]  }
  0x82   : > { %v8168_v51 = vld [vmem:[%s9824_s28 + $0x16c] ss:$16 sps:$4 sm:$0xff]   ;;  %v8170_v53 = vld [vmem:[%s9824_s28 + $0x160] ss:$16 sps:$4 sm:$0xff]   ;;  %v8171_v55 = vld [vmem:[%s9824_s28 + $0x168] ss:$16 sps:$4 sm:$0xff]  }
  0x83   : > { %v9877_v49 = vsub.s32 %v2990_v43, %v9869_v42  ;;  %v263_v52 = vld [vmem:[%s9816_s29] sm:$0xff]  ;;  %s5283_s4 = sshll.u32 %s9812_s10, 3  ;;  %s5290_s5 = sshll.u32 %s9661_s16, 7 }
  0x84   : > { %5310 = vmatpush1.bf16.msra.mxu0 %v8128_v18  ;;  %6206 = vmatpush1.bf16.msra.mxu1 %v8129_v19  ;;  %v8172_v56 = vld [vmem:[%s9824_s28 + $0x184] ss:$16 sps:$4 sm:$0xff]   ;;  %v8174_v57 = vld [vmem:[%s9824_s28 + $0x18c] ss:$16 sps:$4 sm:$0xff]   ;;  %v8176_v59 = vld [vmem:[%s9824_s28 + $0x180] ss:$16 sps:$4 sm:$0xff]   ;;  %v2987_v7 = vcombine.high %v263_v52, %v263_v52  ;;  %s10872_s20 = scalar_lea.hbm %s10919_s3, %s5290_s5 }
  0x85   : > { %5312 = vmatprep.subr.bf16.mxu0 %v8130_v20  ;;  %6208 = vmatprep.subr.bf16.mxu1 %v8132_v21  ;;  %v2994_v54 = vrot.slane %v263_v52, %v9877_v49  ;;  %v8177_v60 = vld [vmem:[%s9824_s28 + $0x188] ss:$16 sps:$4 sm:$0xff]   ;;  %v8178_v61 = vld [vmem:[%s9824_s28 + $0x1a4] ss:$16 sps:$4 sm:$0xff]   ;;  %v8180_v62 = vld [vmem:[%s9824_s28 + $0x1ac] ss:$16 sps:$4 sm:$0xff]  }
  0x86   : > { %v8182_v63 = vld [vmem:[%s9824_s28 + $0x1a0] ss:$16 sps:$4 sm:$0xff]   ;;  %v8183_v0 = vld [vmem:[%s9824_s28 + $0x1a8] ss:$16 sps:$4 sm:$0xff]   ;;  %v8184_v1 = vld [vmem:[%s9824_s28 + $0x1c4] ss:$16 sps:$4 sm:$0xff]   ;;  %v9904_v12 = vrot.slane %v2987_v7, %v9877_v49 }
  0x87   : > { %v3002_v58 = vcombine.high %v2994_v54, %v2994_v54  ;;  %v8186_v2 = vld [vmem:[%s9824_s28 + $0x1cc] ss:$16 sps:$4 sm:$0xff]   ;;  %v8188_v3 = vld [vmem:[%s9824_s28 + $0x1c0] ss:$16 sps:$4 sm:$0xff]   ;;  %v8189_v4 = vld [vmem:[%s9824_s28 + $0x1c8] ss:$16 sps:$4 sm:$0xff]  }
  0x88   : > { %5314 = vmatpush1.bf16.msra.mxu0 %v8134_v22  ;;  %6210 = vmatpush1.bf16.msra.mxu1 %v8135_v23  ;;  %v8190_v5 = vld [vmem:[%s9824_s28 + $0x1e4] ss:$16 sps:$4 sm:$0xff]   ;;  %v8192_v6 = vld [vmem:[%s9824_s28 + $0x1ec] ss:$16 sps:$4 sm:$0xff]   ;;  %v8194_v8 = vld [vmem:[%s9824_s28 + $0x1e0] ss:$16 sps:$4 sm:$0xff]   ;;  %v3003_v17 = vcombine.high %v9904_v12, %v9904_v12 }
  0x89   : > { %5316 = vmatprep.subr.bf16.mxu0 %v8136_v24  ;;  %6212 = vmatprep.subr.bf16.mxu1 %v8138_v25  ;;  %v8195_v9 = vld [vmem:[%s9824_s28 + $0x1e8] ss:$16 sps:$4 sm:$0xff]   ;;  %v8197_v10 = vld [vmem:[%s9824_s28 + $0x204] ss:$16 sps:$4 sm:$0xff]   ;;  %v8200_v11 = vld [vmem:[%s9824_s28 + $0x20c] ss:$16 sps:$4 sm:$0xff]  }
  0x8a   : > { %3198 = vmatprep.mubr.f32.mxu0 %v3002_v58  ;;  %4192 = vmatprep.mubr.f32.mxu1 %v3002_v58  ;;  %v8199_v13 = vld [vmem:[%s9824_s28 + $0x200] ss:$16 sps:$4 sm:$0xff]   ;;  %v8202_v14 = vld [vmem:[%s9824_s28 + $0x208] ss:$16 sps:$4 sm:$0xff]   ;;  %v8203_v15 = vld [vmem:[%s9824_s28 + $0x224] ss:$16 sps:$4 sm:$0xff]  }
  0x8b   : > { %v8206_v16 = vld [vmem:[%s9824_s28 + $0x22c] ss:$16 sps:$4 sm:$0xff]   ;;  %v8205_v18 = vld [vmem:[%s9824_s28 + $0x220] ss:$16 sps:$4 sm:$0xff]   ;;  %v8208_v19 = vld [vmem:[%s9824_s28 + $0x228] ss:$16 sps:$4 sm:$0xff]  }
  0x8c   : > { %5318 = vmatpush1.bf16.msra.mxu0 %v8140_v26  ;;  %6214 = vmatpush1.bf16.msra.mxu1 %v8141_v27  ;;  %v8209_v20 = vld [vmem:[%s9824_s28 + $0x244] ss:$16 sps:$4 sm:$0xff]   ;;  %v8212_v21 = vld [vmem:[%s9824_s28 + $0x24c] ss:$16 sps:$4 sm:$0xff]   ;;  %v8211_v22 = vld [vmem:[%s9824_s28 + $0x240] ss:$16 sps:$4 sm:$0xff]  }
  0x8d   : > { %5320 = vmatprep.subr.bf16.mxu0 %v8142_v28  ;;  %6216 = vmatprep.subr.bf16.mxu1 %v8144_v29  ;;  %v8214_v23 = vld [vmem:[%s9824_s28 + $0x248] ss:$16 sps:$4 sm:$0xff]   ;;  %v8215_v24 = vld [vmem:[%s9824_s28 + $0x264] ss:$16 sps:$4 sm:$0xff]   ;;  %v8218_v25 = vld [vmem:[%s9824_s28 + $0x26c] ss:$16 sps:$4 sm:$0xff]  }
  0x8e   : > { %v8217_v26 = vld [vmem:[%s9824_s28 + $0x260] ss:$16 sps:$4 sm:$0xff]   ;;  %v8220_v27 = vld [vmem:[%s9824_s28 + $0x268] ss:$16 sps:$4 sm:$0xff]   ;;  %v8221_v28 = vld [vmem:[%s9824_s28 + $0x284] ss:$16 sps:$4 sm:$0xff]  }
  0x8f   : > { %v8224_v29 = vld [vmem:[%s9824_s28 + $0x28c] ss:$16 sps:$4 sm:$0xff]   ;;  %v8233_v36 = vld [vmem:[%s9824_s28 + $0x2c4] ss:$16 sps:$4 sm:$0xff]   ;;  %v8235_v38 = vld [vmem:[%s9824_s28 + $0x2c0] ss:$16 sps:$4 sm:$0xff]  }
  0x90   : > { %5322 = vmatpush1.bf16.msra.mxu0 %v8146_v30  ;;  %6218 = vmatpush1.bf16.msra.mxu1 %v8147_v31  ;;  %v8223_v30 = vld [vmem:[%s9824_s28 + $0x280] ss:$16 sps:$4 sm:$0xff]   ;;  %v8226_v31 = vld [vmem:[%s9824_s28 + $0x288] ss:$16 sps:$4 sm:$0xff]   ;;  %v8236_v37 = vld [vmem:[%s9824_s28 + $0x2cc] ss:$16 sps:$4 sm:$0xff]  }
  0x91   : > { %5324 = vmatprep.subr.bf16.mxu0 %v8148_v32  ;;  %6220 = vmatprep.subr.bf16.mxu1 %v8150_v33  ;;  %v8227_v32 = vld [vmem:[%s9824_s28 + $0x2a4] ss:$16 sps:$4 sm:$0xff]   ;;  %v8230_v33 = vld [vmem:[%s9824_s28 + $0x2ac] ss:$16 sps:$4 sm:$0xff]   ;;  %v8241_v43 = vld [vmem:[%s9824_s28 + $0x2e0] ss:$16 sps:$4 sm:$0xff]  }
  0x92   : > { %v8253_v52 = vld [vmem:[%s9824_s28 + $0x320] ss:$16 sps:$4 sm:$0xff]   ;;  %v8263_v58 = vld [vmem:[%s9824_s28 + $0x364] ss:$16 sps:$4 sm:$0xff]   ;;  %v8284_v7 = vld [vmem:[%s9824_s28 + $0x3cc] ss:$16 sps:$4 sm:$0xff]  }
  0x93   : > { %s261_s9 = scalar_lea.vmem [#allocation8], %s5283_s4  ;;  %s5146_s27 = scalar_lea.sflag [#allocation4], %s9812_s10 }
  0x94   : > { %5326 = vmatpush1.bf16.msra.mxu0 %v8152_v34  ;;  %6222 = vmatpush1.bf16.msra.mxu1 %v8153_v35  ;;  %v8229_v34 = vld [vmem:[%s9824_s28 + $0x2a0] ss:$16 sps:$4 sm:$0xff]   ;;  %v8232_v35 = vld [vmem:[%s9824_s28 + $0x2a8] ss:$16 sps:$4 sm:$0xff]   ;;  %s5160_s7 = sshll.u32 %s261_s9, 4  ;;  %p10934_p7 = scmp.ne.s32.totalorder %s10924_s23, 0  ;;  %s10874_s7 = int_to_ptr.vmem [resolvable:$true] %s5160_s7 }
  0x95   : > { %5328 = vmatprep.subr.bf16.mxu0 %v8154_v39  ;;  %6224 = vmatprep.subr.bf16.mxu1 %v8156_v40  ;;  %v8238_v39 = vld [vmem:[%s9824_s28 + $0x2c8] ss:$16 sps:$4 sm:$0xff]   ;;  %v8239_v40 = vld [vmem:[%s9824_s28 + $0x2e4] ss:$16 sps:$4 sm:$0xff]   ;;  %s9541_s16 = scalar_lea.vmem %s10874_s7, 128  ;;  %s9619_s11 = smov [#allocation8]  }
  0x96   : > { %p9542_p2 = scmp.ne.s32.totalorder %s10874_s7, %s9541_s16  ;;  %s9545_s30 = sshll.u32 %s9619_s11, 4  ;;  %s9546_s30 = int_to_ptr.vmem [resolvable:$false] %s9545_s30 }
  0x97   : > { %p9548_p12 = scmp.lt.s32.totalorder %s10874_s7, %s9546_s30 }
  0x98   : > { %5330 = vmatpush1.bf16.msra.mxu0 %v8158_v41  ;;  %6226 = vmatpush1.bf16.msra.mxu1 %v8159_v44  ;;  %v8242_v41 = vld [vmem:[%s9824_s28 + $0x2ec] ss:$16 sps:$4 sm:$0xff]   ;;  %v8244_v44 = vld [vmem:[%s9824_s28 + $0x2e8] ss:$16 sps:$4 sm:$0xff]   ;;  %p9543_p9 = pnand %p9542_p2, %p10934_p7 }
  0x99   : > { %5332 = vmatprep.subr.bf16.mxu0 %v8160_v45  ;;  %6228 = vmatprep.subr.bf16.mxu1 %v8162_v46  ;;  %v8245_v45 = vld [vmem:[%s9824_s28 + $0x304] ss:$16 sps:$4 sm:$0xff]   ;;  %v8248_v46 = vld [vmem:[%s9824_s28 + $0x30c] ss:$16 sps:$4 sm:$0xff]  }
  0x9a   : > { %p9544_p6 = pneg %p9543_p9 }
  0x9c   : > { %5334 = vmatpush1.bf16.msra.mxu0 %v8164_v47  ;;  %6230 = vmatpush1.bf16.msra.mxu1 %v8165_v48  ;;  %v8247_v47 = vld [vmem:[%s9824_s28 + $0x300] ss:$16 sps:$4 sm:$0xff]   ;;  %v8250_v48 = vld [vmem:[%s9824_s28 + $0x308] ss:$16 sps:$4 sm:$0xff]  }
  0x9d   : > { %5336 = vmatprep.subr.bf16.mxu0 %v8166_v50  ;;  %6232 = vmatprep.subr.bf16.mxu1 %v8168_v51  ;;  %v8251_v50 = vld [vmem:[%s9824_s28 + $0x324] ss:$16 sps:$4 sm:$0xff]   ;;  %v8254_v51 = vld [vmem:[%s9824_s28 + $0x32c] ss:$16 sps:$4 sm:$0xff]  }
  0xa0   : > { %5338 = vmatpush1.bf16.msra.mxu0 %v8170_v53  ;;  %6234 = vmatpush1.bf16.msra.mxu1 %v8171_v55  ;;  %v8256_v53 = vld [vmem:[%s9824_s28 + $0x328] ss:$16 sps:$4 sm:$0xff]   ;;  %v8260_v55 = vld [vmem:[%s9824_s28 + $0x34c] ss:$16 sps:$4 sm:$0xff]  }
  0xa1   : > { %5340 = vmatprep.subr.bf16.mxu0 %v8172_v56  ;;  %6236 = vmatprep.subr.bf16.mxu1 %v8174_v57  ;;  %v8259_v56 = vld [vmem:[%s9824_s28 + $0x340] ss:$16 sps:$4 sm:$0xff]   ;;  %v8262_v57 = vld [vmem:[%s9824_s28 + $0x348] ss:$16 sps:$4 sm:$0xff]  }
  0xa4   : > { %5342 = vmatpush1.bf16.msra.mxu0 %v8176_v59  ;;  %6238 = vmatpush1.bf16.msra.mxu1 %v8177_v60  ;;  %v8266_v59 = vld [vmem:[%s9824_s28 + $0x36c] ss:$16 sps:$4 sm:$0xff]   ;;  %v8265_v60 = vld [vmem:[%s9824_s28 + $0x360] ss:$16 sps:$4 sm:$0xff]  }
  0xa5   : > { %5344 = vmatprep.subr.bf16.mxu0 %v8178_v61  ;;  %6240 = vmatprep.subr.bf16.mxu1 %v8180_v62  ;;  %v8268_v61 = vld [vmem:[%s9824_s28 + $0x368] ss:$16 sps:$4 sm:$0xff]   ;;  %v8269_v62 = vld [vmem:[%s9824_s28 + $0x384] ss:$16 sps:$4 sm:$0xff]  }
  0xa8   : > { %5346 = vmatpush1.bf16.msra.mxu0 %v8182_v63  ;;  %6242 = vmatpush1.bf16.msra.mxu1 %v8183_v0  ;;  %v8272_v63 = vld [vmem:[%s9824_s28 + $0x38c] ss:$16 sps:$4 sm:$0xff]   ;;  %v8271_v0 = vld [vmem:[%s9824_s28 + $0x380] ss:$16 sps:$4 sm:$0xff]  }
  0xa9   : > { %5348 = vmatprep.subr.bf16.mxu0 %v8184_v1  ;;  %6244 = vmatprep.subr.bf16.mxu1 %v8186_v2  ;;  %v8274_v1 = vld [vmem:[%s9824_s28 + $0x388] ss:$16 sps:$4 sm:$0xff]   ;;  %v8275_v2 = vld [vmem:[%s9824_s28 + $0x3a4] ss:$16 sps:$4 sm:$0xff]  }
  0xac   : > { %5350 = vmatpush1.bf16.msra.mxu0 %v8188_v3  ;;  %6246 = vmatpush1.bf16.msra.mxu1 %v8189_v4  ;;  %v8278_v3 = vld [vmem:[%s9824_s28 + $0x3ac] ss:$16 sps:$4 sm:$0xff]   ;;  %v8277_v4 = vld [vmem:[%s9824_s28 + $0x3a0] ss:$16 sps:$4 sm:$0xff]  }
  0xad   : > { %5352 = vmatprep.subr.bf16.mxu0 %v8190_v5  ;;  %6248 = vmatprep.subr.bf16.mxu1 %v8192_v6  ;;  %v8280_v5 = vld [vmem:[%s9824_s28 + $0x3a8] ss:$16 sps:$4 sm:$0xff]   ;;  %v8281_v6 = vld [vmem:[%s9824_s28 + $0x3c4] ss:$16 sps:$4 sm:$0xff]  }
  0xb0   : > { %5354 = vmatpush1.bf16.msra.mxu0 %v8194_v8  ;;  %6250 = vmatpush1.bf16.msra.mxu1 %v8195_v9  ;;  %v8283_v8 = vld [vmem:[%s9824_s28 + $0x3c0] ss:$16 sps:$4 sm:$0xff]   ;;  %v8286_v9 = vld [vmem:[%s9824_s28 + $0x3c8] ss:$16 sps:$4 sm:$0xff]  }
  0xb1   : > { %5356 = vmatprep.subr.bf16.mxu0 %v8197_v10  ;;  %6252 = vmatprep.subr.bf16.mxu1 %v8200_v11  ;;  %v8287_v10 = vld [vmem:[%s9824_s28 + $0x3e4] ss:$16 sps:$4 sm:$0xff]   ;;  %v8290_v11 = vld [vmem:[%s9824_s28 + $0x3ec] ss:$16 sps:$4 sm:$0xff]  }
  0xb3   : > { %3199 = vmatmul.mubr.f32.vlgmr.msra.gmra.mrb[0].mxu0 %v2994_v54  ;;  %4193 = vmatmul.mubr.f32.vlgmr.msra.gmra.mrb[0].mxu1 %v2994_v54  ;;  %v8257_v54 = vld [vmem:[%s9824_s28 + $0x344] ss:$16 sps:$4 sm:$0xff]  }
  0xb4   : > { %5358 = vmatpush1.bf16.msra.mxu0 %v8199_v13  ;;  %6254 = vmatpush1.bf16.msra.mxu1 %v8202_v14  ;;  %v8289_v13 = vld [vmem:[%s9824_s28 + $0x3e0] ss:$16 sps:$4 sm:$0xff]   ;;  %v8292_v14 = vld [vmem:[%s9824_s28 + $0x3e8] ss:$16 sps:$4 sm:$0xff]  }
  0xb5   : > { %5360 = vmatprep.subr.bf16.mxu0 %v8203_v15  ;;  %6256 = vmatprep.subr.bf16.mxu1 %v8206_v16  ;;  %v8293_v15 = vld [vmem:[%s9824_s28 + $0x404] ss:$16 sps:$4 sm:$0xff]   ;;  %v8296_v16 = vld [vmem:[%s9824_s28 + $0x40c] ss:$16 sps:$4 sm:$0xff]  }
  0xb6   : > { %3269 = vmatprep.mubr.f32.mxu0 %v3003_v17  ;;  %4263 = vmatprep.mubr.f32.mxu1 %v3003_v17  ;;  %v8295_v17 = vld [vmem:[%s9824_s28 + $0x400] ss:$16 sps:$4 sm:$0xff]  }
  0xb8   : > { %5362 = vmatpush1.bf16.msra.mxu0 %v8205_v18  ;;  %6258 = vmatpush1.bf16.msra.mxu1 %v8208_v19  ;;  %v8298_v18 = vld [vmem:[%s9824_s28 + $0x408] ss:$16 sps:$4 sm:$0xff]  }
  0xb9   : > { %5364 = vmatprep.subr.bf16.mxu0 %v8209_v20  ;;  %6260 = vmatprep.subr.bf16.mxu1 %v8212_v21  ;;  %v9975_v19 = vld [vmem:[%s9816_s29 + $0x8] sm:$0xff] }
  0xba   : > { %v8299_v20 = vld [vmem:[%s9824_s28 + $0x424] ss:$16 sps:$4 sm:$0xff]   ;;  %v8302_v21 = vld [vmem:[%s9824_s28 + $0x42c] ss:$16 sps:$4 sm:$0xff]  }
  0xbc   : > { %5366 = vmatpush1.bf16.msra.mxu0 %v8211_v22  ;;  %6262 = vmatpush1.bf16.msra.mxu1 %v8214_v23  ;;  %v9981_v22 = vrot.slane %v9975_v19, %v9877_v49 }
  0xbd   : > { %5368 = vmatprep.subr.bf16.mxu0 %v8215_v24  ;;  %6264 = vmatprep.subr.bf16.mxu1 %v8218_v25  ;;  %v8301_v24 = vld [vmem:[%s9824_s28 + $0x420] ss:$16 sps:$4 sm:$0xff]   ;;  %v8304_v25 = vld [vmem:[%s9824_s28 + $0x428] ss:$16 sps:$4 sm:$0xff]  }
  0xbe   : > { %v3019_v23 = vcombine.high %v9981_v22, %v9981_v22 }
  0xc0   : > { %5370 = vmatpush1.bf16.msra.mxu0 %v8217_v26  ;;  %6266 = vmatpush1.bf16.msra.mxu1 %v8220_v27  ;;  %v8305_v26 = vld [vmem:[%s9824_s28 + $0x444] ss:$16 sps:$4 sm:$0xff]   ;;  %v8308_v27 = vld [vmem:[%s9824_s28 + $0x44c] ss:$16 sps:$4 sm:$0xff]  }
  0xc1   : > { %5372 = vmatprep.subr.bf16.mxu0 %v8221_v28  ;;  %6268 = vmatprep.subr.bf16.mxu1 %v8224_v29  ;;  %v8310_v28 = vld [vmem:[%s9824_s28 + $0x448] ss:$16 sps:$4 sm:$0xff]   ;;  %v8311_v29 = vld [vmem:[%s9824_s28 + $0x464] ss:$16 sps:$4 sm:$0xff]  }
  0xc4   : > { %5374 = vmatpush1.bf16.msra.mxu0 %v8223_v30  ;;  %6270 = vmatpush1.bf16.msra.mxu1 %v8226_v31  ;;  %v8314_v30 = vld [vmem:[%s9824_s28 + $0x46c] ss:$16 sps:$4 sm:$0xff]   ;;  %v8313_v31 = vld [vmem:[%s9824_s28 + $0x460] ss:$16 sps:$4 sm:$0xff]  }
  0xc5   : > { %5376 = vmatprep.subr.bf16.mxu0 %v8227_v32  ;;  %6272 = vmatprep.subr.bf16.mxu1 %v8230_v33  ;;  %v8316_v32 = vld [vmem:[%s9824_s28 + $0x468] ss:$16 sps:$4 sm:$0xff]   ;;  %v8317_v33 = vld [vmem:[%s9824_s28 + $0x484] ss:$16 sps:$4 sm:$0xff]  }
  0xc8   : > { %5378 = vmatpush1.bf16.msra.mxu0 %v8229_v34  ;;  %6274 = vmatpush1.bf16.msra.mxu1 %v8232_v35  ;;  %v8320_v34 = vld [vmem:[%s9824_s28 + $0x48c] ss:$16 sps:$4 sm:$0xff]   ;;  %v8319_v35 = vld [vmem:[%s9824_s28 + $0x480] ss:$16 sps:$4 sm:$0xff]  }
  0xc9   : > { %5380 = vmatprep.subr.bf16.mxu0 %v8233_v36  ;;  %6276 = vmatprep.subr.bf16.mxu1 %v8236_v37  ;;  %v8322_v36 = vld [vmem:[%s9824_s28 + $0x488] ss:$16 sps:$4 sm:$0xff]   ;;  %v8323_v37 = vld [vmem:[%s9824_s28 + $0x4a4] ss:$16 sps:$4 sm:$0xff]  }
  0xcc   : > { %5382 = vmatpush1.bf16.msra.mxu0 %v8235_v38  ;;  %6278 = vmatpush1.bf16.msra.mxu1 %v8238_v39  ;;  %v8326_v38 = vld [vmem:[%s9824_s28 + $0x4ac] ss:$16 sps:$4 sm:$0xff]   ;;  %v8325_v39 = vld [vmem:[%s9824_s28 + $0x4a0] ss:$16 sps:$4 sm:$0xff]  }
  0xcd   : > { %5384 = vmatprep.subr.bf16.mxu0 %v8239_v40  ;;  %6280 = vmatprep.subr.bf16.mxu1 %v8242_v41  ;;  %v8328_v40 = vld [vmem:[%s9824_s28 + $0x4a8] ss:$16 sps:$4 sm:$0xff]   ;;  %v8329_v41 = vld [vmem:[%s9824_s28 + $0x4c4] ss:$16 sps:$4 sm:$0xff]  }
  0xd0   : > { %5386 = vmatpush1.bf16.msra.mxu0 %v8241_v43  ;;  %6282 = vmatpush1.bf16.msra.mxu1 %v8244_v44  ;;  %v8332_v43 = vld [vmem:[%s9824_s28 + $0x4cc] ss:$16 sps:$4 sm:$0xff]   ;;  %v8331_v44 = vld [vmem:[%s9824_s28 + $0x4c0] ss:$16 sps:$4 sm:$0xff]  }
  0xd1   : > { %5388 = vmatprep.subr.bf16.mxu0 %v8245_v45  ;;  %6284 = vmatprep.subr.bf16.mxu1 %v8248_v46  ;;  %v8334_v45 = vld [vmem:[%s9824_s28 + $0x4c8] ss:$16 sps:$4 sm:$0xff]   ;;  %v8335_v46 = vld [vmem:[%s9824_s28 + $0x4e4] ss:$16 sps:$4 sm:$0xff]  }
  0xd4   : > { %5390 = vmatpush1.bf16.msra.mxu0 %v8247_v47  ;;  %6286 = vmatpush1.bf16.msra.mxu1 %v8250_v48  ;;  %v8338_v47 = vld [vmem:[%s9824_s28 + $0x4ec] ss:$16 sps:$4 sm:$0xff]   ;;  %v8337_v48 = vld [vmem:[%s9824_s28 + $0x4e0] ss:$16 sps:$4 sm:$0xff]  }
  0xd5   : > { %5392 = vmatprep.subr.bf16.mxu0 %v8251_v50  ;;  %6288 = vmatprep.subr.bf16.mxu1 %v8254_v51  ;;  %v8340_v50 = vld [vmem:[%s9824_s28 + $0x4e8] ss:$16 sps:$4 sm:$0xff]   ;;  %v8341_v51 = vld [vmem:[%s9824_s28 + $0x504] ss:$16 sps:$4 sm:$0xff]  }
  0xd8   : > { %5394 = vmatpush1.bf16.msra.mxu0 %v8253_v52  ;;  %6290 = vmatpush1.bf16.msra.mxu1 %v8256_v53  ;;  %v8344_v52 = vld [vmem:[%s9824_s28 + $0x50c] ss:$16 sps:$4 sm:$0xff]   ;;  %v8343_v53 = vld [vmem:[%s9824_s28 + $0x500] ss:$16 sps:$4 sm:$0xff]  }
  0xd9   : > { %5396 = vmatprep.subr.bf16.mxu0 %v8257_v54  ;;  %6292 = vmatprep.subr.bf16.mxu1 %v8260_v55  ;;  %v8346_v54 = vld [vmem:[%s9824_s28 + $0x508] ss:$16 sps:$4 sm:$0xff]   ;;  %v8347_v55 = vld [vmem:[%s9824_s28 + $0x524] ss:$16 sps:$4 sm:$0xff]  }
  0xdc   : > { %5398 = vmatpush1.bf16.msra.mxu0 %v8259_v56  ;;  %6294 = vmatpush1.bf16.msra.mxu1 %v8262_v57  ;;  %v8350_v56 = vld [vmem:[%s9824_s28 + $0x52c] ss:$16 sps:$4 sm:$0xff]   ;;  %v8349_v57 = vld [vmem:[%s9824_s28 + $0x520] ss:$16 sps:$4 sm:$0xff]  }
  0xdd   : > { %5400 = vmatprep.subr.bf16.mxu0 %v8263_v58  ;;  %6296 = vmatprep.subr.bf16.mxu1 %v8266_v59  ;;  %v8352_v58 = vld [vmem:[%s9824_s28 + $0x528] ss:$16 sps:$4 sm:$0xff]   ;;  %v8353_v59 = vld [vmem:[%s9824_s28 + $0x544] ss:$16 sps:$4 sm:$0xff]  }
  0xe0   : > { %5402 = vmatpush1.bf16.msra.mxu0 %v8265_v60  ;;  %6298 = vmatpush1.bf16.msra.mxu1 %v8268_v61  ;;  %v8356_v60 = vld [vmem:[%s9824_s28 + $0x54c] ss:$16 sps:$4 sm:$0xff]   ;;  %v8355_v61 = vld [vmem:[%s9824_s28 + $0x540] ss:$16 sps:$4 sm:$0xff]  }
  0xe1   : > { %5404 = vmatprep.subr.bf16.mxu0 %v8269_v62  ;;  %6300 = vmatprep.subr.bf16.mxu1 %v8272_v63  ;;  %v8358_v62 = vld [vmem:[%s9824_s28 + $0x548] ss:$16 sps:$4 sm:$0xff]   ;;  %v8359_v63 = vld [vmem:[%s9824_s28 + $0x564] ss:$16 sps:$4 sm:$0xff]  }
  0xe4   : > { %5406 = vmatpush1.bf16.msra.mxu0 %v8271_v0  ;;  %6302 = vmatpush1.bf16.msra.mxu1 %v8274_v1  ;;  %v8362_v0 = vld [vmem:[%s9824_s28 + $0x56c] ss:$16 sps:$4 sm:$0xff]   ;;  %v8361_v1 = vld [vmem:[%s9824_s28 + $0x560] ss:$16 sps:$4 sm:$0xff]  }
  0xe5   : > { %5408 = vmatprep.subr.bf16.mxu0 %v8275_v2  ;;  %6304 = vmatprep.subr.bf16.mxu1 %v8278_v3  ;;  %v8364_v2 = vld [vmem:[%s9824_s28 + $0x568] ss:$16 sps:$4 sm:$0xff]   ;;  %v8365_v3 = vld [vmem:[%s9824_s28 + $0x584] ss:$16 sps:$4 sm:$0xff]  }
  0xe8   : > { %5410 = vmatpush1.bf16.msra.mxu0 %v8277_v4  ;;  %6306 = vmatpush1.bf16.msra.mxu1 %v8280_v5  ;;  %v8368_v4 = vld [vmem:[%s9824_s28 + $0x58c] ss:$16 sps:$4 sm:$0xff]   ;;  %v8367_v5 = vld [vmem:[%s9824_s28 + $0x580] ss:$16 sps:$4 sm:$0xff]  }
  0xe9   : > { %5412 = vmatprep.subr.bf16.mxu0 %v8281_v6  ;;  %6308 = vmatprep.subr.bf16.mxu1 %v8284_v7  ;;  %v8370_v6 = vld [vmem:[%s9824_s28 + $0x588] ss:$16 sps:$4 sm:$0xff]   ;;  %v8371_v7 = vld [vmem:[%s9824_s28 + $0x5a4] ss:$16 sps:$4 sm:$0xff]  }
  0xec   : > { %5414 = vmatpush1.bf16.msra.mxu0 %v8283_v8  ;;  %6310 = vmatpush1.bf16.msra.mxu1 %v8286_v9  ;;  %v8374_v8 = vld [vmem:[%s9824_s28 + $0x5ac] ss:$16 sps:$4 sm:$0xff]   ;;  %v8373_v9 = vld [vmem:[%s9824_s28 + $0x5a0] ss:$16 sps:$4 sm:$0xff]  }
  0xed   : > { %5416 = vmatprep.subr.bf16.mxu0 %v8287_v10  ;;  %6312 = vmatprep.subr.bf16.mxu1 %v8290_v11  ;;  %v8376_v10 = vld [vmem:[%s9824_s28 + $0x5a8] ss:$16 sps:$4 sm:$0xff]   ;;  %v8377_v11 = vld [vmem:[%s9824_s28 + $0x5c4] ss:$16 sps:$4 sm:$0xff]  }
  0xf0   : > { %5418 = vmatpush1.bf16.msra.mxu0 %v8289_v13  ;;  %6314 = vmatpush1.bf16.msra.mxu1 %v8292_v14  ;;  %v8380_v13 = vld [vmem:[%s9824_s28 + $0x5cc] ss:$16 sps:$4 sm:$0xff]   ;;  %v8379_v14 = vld [vmem:[%s9824_s28 + $0x5c0] ss:$16 sps:$4 sm:$0xff]  }
  0xf1   : > { %5420 = vmatprep.subr.bf16.mxu0 %v8293_v15  ;;  %6316 = vmatprep.subr.bf16.mxu1 %v8296_v16  ;;  %v8382_v15 = vld [vmem:[%s9824_s28 + $0x5c8] ss:$16 sps:$4 sm:$0xff]   ;;  %v8383_v16 = vld [vmem:[%s9824_s28 + $0x5e4] ss:$16 sps:$4 sm:$0xff]  }
  0xf3   : > { %3270 = vmatmul.mubr.f32.vlgmr.msra.gmra.mrb[0].mxu0 %v9904_v12  ;;  %4264 = vmatmul.mubr.f32.vlgmr.msra.gmra.mrb[0].mxu1 %v9904_v12  ;;  %v8307_v12 = vld [vmem:[%s9824_s28 + $0x440] ss:$16 sps:$4 sm:$0xff]  }
  0xf4   : > { %5422 = vmatpush1.bf16.msra.mxu0 %v8295_v17  ;;  %6318 = vmatpush1.bf16.msra.mxu1 %v8298_v18  ;;  %v8386_v17 = vld [vmem:[%s9824_s28 + $0x5ec] ss:$16 sps:$4 sm:$0xff]   ;;  %v3004_v18 = vcombine.high %v9975_v19, %v9975_v19  ;;  %v8394_v19 = vld [vmem:[%s9824_s28 + $0x608] ss:$16 sps:$4 sm:$0xff]  }
  0xf5   : > { %5424 = vmatprep.subr.bf16.mxu0 %v8299_v20  ;;  %6320 = vmatprep.subr.bf16.mxu1 %v8302_v21  ;;  %v8385_v20 = vld [vmem:[%s9824_s28 + $0x5e0] ss:$16 sps:$4 sm:$0xff]   ;;  %v8388_v21 = vld [vmem:[%s9824_s28 + $0x5e8] ss:$16 sps:$4 sm:$0xff]  }
  0xf6   : > { %3340 = vmatprep.mubr.f32.mxu0 %v3019_v23  ;;  %4334 = vmatprep.mubr.f32.mxu1 %v3019_v23  ;;  %v8389_v23 = vld [vmem:[%s9824_s28 + $0x604] ss:$16 sps:$4 sm:$0xff]  }
  0xf8   : > { %5426 = vmatpush1.bf16.msra.mxu0 %v8301_v24  ;;  %6322 = vmatpush1.bf16.msra.mxu1 %v8304_v25  ;;  %v8392_v24 = vld [vmem:[%s9824_s28 + $0x60c] ss:$16 sps:$4 sm:$0xff]   ;;  %v10050_v25 = vrot.slane %v3004_v18, %v9877_v49 }
  0xf9   : > { %5428 = vmatprep.subr.bf16.mxu0 %v8305_v26  ;;  %6324 = vmatprep.subr.bf16.mxu1 %v8308_v27  ;;  %v8391_v26 = vld [vmem:[%s9824_s28 + $0x600] ss:$16 sps:$4 sm:$0xff]   ;;  %v8395_v27 = vld [vmem:[%s9824_s28 + $0x624] ss:$16 sps:$4 sm:$0xff]   ;;  %v8476_v18 = vld [vmem:[%s9824_s28 + $0x7cc] ss:$16 sps:$4 sm:$0xff]  }
  0xfc   : > { %5430 = vmatpush1.bf16.msra.mxu0 %v8307_v12  ;;  %6326 = vmatpush1.bf16.msra.mxu1 %v8310_v28  ;;  %v8398_v12 = vld [vmem:[%s9824_s28 + $0x62c] ss:$16 sps:$4 sm:$0xff]   ;;  %v3020_v28 = vcombine.high %v10050_v25, %v10050_v25 }
  0xfd   : > { %5432 = vmatprep.subr.bf16.mxu0 %v8311_v29  ;;  %6328 = vmatprep.subr.bf16.mxu1 %v8314_v30  ;;  %v8397_v29 = vld [vmem:[%s9824_s28 + $0x620] ss:$16 sps:$4 sm:$0xff]   ;;  %v8400_v30 = vld [vmem:[%s9824_s28 + $0x628] ss:$16 sps:$4 sm:$0xff]  }
 0x100   : > { %5434 = vmatpush1.bf16.msra.mxu0 %v8313_v31  ;;  %6330 = vmatpush1.bf16.msra.mxu1 %v8316_v32  ;;  %v8401_v31 = vld [vmem:[%s9824_s28 + $0x644] ss:$16 sps:$4 sm:$0xff]   ;;  %v8404_v32 = vld [vmem:[%s9824_s28 + $0x64c] ss:$16 sps:$4 sm:$0xff]  }
 0x101   : > { %5436 = vmatprep.subr.bf16.mxu0 %v8317_v33  ;;  %6332 = vmatprep.subr.bf16.mxu1 %v8320_v34  ;;  %v8403_v33 = vld [vmem:[%s9824_s28 + $0x640] ss:$16 sps:$4 sm:$0xff]   ;;  %v8407_v34 = vld [vmem:[%s9824_s28 + $0x664] ss:$16 sps:$4 sm:$0xff]  }
 0x104   : > { %5438 = vmatpush1.bf16.msra.mxu0 %v8319_v35  ;;  %6334 = vmatpush1.bf16.msra.mxu1 %v8322_v36  ;;  %v8410_v35 = vld [vmem:[%s9824_s28 + $0x66c] ss:$16 sps:$4 sm:$0xff]   ;;  %v8409_v36 = vld [vmem:[%s9824_s28 + $0x660] ss:$16 sps:$4 sm:$0xff]  }
 0x105   : > { %5440 = vmatprep.subr.bf16.mxu0 %v8323_v37  ;;  %6336 = vmatprep.subr.bf16.mxu1 %v8326_v38  ;;  %v8412_v37 = vld [vmem:[%s9824_s28 + $0x668] ss:$16 sps:$4 sm:$0xff]   ;;  %v8413_v38 = vld [vmem:[%s9824_s28 + $0x684] ss:$16 sps:$4 sm:$0xff]  }
 0x108   : > { %5442 = vmatpush1.bf16.msra.mxu0 %v8325_v39  ;;  %6338 = vmatpush1.bf16.msra.mxu1 %v8328_v40  ;;  %v8416_v39 = vld [vmem:[%s9824_s28 + $0x68c] ss:$16 sps:$4 sm:$0xff]   ;;  %v8415_v40 = vld [vmem:[%s9824_s28 + $0x680] ss:$16 sps:$4 sm:$0xff]  }
 0x109   : > { %5444 = vmatprep.subr.bf16.mxu0 %v8329_v41  ;;  %6340 = vmatprep.subr.bf16.mxu1 %v8332_v43  ;;  %v8418_v41 = vld [vmem:[%s9824_s28 + $0x688] ss:$16 sps:$4 sm:$0xff]   ;;  %v8419_v43 = vld [vmem:[%s9824_s28 + $0x6a4] ss:$16 sps:$4 sm:$0xff]  }
 0x10c   : > { %5446 = vmatpush1.bf16.msra.mxu0 %v8331_v44  ;;  %6342 = vmatpush1.bf16.msra.mxu1 %v8334_v45  ;;  %v8422_v44 = vld [vmem:[%s9824_s28 + $0x6ac] ss:$16 sps:$4 sm:$0xff]   ;;  %v8421_v45 = vld [vmem:[%s9824_s28 + $0x6a0] ss:$16 sps:$4 sm:$0xff]  }
 0x10d   : > { %5448 = vmatprep.subr.bf16.mxu0 %v8335_v46  ;;  %6344 = vmatprep.subr.bf16.mxu1 %v8338_v47  ;;  %v8424_v46 = vld [vmem:[%s9824_s28 + $0x6a8] ss:$16 sps:$4 sm:$0xff]   ;;  %v8425_v47 = vld [vmem:[%s9824_s28 + $0x6c4] ss:$16 sps:$4 sm:$0xff]  }
 0x110   : > { %5450 = vmatpush1.bf16.msra.mxu0 %v8337_v48  ;;  %6346 = vmatpush1.bf16.msra.mxu1 %v8340_v50  ;;  %v8428_v48 = vld [vmem:[%s9824_s28 + $0x6cc] ss:$16 sps:$4 sm:$0xff]   ;;  %v8427_v50 = vld [vmem:[%s9824_s28 + $0x6c0] ss:$16 sps:$4 sm:$0xff]  }
 0x111   : > { %5452 = vmatprep.subr.bf16.mxu0 %v8341_v51  ;;  %6348 = vmatprep.subr.bf16.mxu1 %v8344_v52  ;;  %v8430_v51 = vld [vmem:[%s9824_s28 + $0x6c8] ss:$16 sps:$4 sm:$0xff]   ;;  %v8431_v52 = vld [vmem:[%s9824_s28 + $0x6e4] ss:$16 sps:$4 sm:$0xff]  }
 0x114   : > { %5454 = vmatpush1.bf16.msra.mxu0 %v8343_v53  ;;  %6350 = vmatpush1.bf16.msra.mxu1 %v8346_v54  ;;  %v8434_v53 = vld [vmem:[%s9824_s28 + $0x6ec] ss:$16 sps:$4 sm:$0xff]   ;;  %v8433_v54 = vld [vmem:[%s9824_s28 + $0x6e0] ss:$16 sps:$4 sm:$0xff]  }
 0x115   : > { %5456 = vmatprep.subr.bf16.mxu0 %v8347_v55  ;;  %6352 = vmatprep.subr.bf16.mxu1 %v8350_v56  ;;  %v8436_v55 = vld [vmem:[%s9824_s28 + $0x6e8] ss:$16 sps:$4 sm:$0xff]   ;;  %v8437_v56 = vld [vmem:[%s9824_s28 + $0x704] ss:$16 sps:$4 sm:$0xff]  }
 0x118   : > { %5458 = vmatpush1.bf16.msra.mxu0 %v8349_v57  ;;  %6354 = vmatpush1.bf16.msra.mxu1 %v8352_v58  ;;  %v8440_v57 = vld [vmem:[%s9824_s28 + $0x70c] ss:$16 sps:$4 sm:$0xff]   ;;  %v8439_v58 = vld [vmem:[%s9824_s28 + $0x700] ss:$16 sps:$4 sm:$0xff]  }
 0x119   : > { %5460 = vmatprep.subr.bf16.mxu0 %v8353_v59  ;;  %6356 = vmatprep.subr.bf16.mxu1 %v8356_v60  ;;  %v8442_v59 = vld [vmem:[%s9824_s28 + $0x708] ss:$16 sps:$4 sm:$0xff]   ;;  %v8443_v60 = vld [vmem:[%s9824_s28 + $0x724] ss:$16 sps:$4 sm:$0xff]  }
 0x11c   : > { %5462 = vmatpush1.bf16.msra.mxu0 %v8355_v61  ;;  %6358 = vmatpush1.bf16.msra.mxu1 %v8358_v62  ;;  %v8446_v61 = vld [vmem:[%s9824_s28 + $0x72c] ss:$16 sps:$4 sm:$0xff]   ;;  %v8445_v62 = vld [vmem:[%s9824_s28 + $0x720] ss:$16 sps:$4 sm:$0xff]  }
 0x11d   : > { %5464 = vmatprep.subr.bf16.mxu0 %v8359_v63  ;;  %6360 = vmatprep.subr.bf16.mxu1 %v8362_v0  ;;  %v8448_v63 = vld [vmem:[%s9824_s28 + $0x728] ss:$16 sps:$4 sm:$0xff]   ;;  %v8449_v0 = vld [vmem:[%s9824_s28 + $0x744] ss:$16 sps:$4 sm:$0xff]  }
 0x120   : > { %5466 = vmatpush1.bf16.msra.mxu0 %v8361_v1  ;;  %6362 = vmatpush1.bf16.msra.mxu1 %v8364_v2  ;;  %v8452_v1 = vld [vmem:[%s9824_s28 + $0x74c] ss:$16 sps:$4 sm:$0xff]   ;;  %v8451_v2 = vld [vmem:[%s9824_s28 + $0x740] ss:$16 sps:$4 sm:$0xff]  }
 0x121   : > { %5468 = vmatprep.subr.bf16.mxu0 %v8365_v3  ;;  %6364 = vmatprep.subr.bf16.mxu1 %v8368_v4  ;;  %v8454_v3 = vld [vmem:[%s9824_s28 + $0x748] ss:$16 sps:$4 sm:$0xff]   ;;  %v8455_v4 = vld [vmem:[%s9824_s28 + $0x764] ss:$16 sps:$4 sm:$0xff]  }
 0x124   : > { %5470 = vmatpush1.bf16.msra.mxu0 %v8367_v5  ;;  %6366 = vmatpush1.bf16.msra.mxu1 %v8370_v6  ;;  %v8458_v5 = vld [vmem:[%s9824_s28 + $0x76c] ss:$16 sps:$4 sm:$0xff]   ;;  %v8457_v6 = vld [vmem:[%s9824_s28 + $0x760] ss:$16 sps:$4 sm:$0xff]  }
 0x125   : > { %5472 = vmatprep.subr.bf16.mxu0 %v8371_v7  ;;  %6368 = vmatprep.subr.bf16.mxu1 %v8374_v8  ;;  %v8460_v7 = vld [vmem:[%s9824_s28 + $0x768] ss:$16 sps:$4 sm:$0xff]   ;;  %v8461_v8 = vld [vmem:[%s9824_s28 + $0x784] ss:$16 sps:$4 sm:$0xff]  }
 0x128   : > { %5474 = vmatpush1.bf16.msra.mxu0 %v8373_v9  ;;  %6370 = vmatpush1.bf16.msra.mxu1 %v8376_v10  ;;  %v8464_v9 = vld [vmem:[%s9824_s28 + $0x78c] ss:$16 sps:$4 sm:$0xff]   ;;  %v8463_v10 = vld [vmem:[%s9824_s28 + $0x780] ss:$16 sps:$4 sm:$0xff]  }
 0x129   : > { %5476 = vmatprep.subr.bf16.mxu0 %v8377_v11  ;;  %6372 = vmatprep.subr.bf16.mxu1 %v8380_v13  ;;  %v8466_v11 = vld [vmem:[%s9824_s28 + $0x788] ss:$16 sps:$4 sm:$0xff]   ;;  %v8467_v13 = vld [vmem:[%s9824_s28 + $0x7a4] ss:$16 sps:$4 sm:$0xff]  }
 0x12c   : > { %5478 = vmatpush1.bf16.msra.mxu0 %v8379_v14  ;;  %6374 = vmatpush1.bf16.msra.mxu1 %v8382_v15  ;;  %v8470_v14 = vld [vmem:[%s9824_s28 + $0x7ac] ss:$16 sps:$4 sm:$0xff]   ;;  %v8469_v15 = vld [vmem:[%s9824_s28 + $0x7a0] ss:$16 sps:$4 sm:$0xff]  }
 0x12d   : > { %5480 = vmatprep.subr.bf16.mxu0 %v8383_v16  ;;  %6376 = vmatprep.subr.bf16.mxu1 %v8386_v17  ;;  %v8472_v16 = vld [vmem:[%s9824_s28 + $0x7a8] ss:$16 sps:$4 sm:$0xff]   ;;  %v8473_v17 = vld [vmem:[%s9824_s28 + $0x7c4] ss:$16 sps:$4 sm:$0xff]  }
 0x130   : > { %5482 = vmatpush1.bf16.msra.mxu0 %v8385_v20  ;;  %6378 = vmatpush1.bf16.msra.mxu1 %v8388_v21  ;;  %v8475_v20 = vld [vmem:[%s9824_s28 + $0x7c0] ss:$16 sps:$4 sm:$0xff]   ;;  %v8478_v21 = vld [vmem:[%s9824_s28 + $0x7c8] ss:$16 sps:$4 sm:$0xff]  }
 0x131   : > { %5484 = vmatprep.subr.bf16.mxu0 %v8389_v23  ;;  %6380 = vmatprep.subr.bf16.mxu1 %v8392_v24  ;;  %v8479_v23 = vld [vmem:[%s9824_s28 + $0x7e4] ss:$16 sps:$4 sm:$0xff]   ;;  %v8482_v24 = vld [vmem:[%s9824_s28 + $0x7ec] ss:$16 sps:$4 sm:$0xff]  }
 0x133   : > { %3341 = vmatmul.mubr.f32.vlgmr.msra.gmra.mrb[0].mxu0 %v9981_v22  ;;  %4335 = vmatmul.mubr.f32.vlgmr.msra.gmra.mrb[0].mxu1 %v9981_v22  ;;  %v8406_v22 = vld [vmem:[%s9824_s28 + $0x648] ss:$16 sps:$4 sm:$0xff]  }
 0x134   : > { %5486 = vmatpush1.bf16.msra.mxu0 %v8391_v26  ;;  %6382 = vmatpush1.bf16.msra.mxu1 %v8394_v19  ;;  %v8481_v26 = vld [vmem:[%s9824_s28 + $0x7e0] ss:$16 sps:$4 sm:$0xff]  }
 0x135   : > { %5488 = vmatprep.subr.bf16.mxu0 %v8395_v27  ;;  %6384 = vmatprep.subr.bf16.mxu1 %v8398_v12  ;;  %v10118_v19 = vld [vmem:[%s9816_s29 + $0x10] sm:$0xff] }
 0x136   : > { %3411 = vmatprep.mubr.f32.mxu0 %v3020_v28  ;;  %4405 = vmatprep.mubr.f32.mxu1 %v3020_v28  ;;  %v8484_v27 = vld [vmem:[%s9824_s28 + $0x7e8] ss:$16 sps:$4 sm:$0xff]   ;;  %v8486_v12 = vld [vmem:[%s9824_s28 + $0x804] ss:$16 sps:$4 sm:$0xff]   ;;  %v8489_v28 = vld [vmem:[%s9824_s28 + $0x80c] ss:$16 sps:$4 sm:$0xff]  }
 0x138   : > { %5490 = vmatpush1.bf16.msra.mxu0 %v8397_v29  ;;  %6386 = vmatpush1.bf16.msra.mxu1 %v8400_v30  ;;  %v10125_v29 = vrot.slane %v10118_v19, %v9877_v49  ;;  %v8488_v30 = vld [vmem:[%s9824_s28 + $0x800] ss:$16 sps:$4 sm:$0xff]  }
 0x139   : > { %5492 = vmatprep.subr.bf16.mxu0 %v8401_v31  ;;  %6388 = vmatprep.subr.bf16.mxu1 %v8404_v32  ;;  %v8491_v31 = vld [vmem:[%s9824_s28 + $0x808] ss:$16 sps:$4 sm:$0xff]   ;;  %v8492_v32 = vld [vmem:[%s9824_s28 + $0x824] ss:$16 sps:$4 sm:$0xff]  }
 0x13c   : > { %5494 = vmatpush1.bf16.msra.mxu0 %v8403_v33  ;;  %6390 = vmatpush1.bf16.msra.mxu1 %v8406_v22  ;;  %v8495_v33 = vld [vmem:[%s9824_s28 + $0x82c] ss:$16 sps:$4 sm:$0xff]   ;;  %v3036_v22 = vcombine.high %v10125_v29, %v10125_v29 }
 0x13d   : > { %5496 = vmatprep.subr.bf16.mxu0 %v8407_v34  ;;  %6392 = vmatprep.subr.bf16.mxu1 %v8410_v35  ;;  %v8494_v34 = vld [vmem:[%s9824_s28 + $0x820] ss:$16 sps:$4 sm:$0xff]   ;;  %v8497_v35 = vld [vmem:[%s9824_s28 + $0x828] ss:$16 sps:$4 sm:$0xff]  }
 0x140   : > { %5498 = vmatpush1.bf16.msra.mxu0 %v8409_v36  ;;  %6394 = vmatpush1.bf16.msra.mxu1 %v8412_v37  ;;  %v8498_v36 = vld [vmem:[%s9824_s28 + $0x844] ss:$16 sps:$4 sm:$0xff]   ;;  %v8501_v37 = vld [vmem:[%s9824_s28 + $0x84c] ss:$16 sps:$4 sm:$0xff]  }
 0x141   : > { %5500 = vmatprep.subr.bf16.mxu0 %v8413_v38  ;;  %6396 = vmatprep.subr.bf16.mxu1 %v8416_v39  ;;  %v8500_v38 = vld [vmem:[%s9824_s28 + $0x840] ss:$16 sps:$4 sm:$0xff]   ;;  %v8504_v39 = vld [vmem:[%s9824_s28 + $0x864] ss:$16 sps:$4 sm:$0xff]  }
 0x144   : > { %5502 = vmatpush1.bf16.msra.mxu0 %v8415_v40  ;;  %6398 = vmatpush1.bf16.msra.mxu1 %v8418_v41  ;;  %v8507_v40 = vld [vmem:[%s9824_s28 + $0x86c] ss:$16 sps:$4 sm:$0xff]   ;;  %v8506_v41 = vld [vmem:[%s9824_s28 + $0x860] ss:$16 sps:$4 sm:$0xff]  }
 0x145   : > { %5504 = vmatprep.subr.bf16.mxu0 %v8419_v43  ;;  %6400 = vmatprep.subr.bf16.mxu1 %v8422_v44  ;;  %v8509_v43 = vld [vmem:[%s9824_s28 + $0x868] ss:$16 sps:$4 sm:$0xff]   ;;  %v8510_v44 = vld [vmem:[%s9824_s28 + $0x884] ss:$16 sps:$4 sm:$0xff]  }
 0x148   : > { %5506 = vmatpush1.bf16.msra.mxu0 %v8421_v45  ;;  %6402 = vmatpush1.bf16.msra.mxu1 %v8424_v46  ;;  %v8513_v45 = vld [vmem:[%s9824_s28 + $0x88c] ss:$16 sps:$4 sm:$0xff]   ;;  %v8512_v46 = vld [vmem:[%s9824_s28 + $0x880] ss:$16 sps:$4 sm:$0xff]  }
 0x149   : > { %5508 = vmatprep.subr.bf16.mxu0 %v8425_v47  ;;  %6404 = vmatprep.subr.bf16.mxu1 %v8428_v48  ;;  %v8515_v47 = vld [vmem:[%s9824_s28 + $0x888] ss:$16 sps:$4 sm:$0xff]   ;;  %v8516_v48 = vld [vmem:[%s9824_s28 + $0x8a4] ss:$16 sps:$4 sm:$0xff]  }
 0x14c   : > { %5510 = vmatpush1.bf16.msra.mxu0 %v8427_v50  ;;  %6406 = vmatpush1.bf16.msra.mxu1 %v8430_v51  ;;  %v8519_v50 = vld [vmem:[%s9824_s28 + $0x8ac] ss:$16 sps:$4 sm:$0xff]   ;;  %v8518_v51 = vld [vmem:[%s9824_s28 + $0x8a0] ss:$16 sps:$4 sm:$0xff]  }
 0x14d   : > { %5512 = vmatprep.subr.bf16.mxu0 %v8431_v52  ;;  %6408 = vmatprep.subr.bf16.mxu1 %v8434_v53  ;;  %v8521_v52 = vld [vmem:[%s9824_s28 + $0x8a8] ss:$16 sps:$4 sm:$0xff]   ;;  %v8522_v53 = vld [vmem:[%s9824_s28 + $0x8c4] ss:$16 sps:$4 sm:$0xff]  }
 0x150   : > { %5514 = vmatpush1.bf16.msra.mxu0 %v8433_v54  ;;  %6410 = vmatpush1.bf16.msra.mxu1 %v8436_v55  ;;  %v8525_v54 = vld [vmem:[%s9824_s28 + $0x8cc] ss:$16 sps:$4 sm:$0xff]   ;;  %v8524_v55 = vld [vmem:[%s9824_s28 + $0x8c0] ss:$16 sps:$4 sm:$0xff]  }
 0x151   : > { %5516 = vmatprep.subr.bf16.mxu0 %v8437_v56  ;;  %6412 = vmatprep.subr.bf16.mxu1 %v8440_v57  ;;  %v8527_v56 = vld [vmem:[%s9824_s28 + $0x8c8] ss:$16 sps:$4 sm:$0xff]   ;;  %v8528_v57 = vld [vmem:[%s9824_s28 + $0x8e4] ss:$16 sps:$4 sm:$0xff]  }
 0x154   : > { %5518 = vmatpush1.bf16.msra.mxu0 %v8439_v58  ;;  %6414 = vmatpush1.bf16.msra.mxu1 %v8442_v59  ;;  %v8531_v58 = vld [vmem:[%s9824_s28 + $0x8ec] ss:$16 sps:$4 sm:$0xff]   ;;  %v8530_v59 = vld [vmem:[%s9824_s28 + $0x8e0] ss:$16 sps:$4 sm:$0xff]  }
 0x155   : > { %5520 = vmatprep.subr.bf16.mxu0 %v8443_v60  ;;  %6416 = vmatprep.subr.bf16.mxu1 %v8446_v61  ;;  %v8533_v60 = vld [vmem:[%s9824_s28 + $0x8e8] ss:$16 sps:$4 sm:$0xff]   ;;  %v8534_v61 = vld [vmem:[%s9824_s28 + $0x904] ss:$16 sps:$4 sm:$0xff]  }
 0x158   : > { %5522 = vmatpush1.bf16.msra.mxu0 %v8445_v62  ;;  %6418 = vmatpush1.bf16.msra.mxu1 %v8448_v63  ;;  %v8537_v62 = vld [vmem:[%s9824_s28 + $0x90c] ss:$16 sps:$4 sm:$0xff]   ;;  %v8536_v63 = vld [vmem:[%s9824_s28 + $0x900] ss:$16 sps:$4 sm:$0xff]  }
 0x159   : > { %5524 = vmatprep.subr.bf16.mxu0 %v8449_v0  ;;  %6420 = vmatprep.subr.bf16.mxu1 %v8452_v1  ;;  %v8539_v0 = vld [vmem:[%s9824_s28 + $0x908] ss:$16 sps:$4 sm:$0xff]   ;;  %v8540_v1 = vld [vmem:[%s9824_s28 + $0x924] ss:$16 sps:$4 sm:$0xff]  }
 0x15c   : > { %5526 = vmatpush1.bf16.msra.mxu0 %v8451_v2  ;;  %6422 = vmatpush1.bf16.msra.mxu1 %v8454_v3  ;;  %v8543_v2 = vld [vmem:[%s9824_s28 + $0x92c] ss:$16 sps:$4 sm:$0xff]   ;;  %v8542_v3 = vld [vmem:[%s9824_s28 + $0x920] ss:$16 sps:$4 sm:$0xff]  }
 0x15d   : > { %5528 = vmatprep.subr.bf16.mxu0 %v8455_v4  ;;  %6424 = vmatprep.subr.bf16.mxu1 %v8458_v5  ;;  %v8545_v4 = vld [vmem:[%s9824_s28 + $0x928] ss:$16 sps:$4 sm:$0xff]   ;;  %v8546_v5 = vld [vmem:[%s9824_s28 + $0x944] ss:$16 sps:$4 sm:$0xff]  }
 0x160   : > { %5530 = vmatpush1.bf16.msra.mxu0 %v8457_v6  ;;  %6426 = vmatpush1.bf16.msra.mxu1 %v8460_v7  ;;  %v8549_v6 = vld [vmem:[%s9824_s28 + $0x94c] ss:$16 sps:$4 sm:$0xff]   ;;  %v8548_v7 = vld [vmem:[%s9824_s28 + $0x940] ss:$16 sps:$4 sm:$0xff]  }
 0x161   : > { %5532 = vmatprep.subr.bf16.mxu0 %v8461_v8  ;;  %6428 = vmatprep.subr.bf16.mxu1 %v8464_v9  ;;  %v8551_v8 = vld [vmem:[%s9824_s28 + $0x948] ss:$16 sps:$4 sm:$0xff]   ;;  %v8552_v9 = vld [vmem:[%s9824_s28 + $0x964] ss:$16 sps:$4 sm:$0xff]  }
 0x164   : > { %5534 = vmatpush1.bf16.msra.mxu0 %v8463_v10  ;;  %6430 = vmatpush1.bf16.msra.mxu1 %v8466_v11  ;;  %v8555_v10 = vld [vmem:[%s9824_s28 + $0x96c] ss:$16 sps:$4 sm:$0xff]   ;;  %v8554_v11 = vld [vmem:[%s9824_s28 + $0x960] ss:$16 sps:$4 sm:$0xff]  }
 0x165   : > { %5536 = vmatprep.subr.bf16.mxu0 %v8467_v13  ;;  %6432 = vmatprep.subr.bf16.mxu1 %v8470_v14  ;;  %v8557_v13 = vld [vmem:[%s9824_s28 + $0x968] ss:$16 sps:$4 sm:$0xff]   ;;  %v8558_v14 = vld [vmem:[%s9824_s28 + $0x984] ss:$16 sps:$4 sm:$0xff]  }
 0x168   : > { %5538 = vmatpush1.bf16.msra.mxu0 %v8469_v15  ;;  %6434 = vmatpush1.bf16.msra.mxu1 %v8472_v16  ;;  %v8561_v15 = vld [vmem:[%s9824_s28 + $0x98c] ss:$16 sps:$4 sm:$0xff]   ;;  %v8560_v16 = vld [vmem:[%s9824_s28 + $0x980] ss:$16 sps:$4 sm:$0xff]  }
 0x169   : > { %5540 = vmatprep.subr.bf16.mxu0 %v8473_v17  ;;  %6436 = vmatprep.subr.bf16.mxu1 %v8476_v18  ;;  %v8563_v17 = vld [vmem:[%s9824_s28 + $0x988] ss:$16 sps:$4 sm:$0xff]   ;;  %v8564_v18 = vld [vmem:[%s9824_s28 + $0x9a4] ss:$16 sps:$4 sm:$0xff]  }
 0x16c   : > { %5542 = vmatpush1.bf16.msra.mxu0 %v8475_v20  ;;  %6438 = vmatpush1.bf16.msra.mxu1 %v8478_v21  ;;  %v8567_v20 = vld [vmem:[%s9824_s28 + $0x9ac] ss:$16 sps:$4 sm:$0xff]   ;;  %v8566_v21 = vld [vmem:[%s9824_s28 + $0x9a0] ss:$16 sps:$4 sm:$0xff]  }
 0x16d   : > { %5544 = vmatprep.subr.bf16.mxu0 %v8479_v23  ;;  %6440 = vmatprep.subr.bf16.mxu1 %v8482_v24  ;;  %v8569_v23 = vld [vmem:[%s9824_s28 + $0x9a8] ss:$16 sps:$4 sm:$0xff]   ;;  %v8570_v24 = vld [vmem:[%s9824_s28 + $0x9c4] ss:$16 sps:$4 sm:$0xff]  }
 0x170   : > { %5546 = vmatpush1.bf16.msra.mxu0 %v8481_v26  ;;  %6442 = vmatpush1.bf16.msra.mxu1 %v8484_v27  ;;  %v8573_v26 = vld [vmem:[%s9824_s28 + $0x9cc] ss:$16 sps:$4 sm:$0xff]   ;;  %v8572_v27 = vld [vmem:[%s9824_s28 + $0x9c0] ss:$16 sps:$4 sm:$0xff]  }
 0x171   : > { %5548 = vmatprep.subr.bf16.mxu0 %v8486_v12  ;;  %6444 = vmatprep.subr.bf16.mxu1 %v8489_v28  ;;  %v8575_v12 = vld [vmem:[%s9824_s28 + $0x9c8] ss:$16 sps:$4 sm:$0xff]   ;;  %v8576_v28 = vld [vmem:[%s9824_s28 + $0x9e4] ss:$16 sps:$4 sm:$0xff]  }
 0x173   : > { %3412 = vmatmul.mubr.f32.vlgmr.msra.gmra.mrb[0].mxu0 %v10050_v25  ;;  %4406 = vmatmul.mubr.f32.vlgmr.msra.gmra.mrb[0].mxu1 %v10050_v25  ;;  %v8503_v25 = vld [vmem:[%s9824_s28 + $0x848] ss:$16 sps:$4 sm:$0xff]  }
 0x174   : > { %5550 = vmatpush1.bf16.msra.mxu0 %v8488_v30  ;;  %6446 = vmatpush1.bf16.msra.mxu1 %v8491_v31  ;;  %v8579_v30 = vld [vmem:[%s9824_s28 + $0x9ec] ss:$16 sps:$4 sm:$0xff]   ;;  %v8578_v31 = vld [vmem:[%s9824_s28 + $0x9e0] ss:$16 sps:$4 sm:$0xff]  }
 0x175   : > { %5552 = vmatprep.subr.bf16.mxu0 %v8492_v32  ;;  %6448 = vmatprep.subr.bf16.mxu1 %v8495_v33  ;;  %v3021_v32 = vcombine.high %v10118_v19, %v10118_v19  ;;  %v8581_v33 = vld [vmem:[%s9824_s28 + $0x9e8] ss:$16 sps:$4 sm:$0xff]   ;;  %v8588_v19 = vld [vmem:[%s9824_s28 + $0xa24] ss:$16 sps:$4 sm:$0xff]  }
 0x176   : > { %3482 = vmatprep.mubr.f32.mxu0 %v3036_v22  ;;  %4476 = vmatprep.mubr.f32.mxu1 %v3036_v22  ;;  %v8582_v22 = vld [vmem:[%s9824_s28 + $0xa04] ss:$16 sps:$4 sm:$0xff]  }
 0x178   : > { %5554 = vmatpush1.bf16.msra.mxu0 %v8494_v34  ;;  %6450 = vmatpush1.bf16.msra.mxu1 %v8497_v35  ;;  %v8585_v34 = vld [vmem:[%s9824_s28 + $0xa0c] ss:$16 sps:$4 sm:$0xff]   ;;  %v8584_v35 = vld [vmem:[%s9824_s28 + $0xa00] ss:$16 sps:$4 sm:$0xff]  }
 0x179   : > { %5556 = vmatprep.subr.bf16.mxu0 %v8498_v36  ;;  %6452 = vmatprep.subr.bf16.mxu1 %v8501_v37  ;;  %v10199_v36 = vrot.slane %v3021_v32, %v9877_v49  ;;  %v8587_v37 = vld [vmem:[%s9824_s28 + $0xa08] ss:$16 sps:$4 sm:$0xff]   ;;  %v8668_v32 = vld [vmem:[%s9824_s28 + $0xbc0] ss:$16 sps:$4 sm:$0xff]  }
 0x17c   : > { %5558 = vmatpush1.bf16.msra.mxu0 %v8500_v38  ;;  %6454 = vmatpush1.bf16.msra.mxu1 %v8503_v25  ;;  %v8591_v38 = vld [vmem:[%s9824_s28 + $0xa2c] ss:$16 sps:$4 sm:$0xff]   ;;  %v8590_v25 = vld [vmem:[%s9824_s28 + $0xa20] ss:$16 sps:$4 sm:$0xff]  }
 0x17d   : > { %5560 = vmatprep.subr.bf16.mxu0 %v8504_v39  ;;  %6456 = vmatprep.subr.bf16.mxu1 %v8507_v40  ;;  %v3037_v39 = vcombine.high %v10199_v36, %v10199_v36  ;;  %v8593_v40 = vld [vmem:[%s9824_s28 + $0xa28] ss:$16 sps:$4 sm:$0xff]  }
 0x180   : > { %5562 = vmatpush1.bf16.msra.mxu0 %v8506_v41  ;;  %6458 = vmatpush1.bf16.msra.mxu1 %v8509_v43  ;;  %v8594_v41 = vld [vmem:[%s9824_s28 + $0xa44] ss:$16 sps:$4 sm:$0xff]   ;;  %v8597_v43 = vld [vmem:[%s9824_s28 + $0xa4c] ss:$16 sps:$4 sm:$0xff]  }
 0x181   : > { %5564 = vmatprep.subr.bf16.mxu0 %v8510_v44  ;;  %6460 = vmatprep.subr.bf16.mxu1 %v8513_v45  ;;  %v8596_v44 = vld [vmem:[%s9824_s28 + $0xa40] ss:$16 sps:$4 sm:$0xff]   ;;  %v8600_v45 = vld [vmem:[%s9824_s28 + $0xa64] ss:$16 sps:$4 sm:$0xff]  }
 0x184   : > { %5566 = vmatpush1.bf16.msra.mxu0 %v8512_v46  ;;  %6462 = vmatpush1.bf16.msra.mxu1 %v8515_v47  ;;  %v8603_v46 = vld [vmem:[%s9824_s28 + $0xa6c] ss:$16 sps:$4 sm:$0xff]   ;;  %v8602_v47 = vld [vmem:[%s9824_s28 + $0xa60] ss:$16 sps:$4 sm:$0xff]  }
 0x185   : > { %5568 = vmatprep.subr.bf16.mxu0 %v8516_v48  ;;  %6464 = vmatprep.subr.bf16.mxu1 %v8519_v50  ;;  %v8605_v48 = vld [vmem:[%s9824_s28 + $0xa68] ss:$16 sps:$4 sm:$0xff]   ;;  %v8606_v50 = vld [vmem:[%s9824_s28 + $0xa84] ss:$16 sps:$4 sm:$0xff]  }
 0x188   : > { %5570 = vmatpush1.bf16.msra.mxu0 %v8518_v51  ;;  %6466 = vmatpush1.bf16.msra.mxu1 %v8521_v52  ;;  %v8609_v51 = vld [vmem:[%s9824_s28 + $0xa8c] ss:$16 sps:$4 sm:$0xff]   ;;  %v8608_v52 = vld [vmem:[%s9824_s28 + $0xa80] ss:$16 sps:$4 sm:$0xff]  }
 0x189   : > { %5572 = vmatprep.subr.bf16.mxu0 %v8522_v53  ;;  %6468 = vmatprep.subr.bf16.mxu1 %v8525_v54  ;;  %v8611_v53 = vld [vmem:[%s9824_s28 + $0xa88] ss:$16 sps:$4 sm:$0xff]   ;;  %v8612_v54 = vld [vmem:[%s9824_s28 + $0xaa4] ss:$16 sps:$4 sm:$0xff]  }
 0x18c   : > { %5574 = vmatpush1.bf16.msra.mxu0 %v8524_v55  ;;  %6470 = vmatpush1.bf16.msra.mxu1 %v8527_v56  ;;  %v8615_v55 = vld [vmem:[%s9824_s28 + $0xaac] ss:$16 sps:$4 sm:$0xff]   ;;  %v8614_v56 = vld [vmem:[%s9824_s28 + $0xaa0] ss:$16 sps:$4 sm:$0xff]  }
 0x18d   : > { %5576 = vmatprep.subr.bf16.mxu0 %v8528_v57  ;;  %6472 = vmatprep.subr.bf16.mxu1 %v8531_v58  ;;  %v8617_v57 = vld [vmem:[%s9824_s28 + $0xaa8] ss:$16 sps:$4 sm:$0xff]   ;;  %v8618_v58 = vld [vmem:[%s9824_s28 + $0xac4] ss:$16 sps:$4 sm:$0xff]  }
 0x190   : > { %5578 = vmatpush1.bf16.msra.mxu0 %v8530_v59  ;;  %6474 = vmatpush1.bf16.msra.mxu1 %v8533_v60  ;;  %v8621_v59 = vld [vmem:[%s9824_s28 + $0xacc] ss:$16 sps:$4 sm:$0xff]   ;;  %v8620_v60 = vld [vmem:[%s9824_s28 + $0xac0] ss:$16 sps:$4 sm:$0xff]  }
 0x191   : > { %5580 = vmatprep.subr.bf16.mxu0 %v8534_v61  ;;  %6476 = vmatprep.subr.bf16.mxu1 %v8537_v62  ;;  %v8623_v61 = vld [vmem:[%s9824_s28 + $0xac8] ss:$16 sps:$4 sm:$0xff]   ;;  %v8624_v62 = vld [vmem:[%s9824_s28 + $0xae4] ss:$16 sps:$4 sm:$0xff]  }
 0x194   : > { %5582 = vmatpush1.bf16.msra.mxu0 %v8536_v63  ;;  %6478 = vmatpush1.bf16.msra.mxu1 %v8539_v0  ;;  %v8627_v63 = vld [vmem:[%s9824_s28 + $0xaec] ss:$16 sps:$4 sm:$0xff]   ;;  %v8626_v0 = vld [vmem:[%s9824_s28 + $0xae0] ss:$16 sps:$4 sm:$0xff]  }
 0x195   : > { %5584 = vmatprep.subr.bf16.mxu0 %v8540_v1  ;;  %6480 = vmatprep.subr.bf16.mxu1 %v8543_v2  ;;  %v8629_v1 = vld [vmem:[%s9824_s28 + $0xae8] ss:$16 sps:$4 sm:$0xff]   ;;  %v8630_v2 = vld [vmem:[%s9824_s28 + $0xb04] ss:$16 sps:$4 sm:$0xff]  }
 0x198   : > { %5586 = vmatpush1.bf16.msra.mxu0 %v8542_v3  ;;  %6482 = vmatpush1.bf16.msra.mxu1 %v8545_v4  ;;  %v8633_v3 = vld [vmem:[%s9824_s28 + $0xb0c] ss:$16 sps:$4 sm:$0xff]   ;;  %v8632_v4 = vld [vmem:[%s9824_s28 + $0xb00] ss:$16 sps:$4 sm:$0xff]  }
 0x199   : > { %5588 = vmatprep.subr.bf16.mxu0 %v8546_v5  ;;  %6484 = vmatprep.subr.bf16.mxu1 %v8549_v6  ;;  %v8635_v5 = vld [vmem:[%s9824_s28 + $0xb08] ss:$16 sps:$4 sm:$0xff]   ;;  %v8636_v6 = vld [vmem:[%s9824_s28 + $0xb24] ss:$16 sps:$4 sm:$0xff]  }
 0x19c   : > { %5590 = vmatpush1.bf16.msra.mxu0 %v8548_v7  ;;  %6486 = vmatpush1.bf16.msra.mxu1 %v8551_v8  ;;  %v8639_v7 = vld [vmem:[%s9824_s28 + $0xb2c] ss:$16 sps:$4 sm:$0xff]   ;;  %v8638_v8 = vld [vmem:[%s9824_s28 + $0xb20] ss:$16 sps:$4 sm:$0xff]  }
 0x19d   : > { %5592 = vmatprep.subr.bf16.mxu0 %v8552_v9  ;;  %6488 = vmatprep.subr.bf16.mxu1 %v8555_v10  ;;  %v8641_v9 = vld [vmem:[%s9824_s28 + $0xb28] ss:$16 sps:$4 sm:$0xff]   ;;  %v8642_v10 = vld [vmem:[%s9824_s28 + $0xb44] ss:$16 sps:$4 sm:$0xff]  }
 0x1a0   : > { %5594 = vmatpush1.bf16.msra.mxu0 %v8554_v11  ;;  %6490 = vmatpush1.bf16.msra.mxu1 %v8557_v13  ;;  %v8645_v11 = vld [vmem:[%s9824_s28 + $0xb4c] ss:$16 sps:$4 sm:$0xff]   ;;  %v8644_v13 = vld [vmem:[%s9824_s28 + $0xb40] ss:$16 sps:$4 sm:$0xff]  }
 0x1a1   : > { %5596 = vmatprep.subr.bf16.mxu0 %v8558_v14  ;;  %6492 = vmatprep.subr.bf16.mxu1 %v8561_v15  ;;  %v8647_v14 = vld [vmem:[%s9824_s28 + $0xb48] ss:$16 sps:$4 sm:$0xff]   ;;  %v8648_v15 = vld [vmem:[%s9824_s28 + $0xb64] ss:$16 sps:$4 sm:$0xff]  }
 0x1a4   : > { %5598 = vmatpush1.bf16.msra.mxu0 %v8560_v16  ;;  %6494 = vmatpush1.bf16.msra.mxu1 %v8563_v17  ;;  %v8651_v16 = vld [vmem:[%s9824_s28 + $0xb6c] ss:$16 sps:$4 sm:$0xff]   ;;  %v8650_v17 = vld [vmem:[%s9824_s28 + $0xb60] ss:$16 sps:$4 sm:$0xff]  }
 0x1a5   : > { %5600 = vmatprep.subr.bf16.mxu0 %v8564_v18  ;;  %6496 = vmatprep.subr.bf16.mxu1 %v8567_v20  ;;  %v8653_v18 = vld [vmem:[%s9824_s28 + $0xb68] ss:$16 sps:$4 sm:$0xff]   ;;  %v8654_v20 = vld [vmem:[%s9824_s28 + $0xb84] ss:$16 sps:$4 sm:$0xff]  }
 0x1a8   : > { %5602 = vmatpush1.bf16.msra.mxu0 %v8566_v21  ;;  %6498 = vmatpush1.bf16.msra.mxu1 %v8569_v23  ;;  %v8657_v21 = vld [vmem:[%s9824_s28 + $0xb8c] ss:$16 sps:$4 sm:$0xff]   ;;  %v8656_v23 = vld [vmem:[%s9824_s28 + $0xb80] ss:$16 sps:$4 sm:$0xff]  }
 0x1a9   : > { %5604 = vmatprep.subr.bf16.mxu0 %v8570_v24  ;;  %6500 = vmatprep.subr.bf16.mxu1 %v8573_v26  ;;  %v8659_v24 = vld [vmem:[%s9824_s28 + $0xb88] ss:$16 sps:$4 sm:$0xff]   ;;  %v8660_v26 = vld [vmem:[%s9824_s28 + $0xba4] ss:$16 sps:$4 sm:$0xff]  }
 0x1ac   : > { %5606 = vmatpush1.bf16.msra.mxu0 %v8572_v27  ;;  %6502 = vmatpush1.bf16.msra.mxu1 %v8575_v12  ;;  %v8663_v27 = vld [vmem:[%s9824_s28 + $0xbac] ss:$16 sps:$4 sm:$0xff]   ;;  %v8662_v12 = vld [vmem:[%s9824_s28 + $0xba0] ss:$16 sps:$4 sm:$0xff]  }
 0x1ad   : > { %5608 = vmatprep.subr.bf16.mxu0 %v8576_v28  ;;  %6504 = vmatprep.subr.bf16.mxu1 %v8579_v30  ;;  %v8665_v28 = vld [vmem:[%s9824_s28 + $0xba8] ss:$16 sps:$4 sm:$0xff]   ;;  %v8666_v30 = vld [vmem:[%s9824_s28 + $0xbc4] ss:$16 sps:$4 sm:$0xff]  }
 0x1b0   : > { %5610 = vmatpush1.bf16.msra.mxu0 %v8578_v31  ;;  %6506 = vmatpush1.bf16.msra.mxu1 %v8581_v33  ;;  %v8669_v31 = vld [vmem:[%s9824_s28 + $0xbcc] ss:$16 sps:$4 sm:$0xff]   ;;  %v8671_v33 = vld [vmem:[%s9824_s28 + $0xbc8] ss:$16 sps:$4 sm:$0xff]  }
 0x1b1   : > { %5612 = vmatprep.subr.bf16.mxu0 %v8582_v22  ;;  %6508 = vmatprep.subr.bf16.mxu1 %v8585_v34  ;;  %v8672_v22 = vld [vmem:[%s9824_s28 + $0xbe4] ss:$16 sps:$4 sm:$0xff]   ;;  %v8675_v34 = vld [vmem:[%s9824_s28 + $0xbec] ss:$16 sps:$4 sm:$0xff]  }
 0x1b3   : > { %3483 = vmatmul.mubr.f32.vlgmr.msra.gmra.mrb[0].mxu0 %v10125_v29  ;;  %4477 = vmatmul.mubr.f32.vlgmr.msra.gmra.mrb[0].mxu1 %v10125_v29  ;;  %v8599_v29 = vld [vmem:[%s9824_s28 + $0xa48] ss:$16 sps:$4 sm:$0xff]  }
 0x1b4   : > { %5614 = vmatpush1.bf16.msra.mxu0 %v8584_v35  ;;  %6510 = vmatpush1.bf16.msra.mxu1 %v8587_v37  ;;  %v10265_v35 = vld [vmem:[%s9816_s29 + $0x18] sm:$0xff] }
 0x1b5   : > { %5616 = vmatprep.subr.bf16.mxu0 %v8588_v19  ;;  %6512 = vmatprep.subr.bf16.mxu1 %v8591_v38  ;;  %v8674_v37 = vld [vmem:[%s9824_s28 + $0xbe0] ss:$16 sps:$4 sm:$0xff]   ;;  %v8677_v19 = vld [vmem:[%s9824_s28 + $0xbe8] ss:$16 sps:$4 sm:$0xff]   ;;  %v8679_v38 = vld [vmem:[%s9824_s28 + $0xc04] ss:$16 sps:$4 sm:$0xff]  }
 0x1b6   : > { %3553 = vmatprep.mubr.f32.mxu0 %v3037_v39  ;;  %4547 = vmatprep.mubr.f32.mxu1 %v3037_v39  ;;  %v8681_v39 = vld [vmem:[%s9824_s28 + $0xc00] ss:$16 sps:$4 sm:$0xff]  }
 0x1b8   : > { %5618 = vmatpush1.bf16.msra.mxu0 %v8590_v25  ;;  %6514 = vmatpush1.bf16.msra.mxu1 %v8593_v40  ;;  %v8682_v25 = vld [vmem:[%s9824_s28 + $0xc0c] ss:$16 sps:$4 sm:$0xff]   ;;  %v10274_v40 = vrot.slane %v10265_v35, %v9877_v49 }
 0x1b9   : > { %5620 = vmatprep.subr.bf16.mxu0 %v8594_v41  ;;  %6516 = vmatprep.subr.bf16.mxu1 %v8597_v43  ;;  %v8684_v41 = vld [vmem:[%s9824_s28 + $0xc08] ss:$16 sps:$4 sm:$0xff]   ;;  %v8685_v43 = vld [vmem:[%s9824_s28 + $0xc24] ss:$16 sps:$4 sm:$0xff]  }
 0x1bc   : > { %5622 = vmatpush1.bf16.msra.mxu0 %v8596_v44  ;;  %6518 = vmatpush1.bf16.msra.mxu1 %v8599_v29  ;;  %v8688_v44 = vld [vmem:[%s9824_s28 + $0xc2c] ss:$16 sps:$4 sm:$0xff]   ;;  %v8687_v29 = vld [vmem:[%s9824_s28 + $0xc20] ss:$16 sps:$4 sm:$0xff]  }
 0x1bd   : > { %5624 = vmatprep.subr.bf16.mxu0 %v8600_v45  ;;  %6520 = vmatprep.subr.bf16.mxu1 %v8603_v46  ;;  %v3053_v45 = vcombine.high %v10274_v40, %v10274_v40  ;;  %v8690_v46 = vld [vmem:[%s9824_s28 + $0xc28] ss:$16 sps:$4 sm:$0xff]  }
 0x1c0   : > { %5626 = vmatpush1.bf16.msra.mxu0 %v8602_v47  ;;  %6522 = vmatpush1.bf16.msra.mxu1 %v8605_v48  ;;  %v8691_v47 = vld [vmem:[%s9824_s28 + $0xc44] ss:$16 sps:$4 sm:$0xff]   ;;  %v8694_v48 = vld [vmem:[%s9824_s28 + $0xc4c] ss:$16 sps:$4 sm:$0xff]  }
 0x1c1   : > { %5628 = vmatprep.subr.bf16.mxu0 %v8606_v50  ;;  %6524 = vmatprep.subr.bf16.mxu1 %v8609_v51  ;;  %v8693_v50 = vld [vmem:[%s9824_s28 + $0xc40] ss:$16 sps:$4 sm:$0xff]   ;;  %v8697_v51 = vld [vmem:[%s9824_s28 + $0xc64] ss:$16 sps:$4 sm:$0xff]  }
 0x1c4   : > { %5630 = vmatpush1.bf16.msra.mxu0 %v8608_v52  ;;  %6526 = vmatpush1.bf16.msra.mxu1 %v8611_v53  ;;  %v8700_v52 = vld [vmem:[%s9824_s28 + $0xc6c] ss:$16 sps:$4 sm:$0xff]   ;;  %v8699_v53 = vld [vmem:[%s9824_s28 + $0xc60] ss:$16 sps:$4 sm:$0xff]  }
 0x1c5   : > { %5632 = vmatprep.subr.bf16.mxu0 %v8612_v54  ;;  %6528 = vmatprep.subr.bf16.mxu1 %v8615_v55  ;;  %v8702_v54 = vld [vmem:[%s9824_s28 + $0xc68] ss:$16 sps:$4 sm:$0xff]   ;;  %v8703_v55 = vld [vmem:[%s9824_s28 + $0xc84] ss:$16 sps:$4 sm:$0xff]  }
 0x1c8   : > { %5634 = vmatpush1.bf16.msra.mxu0 %v8614_v56  ;;  %6530 = vmatpush1.bf16.msra.mxu1 %v8617_v57  ;;  %v8706_v56 = vld [vmem:[%s9824_s28 + $0xc8c] ss:$16 sps:$4 sm:$0xff]   ;;  %v8705_v57 = vld [vmem:[%s9824_s28 + $0xc80] ss:$16 sps:$4 sm:$0xff]  }
 0x1c9   : > { %5636 = vmatprep.subr.bf16.mxu0 %v8618_v58  ;;  %6532 = vmatprep.subr.bf16.mxu1 %v8621_v59  ;;  %v8708_v58 = vld [vmem:[%s9824_s28 + $0xc88] ss:$16 sps:$4 sm:$0xff]   ;;  %v8709_v59 = vld [vmem:[%s9824_s28 + $0xca4] ss:$16 sps:$4 sm:$0xff]  }
 0x1cc   : > { %5638 = vmatpush1.bf16.msra.mxu0 %v8620_v60  ;;  %6534 = vmatpush1.bf16.msra.mxu1 %v8623_v61  ;;  %v8712_v60 = vld [vmem:[%s9824_s28 + $0xcac] ss:$16 sps:$4 sm:$0xff]   ;;  %v8711_v61 = vld [vmem:[%s9824_s28 + $0xca0] ss:$16 sps:$4 sm:$0xff]  }
 0x1cd   : > { %5640 = vmatprep.subr.bf16.mxu0 %v8624_v62  ;;  %6536 = vmatprep.subr.bf16.mxu1 %v8627_v63  ;;  %v8714_v62 = vld [vmem:[%s9824_s28 + $0xca8] ss:$16 sps:$4 sm:$0xff]   ;;  %v8715_v63 = vld [vmem:[%s9824_s28 + $0xcc4] ss:$16 sps:$4 sm:$0xff]  }
 0x1d0   : > { %5642 = vmatpush1.bf16.msra.mxu0 %v8626_v0  ;;  %6538 = vmatpush1.bf16.msra.mxu1 %v8629_v1  ;;  %v8718_v0 = vld [vmem:[%s9824_s28 + $0xccc] ss:$16 sps:$4 sm:$0xff]   ;;  %v8717_v1 = vld [vmem:[%s9824_s28 + $0xcc0] ss:$16 sps:$4 sm:$0xff]  }
 0x1d1   : > { %5644 = vmatprep.subr.bf16.mxu0 %v8630_v2  ;;  %6540 = vmatprep.subr.bf16.mxu1 %v8633_v3  ;;  %v8720_v2 = vld [vmem:[%s9824_s28 + $0xcc8] ss:$16 sps:$4 sm:$0xff]   ;;  %v8721_v3 = vld [vmem:[%s9824_s28 + $0xce4] ss:$16 sps:$4 sm:$0xff]  }
 0x1d4   : > { %5646 = vmatpush1.bf16.msra.mxu0 %v8632_v4  ;;  %6542 = vmatpush1.bf16.msra.mxu1 %v8635_v5  ;;  %v8724_v4 = vld [vmem:[%s9824_s28 + $0xcec] ss:$16 sps:$4 sm:$0xff]   ;;  %v8723_v5 = vld [vmem:[%s9824_s28 + $0xce0] ss:$16 sps:$4 sm:$0xff]  }
 0x1d5   : > { %5648 = vmatprep.subr.bf16.mxu0 %v8636_v6  ;;  %6544 = vmatprep.subr.bf16.mxu1 %v8639_v7  ;;  %v8726_v6 = vld [vmem:[%s9824_s28 + $0xce8] ss:$16 sps:$4 sm:$0xff]   ;;  %v8727_v7 = vld [vmem:[%s9824_s28 + $0xd04] ss:$16 sps:$4 sm:$0xff]  }
 0x1d8   : > { %5650 = vmatpush1.bf16.msra.mxu0 %v8638_v8  ;;  %6546 = vmatpush1.bf16.msra.mxu1 %v8641_v9  ;;  %v8730_v8 = vld [vmem:[%s9824_s28 + $0xd0c] ss:$16 sps:$4 sm:$0xff]   ;;  %v8729_v9 = vld [vmem:[%s9824_s28 + $0xd00] ss:$16 sps:$4 sm:$0xff]  }
 0x1d9   : > { %5652 = vmatprep.subr.bf16.mxu0 %v8642_v10  ;;  %6548 = vmatprep.subr.bf16.mxu1 %v8645_v11  ;;  %v8732_v10 = vld [vmem:[%s9824_s28 + $0xd08] ss:$16 sps:$4 sm:$0xff]   ;;  %v8733_v11 = vld [vmem:[%s9824_s28 + $0xd24] ss:$16 sps:$4 sm:$0xff]  }
 0x1dc   : > { %5654 = vmatpush1.bf16.msra.mxu0 %v8644_v13  ;;  %6550 = vmatpush1.bf16.msra.mxu1 %v8647_v14  ;;  %v8736_v13 = vld [vmem:[%s9824_s28 + $0xd2c] ss:$16 sps:$4 sm:$0xff]   ;;  %v8735_v14 = vld [vmem:[%s9824_s28 + $0xd20] ss:$16 sps:$4 sm:$0xff]  }
 0x1dd   : > { %5656 = vmatprep.subr.bf16.mxu0 %v8648_v15  ;;  %6552 = vmatprep.subr.bf16.mxu1 %v8651_v16  ;;  %v8738_v15 = vld [vmem:[%s9824_s28 + $0xd28] ss:$16 sps:$4 sm:$0xff]   ;;  %v8739_v16 = vld [vmem:[%s9824_s28 + $0xd44] ss:$16 sps:$4 sm:$0xff]  }
 0x1e0   : > { %5658 = vmatpush1.bf16.msra.mxu0 %v8650_v17  ;;  %6554 = vmatpush1.bf16.msra.mxu1 %v8653_v18  ;;  %v8742_v17 = vld [vmem:[%s9824_s28 + $0xd4c] ss:$16 sps:$4 sm:$0xff]   ;;  %v8741_v18 = vld [vmem:[%s9824_s28 + $0xd40] ss:$16 sps:$4 sm:$0xff]  }
 0x1e1   : > { %5660 = vmatprep.subr.bf16.mxu0 %v8654_v20  ;;  %6556 = vmatprep.subr.bf16.mxu1 %v8657_v21  ;;  %v8744_v20 = vld [vmem:[%s9824_s28 + $0xd48] ss:$16 sps:$4 sm:$0xff]   ;;  %v8745_v21 = vld [vmem:[%s9824_s28 + $0xd64] ss:$16 sps:$4 sm:$0xff]  }
 0x1e4   : > { %5662 = vmatpush1.bf16.msra.mxu0 %v8656_v23  ;;  %6558 = vmatpush1.bf16.msra.mxu1 %v8659_v24  ;;  %v8748_v23 = vld [vmem:[%s9824_s28 + $0xd6c] ss:$16 sps:$4 sm:$0xff]   ;;  %v8747_v24 = vld [vmem:[%s9824_s28 + $0xd60] ss:$16 sps:$4 sm:$0xff]  }
 0x1e5   : > { %5664 = vmatprep.subr.bf16.mxu0 %v8660_v26  ;;  %6560 = vmatprep.subr.bf16.mxu1 %v8663_v27  ;;  %v8750_v26 = vld [vmem:[%s9824_s28 + $0xd68] ss:$16 sps:$4 sm:$0xff]   ;;  %v8751_v27 = vld [vmem:[%s9824_s28 + $0xd84] ss:$16 sps:$4 sm:$0xff]  }
 0x1e8   : > { %5666 = vmatpush1.bf16.msra.mxu0 %v8662_v12  ;;  %6562 = vmatpush1.bf16.msra.mxu1 %v8665_v28  ;;  %v8754_v12 = vld [vmem:[%s9824_s28 + $0xd8c] ss:$16 sps:$4 sm:$0xff]   ;;  %v8753_v28 = vld [vmem:[%s9824_s28 + $0xd80] ss:$16 sps:$4 sm:$0xff]  }
 0x1e9   : > { %5668 = vmatprep.subr.bf16.mxu0 %v8666_v30  ;;  %6564 = vmatprep.subr.bf16.mxu1 %v8669_v31  ;;  %v8756_v30 = vld [vmem:[%s9824_s28 + $0xd88] ss:$16 sps:$4 sm:$0xff]   ;;  %v8757_v31 = vld [vmem:[%s9824_s28 + $0xda4] ss:$16 sps:$4 sm:$0xff]  }
 0x1ec   : > { %5670 = vmatpush1.bf16.msra.mxu0 %v8668_v32  ;;  %6566 = vmatpush1.bf16.msra.mxu1 %v8671_v33  ;;  %v8760_v32 = vld [vmem:[%s9824_s28 + $0xdac] ss:$16 sps:$4 sm:$0xff]   ;;  %v8759_v33 = vld [vmem:[%s9824_s28 + $0xda0] ss:$16 sps:$4 sm:$0xff]  }
 0x1ed   : > { %5672 = vmatprep.subr.bf16.mxu0 %v8672_v22  ;;  %6568 = vmatprep.subr.bf16.mxu1 %v8675_v34  ;;  %v8762_v22 = vld [vmem:[%s9824_s28 + $0xda8] ss:$16 sps:$4 sm:$0xff]   ;;  %v8763_v34 = vld [vmem:[%s9824_s28 + $0xdc4] ss:$16 sps:$4 sm:$0xff]  }
 0x1f0   : > { %5674 = vmatpush1.bf16.msra.mxu0 %v8674_v37  ;;  %6570 = vmatpush1.bf16.msra.mxu1 %v8677_v19  ;;  %v8766_v37 = vld [vmem:[%s9824_s28 + $0xdcc] ss:$16 sps:$4 sm:$0xff]   ;;  %v8765_v19 = vld [vmem:[%s9824_s28 + $0xdc0] ss:$16 sps:$4 sm:$0xff]  }
 0x1f1   : > { %5676 = vmatprep.subr.bf16.mxu0 %v8679_v38  ;;  %6572 = vmatprep.subr.bf16.mxu1 %v8682_v25  ;;  %v8768_v38 = vld [vmem:[%s9824_s28 + $0xdc8] ss:$16 sps:$4 sm:$0xff]   ;;  %v8769_v25 = vld [vmem:[%s9824_s28 + $0xde4] ss:$16 sps:$4 sm:$0xff]  }
 0x1f3   : > { %3554 = vmatmul.mubr.f32.vlgmr.msra.gmra.mrb[0].mxu0 %v10199_v36  ;;  %4548 = vmatmul.mubr.f32.vlgmr.msra.gmra.mrb[0].mxu1 %v10199_v36  ;;  %v8696_v36 = vld [vmem:[%s9824_s28 + $0xc48] ss:$16 sps:$4 sm:$0xff]  }
 0x1f4   : > { %5678 = vmatpush1.bf16.msra.mxu0 %v8681_v39  ;;  %6574 = vmatpush1.bf16.msra.mxu1 %v8684_v41  ;;  %v8772_v39 = vld [vmem:[%s9824_s28 + $0xdec] ss:$16 sps:$4 sm:$0xff]   ;;  %v8771_v41 = vld [vmem:[%s9824_s28 + $0xde0] ss:$16 sps:$4 sm:$0xff]  }
 0x1f5   : > { %5680 = vmatprep.subr.bf16.mxu0 %v8685_v43  ;;  %6576 = vmatprep.subr.bf16.mxu1 %v8688_v44  ;;  %v3038_v43 = vcombine.high %v10265_v35, %v10265_v35  ;;  %v8774_v44 = vld [vmem:[%s9824_s28 + $0xde8] ss:$16 sps:$4 sm:$0xff]   ;;  %v8781_v35 = vld [vmem:[%s9824_s28 + $0xe24] ss:$16 sps:$4 sm:$0xff]  }
 0x1f6   : > { %3624 = vmatprep.mubr.f32.mxu0 %v3053_v45  ;;  %4618 = vmatprep.mubr.f32.mxu1 %v3053_v45  ;;  %v8778_v45 = vld [vmem:[%s9824_s28 + $0xe0c] ss:$16 sps:$4 sm:$0xff]  }
 0x1f8   : > { %5682 = vmatpush1.bf16.msra.mxu0 %v8687_v29  ;;  %6578 = vmatpush1.bf16.msra.mxu1 %v8690_v46  ;;  %v8775_v29 = vld [vmem:[%s9824_s28 + $0xe04] ss:$16 sps:$4 sm:$0xff]   ;;  %v8777_v46 = vld [vmem:[%s9824_s28 + $0xe00] ss:$16 sps:$4 sm:$0xff]  }
 0x1f9   : > { %5684 = vmatprep.subr.bf16.mxu0 %v8691_v47  ;;  %6580 = vmatprep.subr.bf16.mxu1 %v8694_v48  ;;  %v10347_v47 = vrot.slane %v3038_v43, %v9877_v49  ;;  %v8780_v48 = vld [vmem:[%s9824_s28 + $0xe08] ss:$16 sps:$4 sm:$0xff]   ;;  %v8861_v43 = vld [vmem:[%s9824_s28 + $0xfc0] ss:$16 sps:$4 sm:$0xff]  }
 0x1fc   : > { %5686 = vmatpush1.bf16.msra.mxu0 %v8693_v50  ;;  %6582 = vmatpush1.bf16.msra.mxu1 %v8696_v36  ;;  %v8784_v50 = vld [vmem:[%s9824_s28 + $0xe2c] ss:$16 sps:$4 sm:$0xff]   ;;  %v8783_v36 = vld [vmem:[%s9824_s28 + $0xe20] ss:$16 sps:$4 sm:$0xff]  }
 0x1fd   : > { %5688 = vmatprep.subr.bf16.mxu0 %v8697_v51  ;;  %6584 = vmatprep.subr.bf16.mxu1 %v8700_v52  ;;  %v3054_v51 = vcombine.high %v10347_v47, %v10347_v47  ;;  %v8786_v52 = vld [vmem:[%s9824_s28 + $0xe28] ss:$16 sps:$4 sm:$0xff]  }
 0x200   : > { %5690 = vmatpush1.bf16.msra.mxu0 %v8699_v53  ;;  %6586 = vmatpush1.bf16.msra.mxu1 %v8702_v54  ;;  %v8787_v53 = vld [vmem:[%s9824_s28 + $0xe44] ss:$16 sps:$4 sm:$0xff]   ;;  %v8790_v54 = vld [vmem:[%s9824_s28 + $0xe4c] ss:$16 sps:$4 sm:$0xff]  }
 0x201   : > { %5692 = vmatprep.subr.bf16.mxu0 %v8703_v55  ;;  %6588 = vmatprep.subr.bf16.mxu1 %v8706_v56  ;;  %v8789_v55 = vld [vmem:[%s9824_s28 + $0xe40] ss:$16 sps:$4 sm:$0xff]   ;;  %v8793_v56 = vld [vmem:[%s9824_s28 + $0xe64] ss:$16 sps:$4 sm:$0xff]  }
 0x204   : > { %5694 = vmatpush1.bf16.msra.mxu0 %v8705_v57  ;;  %6590 = vmatpush1.bf16.msra.mxu1 %v8708_v58  ;;  %v8796_v57 = vld [vmem:[%s9824_s28 + $0xe6c] ss:$16 sps:$4 sm:$0xff]   ;;  %v8795_v58 = vld [vmem:[%s9824_s28 + $0xe60] ss:$16 sps:$4 sm:$0xff]  }
 0x205   : > { %5696 = vmatprep.subr.bf16.mxu0 %v8709_v59  ;;  %6592 = vmatprep.subr.bf16.mxu1 %v8712_v60  ;;  %v8798_v59 = vld [vmem:[%s9824_s28 + $0xe68] ss:$16 sps:$4 sm:$0xff]   ;;  %v8799_v60 = vld [vmem:[%s9824_s28 + $0xe84] ss:$16 sps:$4 sm:$0xff]  }
 0x208   : > { %5698 = vmatpush1.bf16.msra.mxu0 %v8711_v61  ;;  %6594 = vmatpush1.bf16.msra.mxu1 %v8714_v62  ;;  %v8802_v61 = vld [vmem:[%s9824_s28 + $0xe8c] ss:$16 sps:$4 sm:$0xff]   ;;  %v8801_v62 = vld [vmem:[%s9824_s28 + $0xe80] ss:$16 sps:$4 sm:$0xff]  }
 0x209   : > { %5700 = vmatprep.subr.bf16.mxu0 %v8715_v63  ;;  %6596 = vmatprep.subr.bf16.mxu1 %v8718_v0  ;;  %v8804_v63 = vld [vmem:[%s9824_s28 + $0xe88] ss:$16 sps:$4 sm:$0xff]   ;;  %v8805_v0 = vld [vmem:[%s9824_s28 + $0xea4] ss:$16 sps:$4 sm:$0xff]  }
 0x20c   : > { %5702 = vmatpush1.bf16.msra.mxu0 %v8717_v1  ;;  %6598 = vmatpush1.bf16.msra.mxu1 %v8720_v2  ;;  %v8808_v1 = vld [vmem:[%s9824_s28 + $0xeac] ss:$16 sps:$4 sm:$0xff]   ;;  %v8807_v2 = vld [vmem:[%s9824_s28 + $0xea0] ss:$16 sps:$4 sm:$0xff]  }
 0x20d   : > { %5704 = vmatprep.subr.bf16.mxu0 %v8721_v3  ;;  %6600 = vmatprep.subr.bf16.mxu1 %v8724_v4  ;;  %v8810_v3 = vld [vmem:[%s9824_s28 + $0xea8] ss:$16 sps:$4 sm:$0xff]   ;;  %v8811_v4 = vld [vmem:[%s9824_s28 + $0xec4] ss:$16 sps:$4 sm:$0xff]  }
 0x210   : > { %5706 = vmatpush1.bf16.msra.mxu0 %v8723_v5  ;;  %6602 = vmatpush1.bf16.msra.mxu1 %v8726_v6  ;;  %v8814_v5 = vld [vmem:[%s9824_s28 + $0xecc] ss:$16 sps:$4 sm:$0xff]   ;;  %v8813_v6 = vld [vmem:[%s9824_s28 + $0xec0] ss:$16 sps:$4 sm:$0xff]  }
 0x211   : > { %5708 = vmatprep.subr.bf16.mxu0 %v8727_v7  ;;  %6604 = vmatprep.subr.bf16.mxu1 %v8730_v8  ;;  %v8816_v7 = vld [vmem:[%s9824_s28 + $0xec8] ss:$16 sps:$4 sm:$0xff]   ;;  %v8817_v8 = vld [vmem:[%s9824_s28 + $0xee4] ss:$16 sps:$4 sm:$0xff]  }
 0x214   : > { %5710 = vmatpush1.bf16.msra.mxu0 %v8729_v9  ;;  %6606 = vmatpush1.bf16.msra.mxu1 %v8732_v10  ;;  %v8820_v9 = vld [vmem:[%s9824_s28 + $0xeec] ss:$16 sps:$4 sm:$0xff]   ;;  %v8819_v10 = vld [vmem:[%s9824_s28 + $0xee0] ss:$16 sps:$4 sm:$0xff]  }
 0x215   : > { %5712 = vmatprep.subr.bf16.mxu0 %v8733_v11  ;;  %6608 = vmatprep.subr.bf16.mxu1 %v8736_v13  ;;  %v8822_v11 = vld [vmem:[%s9824_s28 + $0xee8] ss:$16 sps:$4 sm:$0xff]   ;;  %v8823_v13 = vld [vmem:[%s9824_s28 + $0xf04] ss:$16 sps:$4 sm:$0xff]  }
 0x218   : > { %5714 = vmatpush1.bf16.msra.mxu0 %v8735_v14  ;;  %6610 = vmatpush1.bf16.msra.mxu1 %v8738_v15  ;;  %v8826_v14 = vld [vmem:[%s9824_s28 + $0xf0c] ss:$16 sps:$4 sm:$0xff]   ;;  %v8825_v15 = vld [vmem:[%s9824_s28 + $0xf00] ss:$16 sps:$4 sm:$0xff]  }
 0x219   : > { %5716 = vmatprep.subr.bf16.mxu0 %v8739_v16  ;;  %6612 = vmatprep.subr.bf16.mxu1 %v8742_v17  ;;  %v8828_v16 = vld [vmem:[%s9824_s28 + $0xf08] ss:$16 sps:$4 sm:$0xff]   ;;  %v8829_v17 = vld [vmem:[%s9824_s28 + $0xf24] ss:$16 sps:$4 sm:$0xff]  }
 0x21c   : > { %5718 = vmatpush1.bf16.msra.mxu0 %v8741_v18  ;;  %6614 = vmatpush1.bf16.msra.mxu1 %v8744_v20  ;;  %v8832_v18 = vld [vmem:[%s9824_s28 + $0xf2c] ss:$16 sps:$4 sm:$0xff]   ;;  %v8831_v20 = vld [vmem:[%s9824_s28 + $0xf20] ss:$16 sps:$4 sm:$0xff]  }
 0x21d   : > { %5720 = vmatprep.subr.bf16.mxu0 %v8745_v21  ;;  %6616 = vmatprep.subr.bf16.mxu1 %v8748_v23  ;;  %v8834_v21 = vld [vmem:[%s9824_s28 + $0xf28] ss:$16 sps:$4 sm:$0xff]   ;;  %v8835_v23 = vld [vmem:[%s9824_s28 + $0xf44] ss:$16 sps:$4 sm:$0xff]  }
 0x220   : > { %5722 = vmatpush1.bf16.msra.mxu0 %v8747_v24  ;;  %6618 = vmatpush1.bf16.msra.mxu1 %v8750_v26  ;;  %v8838_v24 = vld [vmem:[%s9824_s28 + $0xf4c] ss:$16 sps:$4 sm:$0xff]   ;;  %v8837_v26 = vld [vmem:[%s9824_s28 + $0xf40] ss:$16 sps:$4 sm:$0xff]  }
 0x221   : > { %5724 = vmatprep.subr.bf16.mxu0 %v8751_v27  ;;  %6620 = vmatprep.subr.bf16.mxu1 %v8754_v12  ;;  %v8840_v27 = vld [vmem:[%s9824_s28 + $0xf48] ss:$16 sps:$4 sm:$0xff]   ;;  %v8841_v12 = vld [vmem:[%s9824_s28 + $0xf64] ss:$16 sps:$4 sm:$0xff]  }
 0x224   : > { %5726 = vmatpush1.bf16.msra.mxu0 %v8753_v28  ;;  %6622 = vmatpush1.bf16.msra.mxu1 %v8756_v30  ;;  %v8844_v28 = vld [vmem:[%s9824_s28 + $0xf6c] ss:$16 sps:$4 sm:$0xff]   ;;  %v8843_v30 = vld [vmem:[%s9824_s28 + $0xf60] ss:$16 sps:$4 sm:$0xff]  }
 0x225   : > { %5728 = vmatprep.subr.bf16.mxu0 %v8757_v31  ;;  %6624 = vmatprep.subr.bf16.mxu1 %v8760_v32  ;;  %v8846_v31 = vld [vmem:[%s9824_s28 + $0xf68] ss:$16 sps:$4 sm:$0xff]   ;;  %v8847_v32 = vld [vmem:[%s9824_s28 + $0xf84] ss:$16 sps:$4 sm:$0xff]  }
 0x228   : > { %5730 = vmatpush1.bf16.msra.mxu0 %v8759_v33  ;;  %6626 = vmatpush1.bf16.msra.mxu1 %v8762_v22  ;;  %v8850_v33 = vld [vmem:[%s9824_s28 + $0xf8c] ss:$16 sps:$4 sm:$0xff]   ;;  %v8849_v22 = vld [vmem:[%s9824_s28 + $0xf80] ss:$16 sps:$4 sm:$0xff]  }
 0x229   : > { %5732 = vmatprep.subr.bf16.mxu0 %v8763_v34  ;;  %6628 = vmatprep.subr.bf16.mxu1 %v8766_v37  ;;  %v8852_v34 = vld [vmem:[%s9824_s28 + $0xf88] ss:$16 sps:$4 sm:$0xff]   ;;  %v8853_v37 = vld [vmem:[%s9824_s28 + $0xfa4] ss:$16 sps:$4 sm:$0xff]  }
 0x22c   : > { %5734 = vmatpush1.bf16.msra.mxu0 %v8765_v19  ;;  %6630 = vmatpush1.bf16.msra.mxu1 %v8768_v38  ;;  %v8856_v19 = vld [vmem:[%s9824_s28 + $0xfac] ss:$16 sps:$4 sm:$0xff]   ;;  %v8855_v38 = vld [vmem:[%s9824_s28 + $0xfa0] ss:$16 sps:$4 sm:$0xff]  }
 0x22d   : > { %5736 = vmatprep.subr.bf16.mxu0 %v8769_v25  ;;  %6632 = vmatprep.subr.bf16.mxu1 %v8772_v39  ;;  %v8858_v25 = vld [vmem:[%s9824_s28 + $0xfa8] ss:$16 sps:$4 sm:$0xff]   ;;  %v8859_v39 = vld [vmem:[%s9824_s28 + $0xfc4] ss:$16 sps:$4 sm:$0xff]  }
 0x230   : > { %5738 = vmatpush1.bf16.msra.mxu0 %v8771_v41  ;;  %6634 = vmatpush1.bf16.msra.mxu1 %v8774_v44  ;;  %v8862_v41 = vld [vmem:[%s9824_s28 + $0xfcc] ss:$16 sps:$4 sm:$0xff]   ;;  %v8864_v44 = vld [vmem:[%s9824_s28 + $0xfc8] ss:$16 sps:$4 sm:$0xff]  }
 0x231   : > { %5740 = vmatprep.subr.bf16.mxu0 %v8775_v29  ;;  %6636 = vmatprep.subr.bf16.mxu1 %v8778_v45  ;;  %v8865_v29 = vld [vmem:[%s9824_s28 + $0xfe4] ss:$16 sps:$4 sm:$0xff]   ;;  %v8868_v45 = vld [vmem:[%s9824_s28 + $0xfec] ss:$16 sps:$4 sm:$0xff]  }
 0x233   : > { %3625 = vmatmul.mubr.f32.vlgmr.msra.gmra.mrb[0].mxu0 %v10274_v40  ;;  %4619 = vmatmul.mubr.f32.vlgmr.msra.gmra.mrb[0].mxu1 %v10274_v40  ;;  %v8792_v40 = vld [vmem:[%s9824_s28 + $0xe48] ss:$16 sps:$4 sm:$0xff]  }
 0x234   : > { %5742 = vmatpush1.bf16.msra.mxu0 %v8777_v46  ;;  %6638 = vmatpush1.bf16.msra.mxu1 %v8780_v48  ;;  %v10413_v46 = vld [vmem:[%s9816_s29 + $0x20] sm:$0xff] }
 0x235   : > { %5744 = vmatprep.subr.bf16.mxu0 %v8781_v35  ;;  %6640 = vmatprep.subr.bf16.mxu1 %v8784_v50  ;;  %v8867_v48 = vld [vmem:[%s9824_s28 + $0xfe0] ss:$16 sps:$4 sm:$0xff]   ;;  %v8870_v35 = vld [vmem:[%s9824_s28 + $0xfe8] ss:$16 sps:$4 sm:$0xff]   ;;  %v8872_v50 = vld [vmem:[%s9824_s28 + $0x1004] ss:$16 sps:$4 sm:$0xff]  }
 0x236   : > { %3695 = vmatprep.mubr.f32.mxu0 %v3054_v51  ;;  %4689 = vmatprep.mubr.f32.mxu1 %v3054_v51  ;;  %v8874_v51 = vld [vmem:[%s9824_s28 + $0x1000] ss:$16 sps:$4 sm:$0xff]  }
 0x238   : > { %5746 = vmatpush1.bf16.msra.mxu0 %v8783_v36  ;;  %6642 = vmatpush1.bf16.msra.mxu1 %v8786_v52  ;;  %v8875_v36 = vld [vmem:[%s9824_s28 + $0x100c] ss:$16 sps:$4 sm:$0xff]   ;;  %v10422_v52 = vrot.slane %v10413_v46, %v9877_v49 }
 0x239   : > { %5748 = vmatprep.subr.bf16.mxu0 %v8787_v53  ;;  %6644 = vmatprep.subr.bf16.mxu1 %v8790_v54  ;;  %v8877_v53 = vld [vmem:[%s9824_s28 + $0x1008] ss:$16 sps:$4 sm:$0xff]   ;;  %v8878_v54 = vld [vmem:[%s9824_s28 + $0x1024] ss:$16 sps:$4 sm:$0xff]  }
 0x23c   : > { %5750 = vmatpush1.bf16.msra.mxu0 %v8789_v55  ;;  %6646 = vmatpush1.bf16.msra.mxu1 %v8792_v40  ;;  %v8881_v55 = vld [vmem:[%s9824_s28 + $0x102c] ss:$16 sps:$4 sm:$0xff]   ;;  %v3070_v40 = vcombine.high %v10422_v52, %v10422_v52 }
 0x23d   : > { %5752 = vmatprep.subr.bf16.mxu0 %v8793_v56  ;;  %6648 = vmatprep.subr.bf16.mxu1 %v8796_v57  ;;  %v8880_v56 = vld [vmem:[%s9824_s28 + $0x1020] ss:$16 sps:$4 sm:$0xff]   ;;  %v8883_v57 = vld [vmem:[%s9824_s28 + $0x1028] ss:$16 sps:$4 sm:$0xff]  }
 0x240   : > { %5754 = vmatpush1.bf16.msra.mxu0 %v8795_v58  ;;  %6650 = vmatpush1.bf16.msra.mxu1 %v8798_v59  ;;  %v8884_v58 = vld [vmem:[%s9824_s28 + $0x1044] ss:$16 sps:$4 sm:$0xff]   ;;  %v8887_v59 = vld [vmem:[%s9824_s28 + $0x104c] ss:$16 sps:$4 sm:$0xff]  }
 0x241   : > { %5756 = vmatprep.subr.bf16.mxu0 %v8799_v60  ;;  %6652 = vmatprep.subr.bf16.mxu1 %v8802_v61  ;;  %v8886_v60 = vld [vmem:[%s9824_s28 + $0x1040] ss:$16 sps:$4 sm:$0xff]   ;;  %v8890_v61 = vld [vmem:[%s9824_s28 + $0x1064] ss:$16 sps:$4 sm:$0xff]  }
 0x244   : > { %5758 = vmatpush1.bf16.msra.mxu0 %v8801_v62  ;;  %6654 = vmatpush1.bf16.msra.mxu1 %v8804_v63  ;;  %v8893_v62 = vld [vmem:[%s9824_s28 + $0x106c] ss:$16 sps:$4 sm:$0xff]   ;;  %v8892_v63 = vld [vmem:[%s9824_s28 + $0x1060] ss:$16 sps:$4 sm:$0xff]  }
 0x245   : > { %5760 = vmatprep.subr.bf16.mxu0 %v8805_v0  ;;  %6656 = vmatprep.subr.bf16.mxu1 %v8808_v1  ;;  %v8895_v0 = vld [vmem:[%s9824_s28 + $0x1068] ss:$16 sps:$4 sm:$0xff]   ;;  %v8896_v1 = vld [vmem:[%s9824_s28 + $0x1084] ss:$16 sps:$4 sm:$0xff]  }
 0x248   : > { %5762 = vmatpush1.bf16.msra.mxu0 %v8807_v2  ;;  %6658 = vmatpush1.bf16.msra.mxu1 %v8810_v3  ;;  %v8899_v2 = vld [vmem:[%s9824_s28 + $0x108c] ss:$16 sps:$4 sm:$0xff]   ;;  %v8898_v3 = vld [vmem:[%s9824_s28 + $0x1080] ss:$16 sps:$4 sm:$0xff]  }
 0x249   : > { %5764 = vmatprep.subr.bf16.mxu0 %v8811_v4  ;;  %6660 = vmatprep.subr.bf16.mxu1 %v8814_v5  ;;  %v8901_v4 = vld [vmem:[%s9824_s28 + $0x1088] ss:$16 sps:$4 sm:$0xff]   ;;  %v8902_v5 = vld [vmem:[%s9824_s28 + $0x10a4] ss:$16 sps:$4 sm:$0xff]  }
 0x24c   : > { %5766 = vmatpush1.bf16.msra.mxu0 %v8813_v6  ;;  %6662 = vmatpush1.bf16.msra.mxu1 %v8816_v7  ;;  %v8905_v6 = vld [vmem:[%s9824_s28 + $0x10ac] ss:$16 sps:$4 sm:$0xff]   ;;  %v8904_v7 = vld [vmem:[%s9824_s28 + $0x10a0] ss:$16 sps:$4 sm:$0xff]  }
 0x24d   : > { %5768 = vmatprep.subr.bf16.mxu0 %v8817_v8  ;;  %6664 = vmatprep.subr.bf16.mxu1 %v8820_v9  ;;  %v8907_v8 = vld [vmem:[%s9824_s28 + $0x10a8] ss:$16 sps:$4 sm:$0xff]   ;;  %v8908_v9 = vld [vmem:[%s9824_s28 + $0x10c4] ss:$16 sps:$4 sm:$0xff]  }
 0x250   : > { %5770 = vmatpush1.bf16.msra.mxu0 %v8819_v10  ;;  %6666 = vmatpush1.bf16.msra.mxu1 %v8822_v11  ;;  %v8911_v10 = vld [vmem:[%s9824_s28 + $0x10cc] ss:$16 sps:$4 sm:$0xff]   ;;  %v8910_v11 = vld [vmem:[%s9824_s28 + $0x10c0] ss:$16 sps:$4 sm:$0xff]  }
 0x251   : > { %5772 = vmatprep.subr.bf16.mxu0 %v8823_v13  ;;  %6668 = vmatprep.subr.bf16.mxu1 %v8826_v14  ;;  %v8913_v13 = vld [vmem:[%s9824_s28 + $0x10c8] ss:$16 sps:$4 sm:$0xff]   ;;  %v8914_v14 = vld [vmem:[%s9824_s28 + $0x10e4] ss:$16 sps:$4 sm:$0xff]  }
 0x254   : > { %5774 = vmatpush1.bf16.msra.mxu0 %v8825_v15  ;;  %6670 = vmatpush1.bf16.msra.mxu1 %v8828_v16  ;;  %v8917_v15 = vld [vmem:[%s9824_s28 + $0x10ec] ss:$16 sps:$4 sm:$0xff]   ;;  %v8916_v16 = vld [vmem:[%s9824_s28 + $0x10e0] ss:$16 sps:$4 sm:$0xff]  }
 0x255   : > { %5776 = vmatprep.subr.bf16.mxu0 %v8829_v17  ;;  %6672 = vmatprep.subr.bf16.mxu1 %v8832_v18  ;;  %v8919_v17 = vld [vmem:[%s9824_s28 + $0x10e8] ss:$16 sps:$4 sm:$0xff]   ;;  %v8920_v18 = vld [vmem:[%s9824_s28 + $0x1104] ss:$16 sps:$4 sm:$0xff]  }
 0x258   : > { %5778 = vmatpush1.bf16.msra.mxu0 %v8831_v20  ;;  %6674 = vmatpush1.bf16.msra.mxu1 %v8834_v21  ;;  %v8923_v20 = vld [vmem:[%s9824_s28 + $0x110c] ss:$16 sps:$4 sm:$0xff]   ;;  %v8922_v21 = vld [vmem:[%s9824_s28 + $0x1100] ss:$16 sps:$4 sm:$0xff]  }
 0x259   : > { %5780 = vmatprep.subr.bf16.mxu0 %v8835_v23  ;;  %6676 = vmatprep.subr.bf16.mxu1 %v8838_v24  ;;  %v8925_v23 = vld [vmem:[%s9824_s28 + $0x1108] ss:$16 sps:$4 sm:$0xff]   ;;  %v8926_v24 = vld [vmem:[%s9824_s28 + $0x1124] ss:$16 sps:$4 sm:$0xff]  }
 0x25c   : > { %5782 = vmatpush1.bf16.msra.mxu0 %v8837_v26  ;;  %6678 = vmatpush1.bf16.msra.mxu1 %v8840_v27  ;;  %v8929_v26 = vld [vmem:[%s9824_s28 + $0x112c] ss:$16 sps:$4 sm:$0xff]   ;;  %v8928_v27 = vld [vmem:[%s9824_s28 + $0x1120] ss:$16 sps:$4 sm:$0xff]  }
 0x25d   : > { %5784 = vmatprep.subr.bf16.mxu0 %v8841_v12  ;;  %6680 = vmatprep.subr.bf16.mxu1 %v8844_v28  ;;  %v8931_v12 = vld [vmem:[%s9824_s28 + $0x1128] ss:$16 sps:$4 sm:$0xff]   ;;  %v8932_v28 = vld [vmem:[%s9824_s28 + $0x1144] ss:$16 sps:$4 sm:$0xff]  }
 0x260   : > { %5786 = vmatpush1.bf16.msra.mxu0 %v8843_v30  ;;  %6682 = vmatpush1.bf16.msra.mxu1 %v8846_v31  ;;  %v8935_v30 = vld [vmem:[%s9824_s28 + $0x114c] ss:$16 sps:$4 sm:$0xff]   ;;  %v8934_v31 = vld [vmem:[%s9824_s28 + $0x1140] ss:$16 sps:$4 sm:$0xff]  }
 0x261   : > { %5788 = vmatprep.subr.bf16.mxu0 %v8847_v32  ;;  %6684 = vmatprep.subr.bf16.mxu1 %v8850_v33  ;;  %v8937_v32 = vld [vmem:[%s9824_s28 + $0x1148] ss:$16 sps:$4 sm:$0xff]   ;;  %v8938_v33 = vld [vmem:[%s9824_s28 + $0x1164] ss:$16 sps:$4 sm:$0xff]  }
 0x264   : > { %5790 = vmatpush1.bf16.msra.mxu0 %v8849_v22  ;;  %6686 = vmatpush1.bf16.msra.mxu1 %v8852_v34  ;;  %v8941_v22 = vld [vmem:[%s9824_s28 + $0x116c] ss:$16 sps:$4 sm:$0xff]   ;;  %v8940_v34 = vld [vmem:[%s9824_s28 + $0x1160] ss:$16 sps:$4 sm:$0xff]  }
 0x265   : > { %5792 = vmatprep.subr.bf16.mxu0 %v8853_v37  ;;  %6688 = vmatprep.subr.bf16.mxu1 %v8856_v19  ;;  %v8943_v37 = vld [vmem:[%s9824_s28 + $0x1168] ss:$16 sps:$4 sm:$0xff]   ;;  %v8944_v19 = vld [vmem:[%s9824_s28 + $0x1184] ss:$16 sps:$4 sm:$0xff]  }
 0x268   : > { %5794 = vmatpush1.bf16.msra.mxu0 %v8855_v38  ;;  %6690 = vmatpush1.bf16.msra.mxu1 %v8858_v25  ;;  %v8947_v38 = vld [vmem:[%s9824_s28 + $0x118c] ss:$16 sps:$4 sm:$0xff]   ;;  %v8946_v25 = vld [vmem:[%s9824_s28 + $0x1180] ss:$16 sps:$4 sm:$0xff]  }
 0x269   : > { %5796 = vmatprep.subr.bf16.mxu0 %v8859_v39  ;;  %6692 = vmatprep.subr.bf16.mxu1 %v8862_v41  ;;  %v8949_v39 = vld [vmem:[%s9824_s28 + $0x1188] ss:$16 sps:$4 sm:$0xff]   ;;  %v8950_v41 = vld [vmem:[%s9824_s28 + $0x11a4] ss:$16 sps:$4 sm:$0xff]  }
 0x26c   : > { %5798 = vmatpush1.bf16.msra.mxu0 %v8861_v43  ;;  %6694 = vmatpush1.bf16.msra.mxu1 %v8864_v44  ;;  %v8953_v43 = vld [vmem:[%s9824_s28 + $0x11ac] ss:$16 sps:$4 sm:$0xff]   ;;  %v8952_v44 = vld [vmem:[%s9824_s28 + $0x11a0] ss:$16 sps:$4 sm:$0xff]  }
 0x26d   : > { %5800 = vmatprep.subr.bf16.mxu0 %v8865_v29  ;;  %6696 = vmatprep.subr.bf16.mxu1 %v8868_v45  ;;  %v8955_v29 = vld [vmem:[%s9824_s28 + $0x11a8] ss:$16 sps:$4 sm:$0xff]   ;;  %v8956_v45 = vld [vmem:[%s9824_s28 + $0x11c4] ss:$16 sps:$4 sm:$0xff]  }
 0x270   : > { %5802 = vmatpush1.bf16.msra.mxu0 %v8867_v48  ;;  %6698 = vmatpush1.bf16.msra.mxu1 %v8870_v35  ;;  %v8959_v48 = vld [vmem:[%s9824_s28 + $0x11cc] ss:$16 sps:$4 sm:$0xff]   ;;  %v8958_v35 = vld [vmem:[%s9824_s28 + $0x11c0] ss:$16 sps:$4 sm:$0xff]  }
 0x271   : > { %5804 = vmatprep.subr.bf16.mxu0 %v8872_v50  ;;  %6700 = vmatprep.subr.bf16.mxu1 %v8875_v36  ;;  %v8961_v50 = vld [vmem:[%s9824_s28 + $0x11c8] ss:$16 sps:$4 sm:$0xff]   ;;  %v8962_v36 = vld [vmem:[%s9824_s28 + $0x11e4] ss:$16 sps:$4 sm:$0xff]  }
 0x273   : > { %3696 = vmatmul.mubr.f32.vlgmr.msra.gmra.mrb[0].mxu0 %v10347_v47  ;;  %4690 = vmatmul.mubr.f32.vlgmr.msra.gmra.mrb[0].mxu1 %v10347_v47  ;;  %v8889_v47 = vld [vmem:[%s9824_s28 + $0x1048] ss:$16 sps:$4 sm:$0xff]  }
 0x274   : > { %5806 = vmatpush1.bf16.msra.mxu0 %v8874_v51  ;;  %6702 = vmatpush1.bf16.msra.mxu1 %v8877_v53  ;;  %v8965_v51 = vld [vmem:[%s9824_s28 + $0x11ec] ss:$16 sps:$4 sm:$0xff]   ;;  %v3055_v53 = vcombine.high %v10413_v46, %v10413_v46  ;;  %v8973_v46 = vld [vmem:[%s9824_s28 + $0x1208] ss:$16 sps:$4 sm:$0xff]  }
 0x275   : > { %5808 = vmatprep.subr.bf16.mxu0 %v8878_v54  ;;  %6704 = vmatprep.subr.bf16.mxu1 %v8881_v55  ;;  %v8964_v54 = vld [vmem:[%s9824_s28 + $0x11e0] ss:$16 sps:$4 sm:$0xff]   ;;  %v8967_v55 = vld [vmem:[%s9824_s28 + $0x11e8] ss:$16 sps:$4 sm:$0xff]  }
 0x276   : > { %3766 = vmatprep.mubr.f32.mxu0 %v3070_v40  ;;  %4760 = vmatprep.mubr.f32.mxu1 %v3070_v40  ;;  %v8968_v40 = vld [vmem:[%s9824_s28 + $0x1204] ss:$16 sps:$4 sm:$0xff]  }
 0x278   : > { %5810 = vmatpush1.bf16.msra.mxu0 %v8880_v56  ;;  %6706 = vmatpush1.bf16.msra.mxu1 %v8883_v57  ;;  %v8971_v56 = vld [vmem:[%s9824_s28 + $0x120c] ss:$16 sps:$4 sm:$0xff]   ;;  %v10494_v57 = vrot.slane %v3055_v53, %v9877_v49 }
 0x279   : > { %5812 = vmatprep.subr.bf16.mxu0 %v8884_v58  ;;  %6708 = vmatprep.subr.bf16.mxu1 %v8887_v59  ;;  %v8970_v58 = vld [vmem:[%s9824_s28 + $0x1200] ss:$16 sps:$4 sm:$0xff]   ;;  %v8974_v59 = vld [vmem:[%s9824_s28 + $0x1224] ss:$16 sps:$4 sm:$0xff]   ;;  %v9055_v53 = vld [vmem:[%s9824_s28 + $0x13cc] ss:$16 sps:$4 sm:$0xff]  }
 0x27c   : > { %5814 = vmatpush1.bf16.msra.mxu0 %v8886_v60  ;;  %6710 = vmatpush1.bf16.msra.mxu1 %v8889_v47  ;;  %v8977_v60 = vld [vmem:[%s9824_s28 + $0x122c] ss:$16 sps:$4 sm:$0xff]   ;;  %v3071_v47 = vcombine.high %v10494_v57, %v10494_v57 }
 0x27d   : > { %5816 = vmatprep.subr.bf16.mxu0 %v8890_v61  ;;  %6712 = vmatprep.subr.bf16.mxu1 %v8893_v62  ;;  %v8976_v61 = vld [vmem:[%s9824_s28 + $0x1220] ss:$16 sps:$4 sm:$0xff]   ;;  %v8979_v62 = vld [vmem:[%s9824_s28 + $0x1228] ss:$16 sps:$4 sm:$0xff]  }
 0x280   : > { %5818 = vmatpush1.bf16.msra.mxu0 %v8892_v63  ;;  %6714 = vmatpush1.bf16.msra.mxu1 %v8895_v0  ;;  %v8980_v63 = vld [vmem:[%s9824_s28 + $0x1244] ss:$16 sps:$4 sm:$0xff]   ;;  %v8983_v0 = vld [vmem:[%s9824_s28 + $0x124c] ss:$16 sps:$4 sm:$0xff]  }
 0x281   : > { %5820 = vmatprep.subr.bf16.mxu0 %v8896_v1  ;;  %6716 = vmatprep.subr.bf16.mxu1 %v8899_v2  ;;  %v8982_v1 = vld [vmem:[%s9824_s28 + $0x1240] ss:$16 sps:$4 sm:$0xff]   ;;  %v8986_v2 = vld [vmem:[%s9824_s28 + $0x1264] ss:$16 sps:$4 sm:$0xff]  }
 0x284   : > { %5822 = vmatpush1.bf16.msra.mxu0 %v8898_v3  ;;  %6718 = vmatpush1.bf16.msra.mxu1 %v8901_v4  ;;  %v8989_v3 = vld [vmem:[%s9824_s28 + $0x126c] ss:$16 sps:$4 sm:$0xff]   ;;  %v8988_v4 = vld [vmem:[%s9824_s28 + $0x1260] ss:$16 sps:$4 sm:$0xff]  }
 0x285   : > { %5824 = vmatprep.subr.bf16.mxu0 %v8902_v5  ;;  %6720 = vmatprep.subr.bf16.mxu1 %v8905_v6  ;;  %v8991_v5 = vld [vmem:[%s9824_s28 + $0x1268] ss:$16 sps:$4 sm:$0xff]   ;;  %v8992_v6 = vld [vmem:[%s9824_s28 + $0x1284] ss:$16 sps:$4 sm:$0xff]  }
 0x288   : > { %5826 = vmatpush1.bf16.msra.mxu0 %v8904_v7  ;;  %6722 = vmatpush1.bf16.msra.mxu1 %v8907_v8  ;;  %v8995_v7 = vld [vmem:[%s9824_s28 + $0x128c] ss:$16 sps:$4 sm:$0xff]   ;;  %v8994_v8 = vld [vmem:[%s9824_s28 + $0x1280] ss:$16 sps:$4 sm:$0xff]  }
 0x289   : > { %5828 = vmatprep.subr.bf16.mxu0 %v8908_v9  ;;  %6724 = vmatprep.subr.bf16.mxu1 %v8911_v10  ;;  %v8997_v9 = vld [vmem:[%s9824_s28 + $0x1288] ss:$16 sps:$4 sm:$0xff]   ;;  %v8998_v10 = vld [vmem:[%s9824_s28 + $0x12a4] ss:$16 sps:$4 sm:$0xff]  }
 0x28c   : > { %5830 = vmatpush1.bf16.msra.mxu0 %v8910_v11  ;;  %6726 = vmatpush1.bf16.msra.mxu1 %v8913_v13  ;;  %v9001_v11 = vld [vmem:[%s9824_s28 + $0x12ac] ss:$16 sps:$4 sm:$0xff]   ;;  %v9000_v13 = vld [vmem:[%s9824_s28 + $0x12a0] ss:$16 sps:$4 sm:$0xff]  }
 0x28d   : > { %5832 = vmatprep.subr.bf16.mxu0 %v8914_v14  ;;  %6728 = vmatprep.subr.bf16.mxu1 %v8917_v15  ;;  %v9003_v14 = vld [vmem:[%s9824_s28 + $0x12a8] ss:$16 sps:$4 sm:$0xff]   ;;  %v9004_v15 = vld [vmem:[%s9824_s28 + $0x12c4] ss:$16 sps:$4 sm:$0xff]  }
 0x290   : > { %5834 = vmatpush1.bf16.msra.mxu0 %v8916_v16  ;;  %6730 = vmatpush1.bf16.msra.mxu1 %v8919_v17  ;;  %v9007_v16 = vld [vmem:[%s9824_s28 + $0x12cc] ss:$16 sps:$4 sm:$0xff]   ;;  %v9006_v17 = vld [vmem:[%s9824_s28 + $0x12c0] ss:$16 sps:$4 sm:$0xff]  }
 0x291   : > { %5836 = vmatprep.subr.bf16.mxu0 %v8920_v18  ;;  %6732 = vmatprep.subr.bf16.mxu1 %v8923_v20  ;;  %v9009_v18 = vld [vmem:[%s9824_s28 + $0x12c8] ss:$16 sps:$4 sm:$0xff]   ;;  %v9010_v20 = vld [vmem:[%s9824_s28 + $0x12e4] ss:$16 sps:$4 sm:$0xff]  }
 0x294   : > { %5838 = vmatpush1.bf16.msra.mxu0 %v8922_v21  ;;  %6734 = vmatpush1.bf16.msra.mxu1 %v8925_v23  ;;  %v9013_v21 = vld [vmem:[%s9824_s28 + $0x12ec] ss:$16 sps:$4 sm:$0xff]   ;;  %v9012_v23 = vld [vmem:[%s9824_s28 + $0x12e0] ss:$16 sps:$4 sm:$0xff]  }
 0x295   : > { %5840 = vmatprep.subr.bf16.mxu0 %v8926_v24  ;;  %6736 = vmatprep.subr.bf16.mxu1 %v8929_v26  ;;  %v9015_v24 = vld [vmem:[%s9824_s28 + $0x12e8] ss:$16 sps:$4 sm:$0xff]   ;;  %v9016_v26 = vld [vmem:[%s9824_s28 + $0x1304] ss:$16 sps:$4 sm:$0xff]  }
 0x298   : > { %5842 = vmatpush1.bf16.msra.mxu0 %v8928_v27  ;;  %6738 = vmatpush1.bf16.msra.mxu1 %v8931_v12  ;;  %v9019_v27 = vld [vmem:[%s9824_s28 + $0x130c] ss:$16 sps:$4 sm:$0xff]   ;;  %v9018_v12 = vld [vmem:[%s9824_s28 + $0x1300] ss:$16 sps:$4 sm:$0xff]  }
 0x299   : > { %5844 = vmatprep.subr.bf16.mxu0 %v8932_v28  ;;  %6740 = vmatprep.subr.bf16.mxu1 %v8935_v30  ;;  %v9021_v28 = vld [vmem:[%s9824_s28 + $0x1308] ss:$16 sps:$4 sm:$0xff]   ;;  %v9022_v30 = vld [vmem:[%s9824_s28 + $0x1324] ss:$16 sps:$4 sm:$0xff]  }
 0x29c   : > { %5846 = vmatpush1.bf16.msra.mxu0 %v8934_v31  ;;  %6742 = vmatpush1.bf16.msra.mxu1 %v8937_v32  ;;  %v9025_v31 = vld [vmem:[%s9824_s28 + $0x132c] ss:$16 sps:$4 sm:$0xff]   ;;  %v9024_v32 = vld [vmem:[%s9824_s28 + $0x1320] ss:$16 sps:$4 sm:$0xff]  }
 0x29d   : > { %5848 = vmatprep.subr.bf16.mxu0 %v8938_v33  ;;  %6744 = vmatprep.subr.bf16.mxu1 %v8941_v22  ;;  %v9027_v33 = vld [vmem:[%s9824_s28 + $0x1328] ss:$16 sps:$4 sm:$0xff]   ;;  %v9028_v22 = vld [vmem:[%s9824_s28 + $0x1344] ss:$16 sps:$4 sm:$0xff]  }
 0x2a0   : > { %5850 = vmatpush1.bf16.msra.mxu0 %v8940_v34  ;;  %6746 = vmatpush1.bf16.msra.mxu1 %v8943_v37  ;;  %v9031_v34 = vld [vmem:[%s9824_s28 + $0x134c] ss:$16 sps:$4 sm:$0xff]   ;;  %v9030_v37 = vld [vmem:[%s9824_s28 + $0x1340] ss:$16 sps:$4 sm:$0xff]  }
 0x2a1   : > { %5852 = vmatprep.subr.bf16.mxu0 %v8944_v19  ;;  %6748 = vmatprep.subr.bf16.mxu1 %v8947_v38  ;;  %v9033_v19 = vld [vmem:[%s9824_s28 + $0x1348] ss:$16 sps:$4 sm:$0xff]   ;;  %v9034_v38 = vld [vmem:[%s9824_s28 + $0x1364] ss:$16 sps:$4 sm:$0xff]  }
 0x2a4   : > { %5854 = vmatpush1.bf16.msra.mxu0 %v8946_v25  ;;  %6750 = vmatpush1.bf16.msra.mxu1 %v8949_v39  ;;  %v9037_v25 = vld [vmem:[%s9824_s28 + $0x136c] ss:$16 sps:$4 sm:$0xff]   ;;  %v9036_v39 = vld [vmem:[%s9824_s28 + $0x1360] ss:$16 sps:$4 sm:$0xff]  }
 0x2a5   : > { %5856 = vmatprep.subr.bf16.mxu0 %v8950_v41  ;;  %6752 = vmatprep.subr.bf16.mxu1 %v8953_v43  ;;  %v9039_v41 = vld [vmem:[%s9824_s28 + $0x1368] ss:$16 sps:$4 sm:$0xff]   ;;  %v9040_v43 = vld [vmem:[%s9824_s28 + $0x1384] ss:$16 sps:$4 sm:$0xff]  }
 0x2a8   : > { %5858 = vmatpush1.bf16.msra.mxu0 %v8952_v44  ;;  %6754 = vmatpush1.bf16.msra.mxu1 %v8955_v29  ;;  %v9043_v44 = vld [vmem:[%s9824_s28 + $0x138c] ss:$16 sps:$4 sm:$0xff]   ;;  %v9042_v29 = vld [vmem:[%s9824_s28 + $0x1380] ss:$16 sps:$4 sm:$0xff]  }
 0x2a9   : > { %5860 = vmatprep.subr.bf16.mxu0 %v8956_v45  ;;  %6756 = vmatprep.subr.bf16.mxu1 %v8959_v48  ;;  %v9045_v45 = vld [vmem:[%s9824_s28 + $0x1388] ss:$16 sps:$4 sm:$0xff]   ;;  %v9046_v48 = vld [vmem:[%s9824_s28 + $0x13a4] ss:$16 sps:$4 sm:$0xff]  }
 0x2ac   : > { %5862 = vmatpush1.bf16.msra.mxu0 %v8958_v35  ;;  %6758 = vmatpush1.bf16.msra.mxu1 %v8961_v50  ;;  %v9049_v35 = vld [vmem:[%s9824_s28 + $0x13ac] ss:$16 sps:$4 sm:$0xff]   ;;  %v9048_v50 = vld [vmem:[%s9824_s28 + $0x13a0] ss:$16 sps:$4 sm:$0xff]  }
 0x2ad   : > { %5864 = vmatprep.subr.bf16.mxu0 %v8962_v36  ;;  %6760 = vmatprep.subr.bf16.mxu1 %v8965_v51  ;;  %v9051_v36 = vld [vmem:[%s9824_s28 + $0x13a8] ss:$16 sps:$4 sm:$0xff]   ;;  %v9052_v51 = vld [vmem:[%s9824_s28 + $0x13c4] ss:$16 sps:$4 sm:$0xff]  }
 0x2b0   : > { %5866 = vmatpush1.bf16.msra.mxu0 %v8964_v54  ;;  %6762 = vmatpush1.bf16.msra.mxu1 %v8967_v55  ;;  %v9054_v54 = vld [vmem:[%s9824_s28 + $0x13c0] ss:$16 sps:$4 sm:$0xff]   ;;  %v9057_v55 = vld [vmem:[%s9824_s28 + $0x13c8] ss:$16 sps:$4 sm:$0xff]  }
 0x2b1   : > { %5868 = vmatprep.subr.bf16.mxu0 %v8968_v40  ;;  %6764 = vmatprep.subr.bf16.mxu1 %v8971_v56  ;;  %v9058_v40 = vld [vmem:[%s9824_s28 + $0x13e4] ss:$16 sps:$4 sm:$0xff]   ;;  %v9061_v56 = vld [vmem:[%s9824_s28 + $0x13ec] ss:$16 sps:$4 sm:$0xff]  }
 0x2b3   : > { %3767 = vmatmul.mubr.f32.vlgmr.msra.gmra.mrb[0].mxu0 %v10422_v52  ;;  %4761 = vmatmul.mubr.f32.vlgmr.msra.gmra.mrb[0].mxu1 %v10422_v52  ;;  %v8985_v52 = vld [vmem:[%s9824_s28 + $0x1248] ss:$16 sps:$4 sm:$0xff]  }
 0x2b4   : > { %5870 = vmatpush1.bf16.msra.mxu0 %v8970_v58  ;;  %6766 = vmatpush1.bf16.msra.mxu1 %v8973_v46  ;;  %v10561_v58 = vld [vmem:[%s9816_s29 + $0x28] sm:$0xff] }
 0x2b5   : > { %5872 = vmatprep.subr.bf16.mxu0 %v8974_v59  ;;  %6768 = vmatprep.subr.bf16.mxu1 %v8977_v60  ;;  %v9060_v46 = vld [vmem:[%s9824_s28 + $0x13e0] ss:$16 sps:$4 sm:$0xff]   ;;  %v9063_v59 = vld [vmem:[%s9824_s28 + $0x13e8] ss:$16 sps:$4 sm:$0xff]   ;;  %v9065_v60 = vld [vmem:[%s9824_s28 + $0x1404] ss:$16 sps:$4 sm:$0xff]  }
 0x2b6   : > { %3837 = vmatprep.mubr.f32.mxu0 %v3071_v47  ;;  %4831 = vmatprep.mubr.f32.mxu1 %v3071_v47  ;;  %v9068_v47 = vld [vmem:[%s9824_s28 + $0x140c] ss:$16 sps:$4 sm:$0xff]  }
 0x2b8   : > { %5874 = vmatpush1.bf16.msra.mxu0 %v8976_v61  ;;  %6770 = vmatpush1.bf16.msra.mxu1 %v8979_v62  ;;  %v10569_v61 = vrot.slane %v10561_v58, %v9877_v49  ;;  %v9067_v62 = vld [vmem:[%s9824_s28 + $0x1400] ss:$16 sps:$4 sm:$0xff]  }
 0x2b9   : > { %5876 = vmatprep.subr.bf16.mxu0 %v8980_v63  ;;  %6772 = vmatprep.subr.bf16.mxu1 %v8983_v0  ;;  %v9070_v63 = vld [vmem:[%s9824_s28 + $0x1408] ss:$16 sps:$4 sm:$0xff]   ;;  %v9071_v0 = vld [vmem:[%s9824_s28 + $0x1424] ss:$16 sps:$4 sm:$0xff]  }
 0x2bc   : > { %5878 = vmatpush1.bf16.msra.mxu0 %v8982_v1  ;;  %6774 = vmatpush1.bf16.msra.mxu1 %v8985_v52  ;;  %v9074_v1 = vld [vmem:[%s9824_s28 + $0x142c] ss:$16 sps:$4 sm:$0xff]   ;;  %v3087_v52 = vcombine.high %v10569_v61, %v10569_v61 }
 0x2bd   : > { %5880 = vmatprep.subr.bf16.mxu0 %v8986_v2  ;;  %6776 = vmatprep.subr.bf16.mxu1 %v8989_v3  ;;  %v9073_v2 = vld [vmem:[%s9824_s28 + $0x1420] ss:$16 sps:$4 sm:$0xff]   ;;  %v9076_v3 = vld [vmem:[%s9824_s28 + $0x1428] ss:$16 sps:$4 sm:$0xff]  }
 0x2c0   : > { %5882 = vmatpush1.bf16.msra.mxu0 %v8988_v4  ;;  %6778 = vmatpush1.bf16.msra.mxu1 %v8991_v5  ;;  %v9077_v4 = vld [vmem:[%s9824_s28 + $0x1444] ss:$16 sps:$4 sm:$0xff]   ;;  %v9080_v5 = vld [vmem:[%s9824_s28 + $0x144c] ss:$16 sps:$4 sm:$0xff]  }
 0x2c1   : > { %5884 = vmatprep.subr.bf16.mxu0 %v8992_v6  ;;  %6780 = vmatprep.subr.bf16.mxu1 %v8995_v7  ;;  %v9079_v6 = vld [vmem:[%s9824_s28 + $0x1440] ss:$16 sps:$4 sm:$0xff]   ;;  %v9083_v7 = vld [vmem:[%s9824_s28 + $0x1464] ss:$16 sps:$4 sm:$0xff]  }
 0x2c4   : > { %5886 = vmatpush1.bf16.msra.mxu0 %v8994_v8  ;;  %6782 = vmatpush1.bf16.msra.mxu1 %v8997_v9  ;;  %v9086_v8 = vld [vmem:[%s9824_s28 + $0x146c] ss:$16 sps:$4 sm:$0xff]   ;;  %v9085_v9 = vld [vmem:[%s9824_s28 + $0x1460] ss:$16 sps:$4 sm:$0xff]  }
 0x2c5   : > { %5888 = vmatprep.subr.bf16.mxu0 %v8998_v10  ;;  %6784 = vmatprep.subr.bf16.mxu1 %v9001_v11  ;;  %v9088_v10 = vld [vmem:[%s9824_s28 + $0x1468] ss:$16 sps:$4 sm:$0xff]   ;;  %v9089_v11 = vld [vmem:[%s9824_s28 + $0x1484] ss:$16 sps:$4 sm:$0xff]  }
 0x2c8   : > { %5890 = vmatpush1.bf16.msra.mxu0 %v9000_v13  ;;  %6786 = vmatpush1.bf16.msra.mxu1 %v9003_v14  ;;  %v9092_v13 = vld [vmem:[%s9824_s28 + $0x148c] ss:$16 sps:$4 sm:$0xff]   ;;  %v9091_v14 = vld [vmem:[%s9824_s28 + $0x1480] ss:$16 sps:$4 sm:$0xff]  }
 0x2c9   : > { %5892 = vmatprep.subr.bf16.mxu0 %v9004_v15  ;;  %6788 = vmatprep.subr.bf16.mxu1 %v9007_v16  ;;  %v9094_v15 = vld [vmem:[%s9824_s28 + $0x1488] ss:$16 sps:$4 sm:$0xff]   ;;  %v9095_v16 = vld [vmem:[%s9824_s28 + $0x14a4] ss:$16 sps:$4 sm:$0xff]  }
 0x2cc   : > { %5894 = vmatpush1.bf16.msra.mxu0 %v9006_v17  ;;  %6790 = vmatpush1.bf16.msra.mxu1 %v9009_v18  ;;  %v9098_v17 = vld [vmem:[%s9824_s28 + $0x14ac] ss:$16 sps:$4 sm:$0xff]   ;;  %v9097_v18 = vld [vmem:[%s9824_s28 + $0x14a0] ss:$16 sps:$4 sm:$0xff]  }
 0x2cd   : > { %5896 = vmatprep.subr.bf16.mxu0 %v9010_v20  ;;  %6792 = vmatprep.subr.bf16.mxu1 %v9013_v21  ;;  %v9100_v20 = vld [vmem:[%s9824_s28 + $0x14a8] ss:$16 sps:$4 sm:$0xff]   ;;  %v9101_v21 = vld [vmem:[%s9824_s28 + $0x14c4] ss:$16 sps:$4 sm:$0xff]  }
 0x2d0   : > { %5898 = vmatpush1.bf16.msra.mxu0 %v9012_v23  ;;  %6794 = vmatpush1.bf16.msra.mxu1 %v9015_v24  ;;  %v9104_v23 = vld [vmem:[%s9824_s28 + $0x14cc] ss:$16 sps:$4 sm:$0xff]   ;;  %v9103_v24 = vld [vmem:[%s9824_s28 + $0x14c0] ss:$16 sps:$4 sm:$0xff]  }
 0x2d1   : > { %5900 = vmatprep.subr.bf16.mxu0 %v9016_v26  ;;  %6796 = vmatprep.subr.bf16.mxu1 %v9019_v27  ;;  %v9106_v26 = vld [vmem:[%s9824_s28 + $0x14c8] ss:$16 sps:$4 sm:$0xff]   ;;  %v9107_v27 = vld [vmem:[%s9824_s28 + $0x14e4] ss:$16 sps:$4 sm:$0xff]  }
 0x2d4   : > { %5902 = vmatpush1.bf16.msra.mxu0 %v9018_v12  ;;  %6798 = vmatpush1.bf16.msra.mxu1 %v9021_v28  ;;  %v9110_v12 = vld [vmem:[%s9824_s28 + $0x14ec] ss:$16 sps:$4 sm:$0xff]   ;;  %v9109_v28 = vld [vmem:[%s9824_s28 + $0x14e0] ss:$16 sps:$4 sm:$0xff]  }
 0x2d5   : > { %5904 = vmatprep.subr.bf16.mxu0 %v9022_v30  ;;  %6800 = vmatprep.subr.bf16.mxu1 %v9025_v31  ;;  %v9112_v30 = vld [vmem:[%s9824_s28 + $0x14e8] ss:$16 sps:$4 sm:$0xff]   ;;  %v9113_v31 = vld [vmem:[%s9824_s28 + $0x1504] ss:$16 sps:$4 sm:$0xff]  }
 0x2d8   : > { %5906 = vmatpush1.bf16.msra.mxu0 %v9024_v32  ;;  %6802 = vmatpush1.bf16.msra.mxu1 %v9027_v33  ;;  %v9116_v32 = vld [vmem:[%s9824_s28 + $0x150c] ss:$16 sps:$4 sm:$0xff]   ;;  %v9115_v33 = vld [vmem:[%s9824_s28 + $0x1500] ss:$16 sps:$4 sm:$0xff]  }
 0x2d9   : > { %5908 = vmatprep.subr.bf16.mxu0 %v9028_v22  ;;  %6804 = vmatprep.subr.bf16.mxu1 %v9031_v34  ;;  %v9118_v22 = vld [vmem:[%s9824_s28 + $0x1508] ss:$16 sps:$4 sm:$0xff]   ;;  %v9119_v34 = vld [vmem:[%s9824_s28 + $0x1524] ss:$16 sps:$4 sm:$0xff]  }
 0x2dc   : > { %5910 = vmatpush1.bf16.msra.mxu0 %v9030_v37  ;;  %6806 = vmatpush1.bf16.msra.mxu1 %v9033_v19  ;;  %v9122_v37 = vld [vmem:[%s9824_s28 + $0x152c] ss:$16 sps:$4 sm:$0xff]   ;;  %v9121_v19 = vld [vmem:[%s9824_s28 + $0x1520] ss:$16 sps:$4 sm:$0xff]  }
 0x2dd   : > { %5912 = vmatprep.subr.bf16.mxu0 %v9034_v38  ;;  %6808 = vmatprep.subr.bf16.mxu1 %v9037_v25  ;;  %v9124_v38 = vld [vmem:[%s9824_s28 + $0x1528] ss:$16 sps:$4 sm:$0xff]   ;;  %v9125_v25 = vld [vmem:[%s9824_s28 + $0x1544] ss:$16 sps:$4 sm:$0xff]  }
 0x2e0   : > { %5914 = vmatpush1.bf16.msra.mxu0 %v9036_v39  ;;  %6810 = vmatpush1.bf16.msra.mxu1 %v9039_v41  ;;  %v9128_v39 = vld [vmem:[%s9824_s28 + $0x154c] ss:$16 sps:$4 sm:$0xff]   ;;  %v9127_v41 = vld [vmem:[%s9824_s28 + $0x1540] ss:$16 sps:$4 sm:$0xff]  }
 0x2e1   : > { %5916 = vmatprep.subr.bf16.mxu0 %v9040_v43  ;;  %6812 = vmatprep.subr.bf16.mxu1 %v9043_v44  ;;  %v9130_v43 = vld [vmem:[%s9824_s28 + $0x1548] ss:$16 sps:$4 sm:$0xff]   ;;  %v9131_v44 = vld [vmem:[%s9824_s28 + $0x1564] ss:$16 sps:$4 sm:$0xff]  }
 0x2e4   : > { %5918 = vmatpush1.bf16.msra.mxu0 %v9042_v29  ;;  %6814 = vmatpush1.bf16.msra.mxu1 %v9045_v45  ;;  %v9134_v29 = vld [vmem:[%s9824_s28 + $0x156c] ss:$16 sps:$4 sm:$0xff]   ;;  %v9133_v45 = vld [vmem:[%s9824_s28 + $0x1560] ss:$16 sps:$4 sm:$0xff]  }
 0x2e5   : > { %5920 = vmatprep.subr.bf16.mxu0 %v9046_v48  ;;  %6816 = vmatprep.subr.bf16.mxu1 %v9049_v35  ;;  %v9136_v48 = vld [vmem:[%s9824_s28 + $0x1568] ss:$16 sps:$4 sm:$0xff]   ;;  %v9137_v35 = vld [vmem:[%s9824_s28 + $0x1584] ss:$16 sps:$4 sm:$0xff]  }
 0x2e8   : > { %5922 = vmatpush1.bf16.msra.mxu0 %v9048_v50  ;;  %6818 = vmatpush1.bf16.msra.mxu1 %v9051_v36  ;;  %v9140_v50 = vld [vmem:[%s9824_s28 + $0x158c] ss:$16 sps:$4 sm:$0xff]   ;;  %v9139_v36 = vld [vmem:[%s9824_s28 + $0x1580] ss:$16 sps:$4 sm:$0xff]  }
 0x2e9   : > { %5924 = vmatprep.subr.bf16.mxu0 %v9052_v51  ;;  %6820 = vmatprep.subr.bf16.mxu1 %v9055_v53  ;;  %v9142_v51 = vld [vmem:[%s9824_s28 + $0x1588] ss:$16 sps:$4 sm:$0xff]   ;;  %v9143_v53 = vld [vmem:[%s9824_s28 + $0x15a4] ss:$16 sps:$4 sm:$0xff]  }
 0x2ec   : > { %5926 = vmatpush1.bf16.msra.mxu0 %v9054_v54  ;;  %6822 = vmatpush1.bf16.msra.mxu1 %v9057_v55  ;;  %v9146_v54 = vld [vmem:[%s9824_s28 + $0x15ac] ss:$16 sps:$4 sm:$0xff]   ;;  %v9145_v55 = vld [vmem:[%s9824_s28 + $0x15a0] ss:$16 sps:$4 sm:$0xff]  }
 0x2ed   : > { %5928 = vmatprep.subr.bf16.mxu0 %v9058_v40  ;;  %6824 = vmatprep.subr.bf16.mxu1 %v9061_v56  ;;  %v9148_v40 = vld [vmem:[%s9824_s28 + $0x15a8] ss:$16 sps:$4 sm:$0xff]   ;;  %v9149_v56 = vld [vmem:[%s9824_s28 + $0x15c4] ss:$16 sps:$4 sm:$0xff]  }
 0x2f0   : > { %5930 = vmatpush1.bf16.msra.mxu0 %v9060_v46  ;;  %6826 = vmatpush1.bf16.msra.mxu1 %v9063_v59  ;;  %v9152_v46 = vld [vmem:[%s9824_s28 + $0x15cc] ss:$16 sps:$4 sm:$0xff]   ;;  %v9151_v59 = vld [vmem:[%s9824_s28 + $0x15c0] ss:$16 sps:$4 sm:$0xff]  }
 0x2f1   : > { %5932 = vmatprep.subr.bf16.mxu0 %v9065_v60  ;;  %6828 = vmatprep.subr.bf16.mxu1 %v9068_v47  ;;  %v9154_v60 = vld [vmem:[%s9824_s28 + $0x15c8] ss:$16 sps:$4 sm:$0xff]   ;;  %v9155_v47 = vld [vmem:[%s9824_s28 + $0x15e4] ss:$16 sps:$4 sm:$0xff]  }
 0x2f3   : > { %3838 = vmatmul.mubr.f32.vlgmr.msra.gmra.mrb[0].mxu0 %v10494_v57  ;;  %4832 = vmatmul.mubr.f32.vlgmr.msra.gmra.mrb[0].mxu1 %v10494_v57  ;;  %v9082_v57 = vld [vmem:[%s9824_s28 + $0x1448] ss:$16 sps:$4 sm:$0xff]  }
 0x2f4   : > { %5934 = vmatpush1.bf16.msra.mxu0 %v9067_v62  ;;  %6830 = vmatpush1.bf16.msra.mxu1 %v9070_v63  ;;  %v9158_v62 = vld [vmem:[%s9824_s28 + $0x15ec] ss:$16 sps:$4 sm:$0xff]   ;;  %v3072_v63 = vcombine.high %v10561_v58, %v10561_v58  ;;  %v9166_v58 = vld [vmem:[%s9824_s28 + $0x1608] ss:$16 sps:$4 sm:$0xff]  }
 0x2f5   : > { %5936 = vmatprep.subr.bf16.mxu0 %v9071_v0  ;;  %6832 = vmatprep.subr.bf16.mxu1 %v9074_v1  ;;  %v9157_v0 = vld [vmem:[%s9824_s28 + $0x15e0] ss:$16 sps:$4 sm:$0xff]   ;;  %v9160_v1 = vld [vmem:[%s9824_s28 + $0x15e8] ss:$16 sps:$4 sm:$0xff]  }
 0x2f6   : > { %3908 = vmatprep.mubr.f32.mxu0 %v3087_v52  ;;  %4902 = vmatprep.mubr.f32.mxu1 %v3087_v52  ;;  %v9161_v52 = vld [vmem:[%s9824_s28 + $0x1604] ss:$16 sps:$4 sm:$0xff]  }
 0x2f8   : > { %5938 = vmatpush1.bf16.msra.mxu0 %v9073_v2  ;;  %6834 = vmatpush1.bf16.msra.mxu1 %v9076_v3  ;;  %v9164_v2 = vld [vmem:[%s9824_s28 + $0x160c] ss:$16 sps:$4 sm:$0xff]   ;;  %v10642_v3 = vrot.slane %v3072_v63, %v9877_v49 }
 0x2f9   : > { %5940 = vmatprep.subr.bf16.mxu0 %v9077_v4  ;;  %6836 = vmatprep.subr.bf16.mxu1 %v9080_v5  ;;  %v9163_v4 = vld [vmem:[%s9824_s28 + $0x1600] ss:$16 sps:$4 sm:$0xff]   ;;  %v9167_v5 = vld [vmem:[%s9824_s28 + $0x1624] ss:$16 sps:$4 sm:$0xff]   ;;  %v9248_v63 = vld [vmem:[%s9824_s28 + $0x17cc] ss:$16 sps:$4 sm:$0xff]  }
 0x2fc   : > { %5942 = vmatpush1.bf16.msra.mxu0 %v9079_v6  ;;  %6838 = vmatpush1.bf16.msra.mxu1 %v9082_v57  ;;  %v9170_v6 = vld [vmem:[%s9824_s28 + $0x162c] ss:$16 sps:$4 sm:$0xff]   ;;  %v3088_v57 = vcombine.high %v10642_v3, %v10642_v3 }
 0x2fd   : > { %5944 = vmatprep.subr.bf16.mxu0 %v9083_v7  ;;  %6840 = vmatprep.subr.bf16.mxu1 %v9086_v8  ;;  %v9169_v7 = vld [vmem:[%s9824_s28 + $0x1620] ss:$16 sps:$4 sm:$0xff]   ;;  %v9172_v8 = vld [vmem:[%s9824_s28 + $0x1628] ss:$16 sps:$4 sm:$0xff]  }
 0x300   : > { %5946 = vmatpush1.bf16.msra.mxu0 %v9085_v9  ;;  %6842 = vmatpush1.bf16.msra.mxu1 %v9088_v10  ;;  %v9173_v9 = vld [vmem:[%s9824_s28 + $0x1644] ss:$16 sps:$4 sm:$0xff]   ;;  %v9176_v10 = vld [vmem:[%s9824_s28 + $0x164c] ss:$16 sps:$4 sm:$0xff]  }
 0x301   : > { %5948 = vmatprep.subr.bf16.mxu0 %v9089_v11  ;;  %6844 = vmatprep.subr.bf16.mxu1 %v9092_v13  ;;  %v9175_v11 = vld [vmem:[%s9824_s28 + $0x1640] ss:$16 sps:$4 sm:$0xff]   ;;  %v9179_v13 = vld [vmem:[%s9824_s28 + $0x1664] ss:$16 sps:$4 sm:$0xff]  }
 0x304   : > { %5950 = vmatpush1.bf16.msra.mxu0 %v9091_v14  ;;  %6846 = vmatpush1.bf16.msra.mxu1 %v9094_v15  ;;  %v9182_v14 = vld [vmem:[%s9824_s28 + $0x166c] ss:$16 sps:$4 sm:$0xff]   ;;  %v9181_v15 = vld [vmem:[%s9824_s28 + $0x1660] ss:$16 sps:$4 sm:$0xff]  }
 0x305   : > { %5952 = vmatprep.subr.bf16.mxu0 %v9095_v16  ;;  %6848 = vmatprep.subr.bf16.mxu1 %v9098_v17  ;;  %v9184_v16 = vld [vmem:[%s9824_s28 + $0x1668] ss:$16 sps:$4 sm:$0xff]   ;;  %v9185_v17 = vld [vmem:[%s9824_s28 + $0x1684] ss:$16 sps:$4 sm:$0xff]  }
 0x308   : > { %5954 = vmatpush1.bf16.msra.mxu0 %v9097_v18  ;;  %6850 = vmatpush1.bf16.msra.mxu1 %v9100_v20  ;;  %v9188_v18 = vld [vmem:[%s9824_s28 + $0x168c] ss:$16 sps:$4 sm:$0xff]   ;;  %v9187_v20 = vld [vmem:[%s9824_s28 + $0x1680] ss:$16 sps:$4 sm:$0xff]  }
 0x309   : > { %5956 = vmatprep.subr.bf16.mxu0 %v9101_v21  ;;  %6852 = vmatprep.subr.bf16.mxu1 %v9104_v23  ;;  %v9190_v21 = vld [vmem:[%s9824_s28 + $0x1688] ss:$16 sps:$4 sm:$0xff]   ;;  %v9191_v23 = vld [vmem:[%s9824_s28 + $0x16a4] ss:$16 sps:$4 sm:$0xff]  }
 0x30c   : > { %5958 = vmatpush1.bf16.msra.mxu0 %v9103_v24  ;;  %6854 = vmatpush1.bf16.msra.mxu1 %v9106_v26  ;;  %v9194_v24 = vld [vmem:[%s9824_s28 + $0x16ac] ss:$16 sps:$4 sm:$0xff]   ;;  %v9193_v26 = vld [vmem:[%s9824_s28 + $0x16a0] ss:$16 sps:$4 sm:$0xff]  }
 0x30d   : > { %5960 = vmatprep.subr.bf16.mxu0 %v9107_v27  ;;  %6856 = vmatprep.subr.bf16.mxu1 %v9110_v12  ;;  %v9196_v27 = vld [vmem:[%s9824_s28 + $0x16a8] ss:$16 sps:$4 sm:$0xff]   ;;  %v9197_v12 = vld [vmem:[%s9824_s28 + $0x16c4] ss:$16 sps:$4 sm:$0xff]  }
 0x310   : > { %5962 = vmatpush1.bf16.msra.mxu0 %v9109_v28  ;;  %6858 = vmatpush1.bf16.msra.mxu1 %v9112_v30  ;;  %v9200_v28 = vld [vmem:[%s9824_s28 + $0x16cc] ss:$16 sps:$4 sm:$0xff]   ;;  %v9199_v30 = vld [vmem:[%s9824_s28 + $0x16c0] ss:$16 sps:$4 sm:$0xff]  }
 0x311   : > { %5964 = vmatprep.subr.bf16.mxu0 %v9113_v31  ;;  %6860 = vmatprep.subr.bf16.mxu1 %v9116_v32  ;;  %v9202_v31 = vld [vmem:[%s9824_s28 + $0x16c8] ss:$16 sps:$4 sm:$0xff]   ;;  %v9203_v32 = vld [vmem:[%s9824_s28 + $0x16e4] ss:$16 sps:$4 sm:$0xff]  }
 0x314   : > { %5966 = vmatpush1.bf16.msra.mxu0 %v9115_v33  ;;  %6862 = vmatpush1.bf16.msra.mxu1 %v9118_v22  ;;  %v9206_v33 = vld [vmem:[%s9824_s28 + $0x16ec] ss:$16 sps:$4 sm:$0xff]   ;;  %v9205_v22 = vld [vmem:[%s9824_s28 + $0x16e0] ss:$16 sps:$4 sm:$0xff]  }
 0x315   : > { %5968 = vmatprep.subr.bf16.mxu0 %v9119_v34  ;;  %6864 = vmatprep.subr.bf16.mxu1 %v9122_v37  ;;  %v9208_v34 = vld [vmem:[%s9824_s28 + $0x16e8] ss:$16 sps:$4 sm:$0xff]   ;;  %v9209_v37 = vld [vmem:[%s9824_s28 + $0x1704] ss:$16 sps:$4 sm:$0xff]  }
 0x318   : > { %5970 = vmatpush1.bf16.msra.mxu0 %v9121_v19  ;;  %6866 = vmatpush1.bf16.msra.mxu1 %v9124_v38  ;;  %v9212_v19 = vld [vmem:[%s9824_s28 + $0x170c] ss:$16 sps:$4 sm:$0xff]   ;;  %v9211_v38 = vld [vmem:[%s9824_s28 + $0x1700] ss:$16 sps:$4 sm:$0xff]  }
 0x319   : > { %5972 = vmatprep.subr.bf16.mxu0 %v9125_v25  ;;  %6868 = vmatprep.subr.bf16.mxu1 %v9128_v39  ;;  %v9214_v25 = vld [vmem:[%s9824_s28 + $0x1708] ss:$16 sps:$4 sm:$0xff]   ;;  %v9215_v39 = vld [vmem:[%s9824_s28 + $0x1724] ss:$16 sps:$4 sm:$0xff]  }
 0x31c   : > { %5974 = vmatpush1.bf16.msra.mxu0 %v9127_v41  ;;  %6870 = vmatpush1.bf16.msra.mxu1 %v9130_v43  ;;  %v9218_v41 = vld [vmem:[%s9824_s28 + $0x172c] ss:$16 sps:$4 sm:$0xff]   ;;  %v9217_v43 = vld [vmem:[%s9824_s28 + $0x1720] ss:$16 sps:$4 sm:$0xff]  }
 0x31d   : > { %5976 = vmatprep.subr.bf16.mxu0 %v9131_v44  ;;  %6872 = vmatprep.subr.bf16.mxu1 %v9134_v29  ;;  %v9220_v44 = vld [vmem:[%s9824_s28 + $0x1728] ss:$16 sps:$4 sm:$0xff]   ;;  %v9221_v29 = vld [vmem:[%s9824_s28 + $0x1744] ss:$16 sps:$4 sm:$0xff]  }
 0x320   : > { %5978 = vmatpush1.bf16.msra.mxu0 %v9133_v45  ;;  %6874 = vmatpush1.bf16.msra.mxu1 %v9136_v48  ;;  %v9224_v45 = vld [vmem:[%s9824_s28 + $0x174c] ss:$16 sps:$4 sm:$0xff]   ;;  %v9223_v48 = vld [vmem:[%s9824_s28 + $0x1740] ss:$16 sps:$4 sm:$0xff]  }
 0x321   : > { %5980 = vmatprep.subr.bf16.mxu0 %v9137_v35  ;;  %6876 = vmatprep.subr.bf16.mxu1 %v9140_v50  ;;  %v9226_v35 = vld [vmem:[%s9824_s28 + $0x1748] ss:$16 sps:$4 sm:$0xff]   ;;  %v9227_v50 = vld [vmem:[%s9824_s28 + $0x1764] ss:$16 sps:$4 sm:$0xff]  }
 0x324   : > { %5982 = vmatpush1.bf16.msra.mxu0 %v9139_v36  ;;  %6878 = vmatpush1.bf16.msra.mxu1 %v9142_v51  ;;  %v9230_v36 = vld [vmem:[%s9824_s28 + $0x176c] ss:$16 sps:$4 sm:$0xff]   ;;  %v9229_v51 = vld [vmem:[%s9824_s28 + $0x1760] ss:$16 sps:$4 sm:$0xff]  }
 0x325   : > { %5984 = vmatprep.subr.bf16.mxu0 %v9143_v53  ;;  %6880 = vmatprep.subr.bf16.mxu1 %v9146_v54  ;;  %v9232_v53 = vld [vmem:[%s9824_s28 + $0x1768] ss:$16 sps:$4 sm:$0xff]   ;;  %v9233_v54 = vld [vmem:[%s9824_s28 + $0x1784] ss:$16 sps:$4 sm:$0xff]  }
 0x328   : > { %5986 = vmatpush1.bf16.msra.mxu0 %v9145_v55  ;;  %6882 = vmatpush1.bf16.msra.mxu1 %v9148_v40  ;;  %v9236_v55 = vld [vmem:[%s9824_s28 + $0x178c] ss:$16 sps:$4 sm:$0xff]   ;;  %v9235_v40 = vld [vmem:[%s9824_s28 + $0x1780] ss:$16 sps:$4 sm:$0xff]  }
 0x329   : > { %5988 = vmatprep.subr.bf16.mxu0 %v9149_v56  ;;  %6884 = vmatprep.subr.bf16.mxu1 %v9152_v46  ;;  %v9238_v56 = vld [vmem:[%s9824_s28 + $0x1788] ss:$16 sps:$4 sm:$0xff]   ;;  %v9239_v46 = vld [vmem:[%s9824_s28 + $0x17a4] ss:$16 sps:$4 sm:$0xff]  }
 0x32c   : > { %5990 = vmatpush1.bf16.msra.mxu0 %v9151_v59  ;;  %6886 = vmatpush1.bf16.msra.mxu1 %v9154_v60  ;;  %v9242_v59 = vld [vmem:[%s9824_s28 + $0x17ac] ss:$16 sps:$4 sm:$0xff]   ;;  %v9241_v60 = vld [vmem:[%s9824_s28 + $0x17a0] ss:$16 sps:$4 sm:$0xff]  }
 0x32d   : > { %5992 = vmatprep.subr.bf16.mxu0 %v9155_v47  ;;  %6888 = vmatprep.subr.bf16.mxu1 %v9158_v62  ;;  %v9244_v47 = vld [vmem:[%s9824_s28 + $0x17a8] ss:$16 sps:$4 sm:$0xff]   ;;  %v9245_v62 = vld [vmem:[%s9824_s28 + $0x17c4] ss:$16 sps:$4 sm:$0xff]  }
 0x330   : > { %5994 = vmatpush1.bf16.msra.mxu0 %v9157_v0  ;;  %6890 = vmatpush1.bf16.msra.mxu1 %v9160_v1  ;;  %v9247_v0 = vld [vmem:[%s9824_s28 + $0x17c0] ss:$16 sps:$4 sm:$0xff]   ;;  %v9250_v1 = vld [vmem:[%s9824_s28 + $0x17c8] ss:$16 sps:$4 sm:$0xff]  }
 0x331   : > { %5996 = vmatprep.subr.bf16.mxu0 %v9161_v52  ;;  %6892 = vmatprep.subr.bf16.mxu1 %v9164_v2  ;;  %v9251_v52 = vld [vmem:[%s9824_s28 + $0x17e4] ss:$16 sps:$4 sm:$0xff]   ;;  %v9254_v2 = vld [vmem:[%s9824_s28 + $0x17ec] ss:$16 sps:$4 sm:$0xff]  }
 0x333   : > { %3909 = vmatmul.mubr.f32.vlgmr.msra.gmra.mrb[0].mxu0 %v10569_v61  ;;  %4903 = vmatmul.mubr.f32.vlgmr.msra.gmra.mrb[0].mxu1 %v10569_v61  ;;  %v9178_v61 = vld [vmem:[%s9824_s28 + $0x1648] ss:$16 sps:$4 sm:$0xff]  }
 0x334   : > { %5998 = vmatpush1.bf16.msra.mxu0 %v9163_v4  ;;  %6894 = vmatpush1.bf16.msra.mxu1 %v9166_v58  ;;  %v10709_v4 = vld [vmem:[%s9816_s29 + $0x30] sm:$0xff]  ;;  %s9547_s29 = scalar_lea.vmem %s9546_s30, 256 }
 0x335   : > { %6000 = vmatprep.subr.bf16.mxu0 %v9167_v5  ;;  %6896 = vmatprep.subr.bf16.mxu1 %v9170_v6  ;;  %v9253_v58 = vld [vmem:[%s9824_s28 + $0x17e0] ss:$16 sps:$4 sm:$0xff]   ;;  %v9256_v5 = vld [vmem:[%s9824_s28 + $0x17e8] ss:$16 sps:$4 sm:$0xff]   ;;  %v9258_v6 = vld [vmem:[%s9824_s28 + $0x1804] ss:$16 sps:$4 sm:$0xff]   ;;  %p9549_p0 = scmp.lt.s32.totalorder %s9547_s29, %s9541_s16 }
 0x336   : > { %3979 = vmatprep.mubr.f32.mxu0 %v3088_v57  ;;  %4973 = vmatprep.mubr.f32.mxu1 %v3088_v57  ;;  %v9261_v57 = vld [vmem:[%s9824_s28 + $0x180c] ss:$16 sps:$4 sm:$0xff]  }
 0x337   : > { %p9550_p8 = por %p9549_p0, %p9548_p12 }
 0x338   : > { %6002 = vmatpush1.bf16.msra.mxu0 %v9169_v7  ;;  %6898 = vmatpush1.bf16.msra.mxu1 %v9172_v8  ;;  %v10717_v7 = vrot.slane %v10709_v4, %v9877_v49  ;;  %v9260_v8 = vld [vmem:[%s9824_s28 + $0x1800] ss:$16 sps:$4 sm:$0xff]  }
 0x339   : > { %6004 = vmatprep.subr.bf16.mxu0 %v9173_v9  ;;  %6900 = vmatprep.subr.bf16.mxu1 %v9176_v10  ;;  %v9263_v9 = vld [vmem:[%s9824_s28 + $0x1808] ss:$16 sps:$4 sm:$0xff]   ;;  %v9264_v10 = vld [vmem:[%s9824_s28 + $0x1824] ss:$16 sps:$4 sm:$0xff]   ;;  %p9551_p10 = pnand %p9550_p8, %p9544_p6 }
 0x33c   : > { %6006 = vmatpush1.bf16.msra.mxu0 %v9175_v11  ;;  %6902 = vmatpush1.bf16.msra.mxu1 %v9178_v61  ;;  %v9267_v11 = vld [vmem:[%s9824_s28 + $0x182c] ss:$16 sps:$4 sm:$0xff]   ;;  %v3104_v61 = vcombine.high %v10717_v7, %v10717_v7 }
 0x33d   : > { %6008 = vmatprep.subr.bf16.mxu0 %v9179_v13  ;;  %6904 = vmatprep.subr.bf16.mxu1 %v9182_v14  ;;  %v9266_v13 = vld [vmem:[%s9824_s28 + $0x1820] ss:$16 sps:$4 sm:$0xff]   ;;  %v9269_v14 = vld [vmem:[%s9824_s28 + $0x1828] ss:$16 sps:$4 sm:$0xff]  }
 0x340   : > { %6010 = vmatpush1.bf16.msra.mxu0 %v9181_v15  ;;  %6906 = vmatpush1.bf16.msra.mxu1 %v9184_v16  ;;  %v9270_v15 = vld [vmem:[%s9824_s28 + $0x1844] ss:$16 sps:$4 sm:$0xff]   ;;  %v9273_v16 = vld [vmem:[%s9824_s28 + $0x184c] ss:$16 sps:$4 sm:$0xff]  }
 0x341   : > { %6012 = vmatprep.subr.bf16.mxu0 %v9185_v17  ;;  %6908 = vmatprep.subr.bf16.mxu1 %v9188_v18  ;;  %v9272_v17 = vld [vmem:[%s9824_s28 + $0x1840] ss:$16 sps:$4 sm:$0xff]   ;;  %v9276_v18 = vld [vmem:[%s9824_s28 + $0x1864] ss:$16 sps:$4 sm:$0xff]  }
 0x344   : > { %6014 = vmatpush1.bf16.msra.mxu0 %v9187_v20  ;;  %6910 = vmatpush1.bf16.msra.mxu1 %v9190_v21  ;;  %v9279_v20 = vld [vmem:[%s9824_s28 + $0x186c] ss:$16 sps:$4 sm:$0xff]   ;;  %v9278_v21 = vld [vmem:[%s9824_s28 + $0x1860] ss:$16 sps:$4 sm:$0xff]  }
 0x345   : > { %6016 = vmatprep.subr.bf16.mxu0 %v9191_v23  ;;  %6912 = vmatprep.subr.bf16.mxu1 %v9194_v24  ;;  %v9281_v23 = vld [vmem:[%s9824_s28 + $0x1868] ss:$16 sps:$4 sm:$0xff]   ;;  %v9282_v24 = vld [vmem:[%s9824_s28 + $0x1884] ss:$16 sps:$4 sm:$0xff]  }
 0x348   : > { %6018 = vmatpush1.bf16.msra.mxu0 %v9193_v26  ;;  %6914 = vmatpush1.bf16.msra.mxu1 %v9196_v27  ;;  %v9285_v26 = vld [vmem:[%s9824_s28 + $0x188c] ss:$16 sps:$4 sm:$0xff]   ;;  %v9284_v27 = vld [vmem:[%s9824_s28 + $0x1880] ss:$16 sps:$4 sm:$0xff]  }
 0x349   : > { %6020 = vmatprep.subr.bf16.mxu0 %v9197_v12  ;;  %6916 = vmatprep.subr.bf16.mxu1 %v9200_v28  ;;  %v9287_v12 = vld [vmem:[%s9824_s28 + $0x1888] ss:$16 sps:$4 sm:$0xff]   ;;  %v9288_v28 = vld [vmem:[%s9824_s28 + $0x18a4] ss:$16 sps:$4 sm:$0xff]  }
 0x34c   : > { %6022 = vmatpush1.bf16.msra.mxu0 %v9199_v30  ;;  %6918 = vmatpush1.bf16.msra.mxu1 %v9202_v31  ;;  %v9291_v30 = vld [vmem:[%s9824_s28 + $0x18ac] ss:$16 sps:$4 sm:$0xff]   ;;  %v9290_v31 = vld [vmem:[%s9824_s28 + $0x18a0] ss:$16 sps:$4 sm:$0xff]  }
 0x34d   : > { %6024 = vmatprep.subr.bf16.mxu0 %v9203_v32  ;;  %6920 = vmatprep.subr.bf16.mxu1 %v9206_v33  ;;  %v9293_v32 = vld [vmem:[%s9824_s28 + $0x18a8] ss:$16 sps:$4 sm:$0xff]   ;;  %v9294_v33 = vld [vmem:[%s9824_s28 + $0x18c4] ss:$16 sps:$4 sm:$0xff]  }
 0x350   : > { %6026 = vmatpush1.bf16.msra.mxu0 %v9205_v22  ;;  %6922 = vmatpush1.bf16.msra.mxu1 %v9208_v34  ;;  %v9297_v22 = vld [vmem:[%s9824_s28 + $0x18cc] ss:$16 sps:$4 sm:$0xff]   ;;  %v9296_v34 = vld [vmem:[%s9824_s28 + $0x18c0] ss:$16 sps:$4 sm:$0xff]  }
 0x351   : > { %6028 = vmatprep.subr.bf16.mxu0 %v9209_v37  ;;  %6924 = vmatprep.subr.bf16.mxu1 %v9212_v19  ;;  %v9299_v37 = vld [vmem:[%s9824_s28 + $0x18c8] ss:$16 sps:$4 sm:$0xff]   ;;  %v9300_v19 = vld [vmem:[%s9824_s28 + $0x18e4] ss:$16 sps:$4 sm:$0xff]  }
 0x354   : > { %6030 = vmatpush1.bf16.msra.mxu0 %v9211_v38  ;;  %6926 = vmatpush1.bf16.msra.mxu1 %v9214_v25  ;;  %v9303_v38 = vld [vmem:[%s9824_s28 + $0x18ec] ss:$16 sps:$4 sm:$0xff]   ;;  %v9302_v25 = vld [vmem:[%s9824_s28 + $0x18e0] ss:$16 sps:$4 sm:$0xff]  }
 0x355   : > { %6032 = vmatprep.subr.bf16.mxu0 %v9215_v39  ;;  %6928 = vmatprep.subr.bf16.mxu1 %v9218_v41  ;;  %v9305_v39 = vld [vmem:[%s9824_s28 + $0x18e8] ss:$16 sps:$4 sm:$0xff]   ;;  %v9306_v41 = vld [vmem:[%s9824_s28 + $0x1904] ss:$16 sps:$4 sm:$0xff]  }
 0x358   : > { %6034 = vmatpush1.bf16.msra.mxu0 %v9217_v43  ;;  %6930 = vmatpush1.bf16.msra.mxu1 %v9220_v44  ;;  %v9309_v43 = vld [vmem:[%s9824_s28 + $0x190c] ss:$16 sps:$4 sm:$0xff]   ;;  %v9308_v44 = vld [vmem:[%s9824_s28 + $0x1900] ss:$16 sps:$4 sm:$0xff]  }
 0x359   : > { %6036 = vmatprep.subr.bf16.mxu0 %v9221_v29  ;;  %6932 = vmatprep.subr.bf16.mxu1 %v9224_v45  ;;  %v9311_v29 = vld [vmem:[%s9824_s28 + $0x1908] ss:$16 sps:$4 sm:$0xff]   ;;  %v9312_v45 = vld [vmem:[%s9824_s28 + $0x1924] ss:$16 sps:$4 sm:$0xff]  }
 0x35c   : > { %6038 = vmatpush1.bf16.msra.mxu0 %v9223_v48  ;;  %6934 = vmatpush1.bf16.msra.mxu1 %v9226_v35  ;;  %v9315_v48 = vld [vmem:[%s9824_s28 + $0x192c] ss:$16 sps:$4 sm:$0xff]   ;;  %v9314_v35 = vld [vmem:[%s9824_s28 + $0x1920] ss:$16 sps:$4 sm:$0xff]  }
 0x35d   : > { %6040 = vmatprep.subr.bf16.mxu0 %v9227_v50  ;;  %6936 = vmatprep.subr.bf16.mxu1 %v9230_v36  ;;  %v9317_v50 = vld [vmem:[%s9824_s28 + $0x1928] ss:$16 sps:$4 sm:$0xff]   ;;  %v9318_v36 = vld [vmem:[%s9824_s28 + $0x1944] ss:$16 sps:$4 sm:$0xff]  }
 0x360   : > { %6042 = vmatpush1.bf16.msra.mxu0 %v9229_v51  ;;  %6938 = vmatpush1.bf16.msra.mxu1 %v9232_v53  ;;  %v9321_v51 = vld [vmem:[%s9824_s28 + $0x194c] ss:$16 sps:$4 sm:$0xff]   ;;  %v9320_v53 = vld [vmem:[%s9824_s28 + $0x1940] ss:$16 sps:$4 sm:$0xff]  }
 0x361   : > { %6044 = vmatprep.subr.bf16.mxu0 %v9233_v54  ;;  %6940 = vmatprep.subr.bf16.mxu1 %v9236_v55  ;;  %v9323_v54 = vld [vmem:[%s9824_s28 + $0x1948] ss:$16 sps:$4 sm:$0xff]   ;;  %v9324_v55 = vld [vmem:[%s9824_s28 + $0x1964] ss:$16 sps:$4 sm:$0xff]  }
 0x364   : > { %6046 = vmatpush1.bf16.msra.mxu0 %v9235_v40  ;;  %6942 = vmatpush1.bf16.msra.mxu1 %v9238_v56  ;;  %v9327_v40 = vld [vmem:[%s9824_s28 + $0x196c] ss:$16 sps:$4 sm:$0xff]   ;;  %v9326_v56 = vld [vmem:[%s9824_s28 + $0x1960] ss:$16 sps:$4 sm:$0xff]  }
 0x365   : > { %6048 = vmatprep.subr.bf16.mxu0 %v9239_v46  ;;  %6944 = vmatprep.subr.bf16.mxu1 %v9242_v59  ;;  %v9329_v46 = vld [vmem:[%s9824_s28 + $0x1968] ss:$16 sps:$4 sm:$0xff]   ;;  %v9330_v59 = vld [vmem:[%s9824_s28 + $0x1984] ss:$16 sps:$4 sm:$0xff]  }
 0x368   : > { %6050 = vmatpush1.bf16.msra.mxu0 %v9241_v60  ;;  %6946 = vmatpush1.bf16.msra.mxu1 %v9244_v47  ;;  %v9333_v60 = vld [vmem:[%s9824_s28 + $0x198c] ss:$16 sps:$4 sm:$0xff]   ;;  %v9332_v47 = vld [vmem:[%s9824_s28 + $0x1980] ss:$16 sps:$4 sm:$0xff]  }
 0x369   : > { %6052 = vmatprep.subr.bf16.mxu0 %v9245_v62  ;;  %6948 = vmatprep.subr.bf16.mxu1 %v9248_v63  ;;  %v9335_v62 = vld [vmem:[%s9824_s28 + $0x1988] ss:$16 sps:$4 sm:$0xff]   ;;  %v9336_v63 = vld [vmem:[%s9824_s28 + $0x19a4] ss:$16 sps:$4 sm:$0xff]  }
 0x36c   : > { %6054 = vmatpush1.bf16.msra.mxu0 %v9247_v0  ;;  %6950 = vmatpush1.bf16.msra.mxu1 %v9250_v1  ;;  %v9339_v0 = vld [vmem:[%s9824_s28 + $0x19ac] ss:$16 sps:$4 sm:$0xff]   ;;  %v9338_v1 = vld [vmem:[%s9824_s28 + $0x19a0] ss:$16 sps:$4 sm:$0xff]  }
 0x36d   : > { %6056 = vmatprep.subr.bf16.mxu0 %v9251_v52  ;;  %6952 = vmatprep.subr.bf16.mxu1 %v9254_v2  ;;  %v9341_v52 = vld [vmem:[%s9824_s28 + $0x19a8] ss:$16 sps:$4 sm:$0xff]   ;;  %v9342_v2 = vld [vmem:[%s9824_s28 + $0x19c4] ss:$16 sps:$4 sm:$0xff]  }
 0x370   : > { %6058 = vmatpush1.bf16.msra.mxu0 %v9253_v58  ;;  %6954 = vmatpush1.bf16.msra.mxu1 %v9256_v5  ;;  %v9345_v58 = vld [vmem:[%s9824_s28 + $0x19cc] ss:$16 sps:$4 sm:$0xff]   ;;  %v9344_v5 = vld [vmem:[%s9824_s28 + $0x19c0] ss:$16 sps:$4 sm:$0xff]  }
 0x371   : > { %6060 = vmatprep.subr.bf16.mxu0 %v9258_v6  ;;  %6956 = vmatprep.subr.bf16.mxu1 %v9261_v57  ;;  %v9347_v6 = vld [vmem:[%s9824_s28 + $0x19c8] ss:$16 sps:$4 sm:$0xff]   ;;  %v9348_v57 = vld [vmem:[%s9824_s28 + $0x19e4] ss:$16 sps:$4 sm:$0xff]  }
 0x373   : > { %3980 = vmatmul.mubr.f32.vlgmr.msra.gmra.mrb[0].mxu0 %v10642_v3  ;;  %4974 = vmatmul.mubr.f32.vlgmr.msra.gmra.mrb[0].mxu1 %v10642_v3  ;;  %v9275_v3 = vld [vmem:[%s9824_s28 + $0x1848] ss:$16 sps:$4 sm:$0xff]  }
 0x374   : > { %6062 = vmatpush1.bf16.msra.mxu0 %v9260_v8  ;;  %6958 = vmatpush1.bf16.msra.mxu1 %v9263_v9  ;;  %v9351_v8 = vld [vmem:[%s9824_s28 + $0x19ec] ss:$16 sps:$4 sm:$0xff]   ;;  %v3089_v9 = vcombine.high %v10709_v4, %v10709_v4  ;;  %v9359_v4 = vld [vmem:[%s9824_s28 + $0x1a08] ss:$16 sps:$4 sm:$0xff]  }
 0x375   : > { %6064 = vmatprep.subr.bf16.mxu0 %v9264_v10  ;;  %6960 = vmatprep.subr.bf16.mxu1 %v9267_v11  ;;  %v9350_v10 = vld [vmem:[%s9824_s28 + $0x19e0] ss:$16 sps:$4 sm:$0xff]   ;;  %v9353_v11 = vld [vmem:[%s9824_s28 + $0x19e8] ss:$16 sps:$4 sm:$0xff]  }
 0x376   : > { %4050 = vmatprep.mubr.f32.mxu0 %v3104_v61  ;;  %5044 = vmatprep.mubr.f32.mxu1 %v3104_v61  ;;  %v9354_v61 = vld [vmem:[%s9824_s28 + $0x1a04] ss:$16 sps:$4 sm:$0xff]  }
 0x378   : > { %6066 = vmatpush1.bf16.msra.mxu0 %v9266_v13  ;;  %6962 = vmatpush1.bf16.msra.mxu1 %v9269_v14  ;;  %v9357_v13 = vld [vmem:[%s9824_s28 + $0x1a0c] ss:$16 sps:$4 sm:$0xff]   ;;  %v10790_v14 = vrot.slane %v3089_v9, %v9877_v49 }
 0x379   : > { %6068 = vmatprep.subr.bf16.mxu0 %v9270_v15  ;;  %6964 = vmatprep.subr.bf16.mxu1 %v9273_v16  ;;  %v9356_v15 = vld [vmem:[%s9824_s28 + $0x1a00] ss:$16 sps:$4 sm:$0xff]   ;;  %v9360_v16 = vld [vmem:[%s9824_s28 + $0x1a24] ss:$16 sps:$4 sm:$0xff]   ;;  %v9441_v9 = vld [vmem:[%s9824_s28 + $0x1bcc] ss:$16 sps:$4 sm:$0xff]  }
 0x37c   : > { %6070 = vmatpush1.bf16.msra.mxu0 %v9272_v17  ;;  %6966 = vmatpush1.bf16.msra.mxu1 %v9275_v3  ;;  %v9363_v17 = vld [vmem:[%s9824_s28 + $0x1a2c] ss:$16 sps:$4 sm:$0xff]   ;;  %v3105_v3 = vcombine.high %v10790_v14, %v10790_v14 }
 0x37d   : > { %6072 = vmatprep.subr.bf16.mxu0 %v9276_v18  ;;  %6968 = vmatprep.subr.bf16.mxu1 %v9279_v20  ;;  %v9362_v18 = vld [vmem:[%s9824_s28 + $0x1a20] ss:$16 sps:$4 sm:$0xff]   ;;  %v9365_v20 = vld [vmem:[%s9824_s28 + $0x1a28] ss:$16 sps:$4 sm:$0xff]  }
 0x380   : > { %6074 = vmatpush1.bf16.msra.mxu0 %v9278_v21  ;;  %6970 = vmatpush1.bf16.msra.mxu1 %v9281_v23  ;;  %v9366_v21 = vld [vmem:[%s9824_s28 + $0x1a44] ss:$16 sps:$4 sm:$0xff]   ;;  %v9369_v23 = vld [vmem:[%s9824_s28 + $0x1a4c] ss:$16 sps:$4 sm:$0xff]  }
 0x381   : > { %6076 = vmatprep.subr.bf16.mxu0 %v9282_v24  ;;  %6972 = vmatprep.subr.bf16.mxu1 %v9285_v26  ;;  %v9368_v24 = vld [vmem:[%s9824_s28 + $0x1a40] ss:$16 sps:$4 sm:$0xff]   ;;  %v9372_v26 = vld [vmem:[%s9824_s28 + $0x1a64] ss:$16 sps:$4 sm:$0xff]  }
 0x384   : > { %6078 = vmatpush1.bf16.msra.mxu0 %v9284_v27  ;;  %6974 = vmatpush1.bf16.msra.mxu1 %v9287_v12  ;;  %v9375_v27 = vld [vmem:[%s9824_s28 + $0x1a6c] ss:$16 sps:$4 sm:$0xff]   ;;  %v9374_v12 = vld [vmem:[%s9824_s28 + $0x1a60] ss:$16 sps:$4 sm:$0xff]  }
 0x385   : > { %6080 = vmatprep.subr.bf16.mxu0 %v9288_v28  ;;  %6976 = vmatprep.subr.bf16.mxu1 %v9291_v30  ;;  %v9377_v28 = vld [vmem:[%s9824_s28 + $0x1a68] ss:$16 sps:$4 sm:$0xff]   ;;  %v9378_v30 = vld [vmem:[%s9824_s28 + $0x1a84] ss:$16 sps:$4 sm:$0xff]  }
 0x388   : > { %6082 = vmatpush1.bf16.msra.mxu0 %v9290_v31  ;;  %6978 = vmatpush1.bf16.msra.mxu1 %v9293_v32  ;;  %v9381_v31 = vld [vmem:[%s9824_s28 + $0x1a8c] ss:$16 sps:$4 sm:$0xff]   ;;  %v9380_v32 = vld [vmem:[%s9824_s28 + $0x1a80] ss:$16 sps:$4 sm:$0xff]  }
 0x389   : > { %6084 = vmatprep.subr.bf16.mxu0 %v9294_v33  ;;  %6980 = vmatprep.subr.bf16.mxu1 %v9297_v22  ;;  %v9383_v33 = vld [vmem:[%s9824_s28 + $0x1a88] ss:$16 sps:$4 sm:$0xff]   ;;  %v9384_v22 = vld [vmem:[%s9824_s28 + $0x1aa4] ss:$16 sps:$4 sm:$0xff]  }
 0x38c   : > { %6086 = vmatpush1.bf16.msra.mxu0 %v9296_v34  ;;  %6982 = vmatpush1.bf16.msra.mxu1 %v9299_v37  ;;  %v9387_v34 = vld [vmem:[%s9824_s28 + $0x1aac] ss:$16 sps:$4 sm:$0xff]   ;;  %v9386_v37 = vld [vmem:[%s9824_s28 + $0x1aa0] ss:$16 sps:$4 sm:$0xff]  }
 0x38d   : > { %6088 = vmatprep.subr.bf16.mxu0 %v9300_v19  ;;  %6984 = vmatprep.subr.bf16.mxu1 %v9303_v38  ;;  %v9389_v19 = vld [vmem:[%s9824_s28 + $0x1aa8] ss:$16 sps:$4 sm:$0xff]   ;;  %v9390_v38 = vld [vmem:[%s9824_s28 + $0x1ac4] ss:$16 sps:$4 sm:$0xff]  }
 0x390   : > { %6090 = vmatpush1.bf16.msra.mxu0 %v9302_v25  ;;  %6986 = vmatpush1.bf16.msra.mxu1 %v9305_v39  ;;  %v9393_v25 = vld [vmem:[%s9824_s28 + $0x1acc] ss:$16 sps:$4 sm:$0xff]   ;;  %v9392_v39 = vld [vmem:[%s9824_s28 + $0x1ac0] ss:$16 sps:$4 sm:$0xff]  }
 0x391   : > { %6092 = vmatprep.subr.bf16.mxu0 %v9306_v41  ;;  %6988 = vmatprep.subr.bf16.mxu1 %v9309_v43  ;;  %v9395_v41 = vld [vmem:[%s9824_s28 + $0x1ac8] ss:$16 sps:$4 sm:$0xff]   ;;  %v9396_v43 = vld [vmem:[%s9824_s28 + $0x1ae4] ss:$16 sps:$4 sm:$0xff]  }
 0x394   : > { %6094 = vmatpush1.bf16.msra.mxu0 %v9308_v44  ;;  %6990 = vmatpush1.bf16.msra.mxu1 %v9311_v29  ;;  %v9399_v44 = vld [vmem:[%s9824_s28 + $0x1aec] ss:$16 sps:$4 sm:$0xff]   ;;  %v9398_v29 = vld [vmem:[%s9824_s28 + $0x1ae0] ss:$16 sps:$4 sm:$0xff]  }
 0x395   : > { %6096 = vmatprep.subr.bf16.mxu0 %v9312_v45  ;;  %6992 = vmatprep.subr.bf16.mxu1 %v9315_v48  ;;  %v9401_v45 = vld [vmem:[%s9824_s28 + $0x1ae8] ss:$16 sps:$4 sm:$0xff]   ;;  %v9402_v48 = vld [vmem:[%s9824_s28 + $0x1b04] ss:$16 sps:$4 sm:$0xff]  }
 0x398   : > { %6098 = vmatpush1.bf16.msra.mxu0 %v9314_v35  ;;  %6994 = vmatpush1.bf16.msra.mxu1 %v9317_v50  ;;  %v9405_v35 = vld [vmem:[%s9824_s28 + $0x1b0c] ss:$16 sps:$4 sm:$0xff]   ;;  %v9404_v50 = vld [vmem:[%s9824_s28 + $0x1b00] ss:$16 sps:$4 sm:$0xff]  }
 0x399   : > { %6100 = vmatprep.subr.bf16.mxu0 %v9318_v36  ;;  %6996 = vmatprep.subr.bf16.mxu1 %v9321_v51  ;;  %v9407_v36 = vld [vmem:[%s9824_s28 + $0x1b08] ss:$16 sps:$4 sm:$0xff]   ;;  %v9408_v51 = vld [vmem:[%s9824_s28 + $0x1b24] ss:$16 sps:$4 sm:$0xff]  }
 0x39c   : > { %6102 = vmatpush1.bf16.msra.mxu0 %v9320_v53  ;;  %6998 = vmatpush1.bf16.msra.mxu1 %v9323_v54  ;;  %v9411_v53 = vld [vmem:[%s9824_s28 + $0x1b2c] ss:$16 sps:$4 sm:$0xff]   ;;  %v9410_v54 = vld [vmem:[%s9824_s28 + $0x1b20] ss:$16 sps:$4 sm:$0xff]  }
 0x39d   : > { %6104 = vmatprep.subr.bf16.mxu0 %v9324_v55  ;;  %7000 = vmatprep.subr.bf16.mxu1 %v9327_v40  ;;  %v9413_v55 = vld [vmem:[%s9824_s28 + $0x1b28] ss:$16 sps:$4 sm:$0xff]   ;;  %v9414_v40 = vld [vmem:[%s9824_s28 + $0x1b44] ss:$16 sps:$4 sm:$0xff]  }
 0x3a0   : > { %6106 = vmatpush1.bf16.msra.mxu0 %v9326_v56  ;;  %7002 = vmatpush1.bf16.msra.mxu1 %v9329_v46  ;;  %v9417_v56 = vld [vmem:[%s9824_s28 + $0x1b4c] ss:$16 sps:$4 sm:$0xff]   ;;  %v9416_v46 = vld [vmem:[%s9824_s28 + $0x1b40] ss:$16 sps:$4 sm:$0xff]  }
 0x3a1   : > { %6108 = vmatprep.subr.bf16.mxu0 %v9330_v59  ;;  %7004 = vmatprep.subr.bf16.mxu1 %v9333_v60  ;;  %v9419_v59 = vld [vmem:[%s9824_s28 + $0x1b48] ss:$16 sps:$4 sm:$0xff]   ;;  %v9420_v60 = vld [vmem:[%s9824_s28 + $0x1b64] ss:$16 sps:$4 sm:$0xff]  }
 0x3a4   : > { %6110 = vmatpush1.bf16.msra.mxu0 %v9332_v47  ;;  %7006 = vmatpush1.bf16.msra.mxu1 %v9335_v62  ;;  %v9423_v47 = vld [vmem:[%s9824_s28 + $0x1b6c] ss:$16 sps:$4 sm:$0xff]   ;;  %v9422_v62 = vld [vmem:[%s9824_s28 + $0x1b60] ss:$16 sps:$4 sm:$0xff]  }
 0x3a5   : > { %6112 = vmatprep.subr.bf16.mxu0 %v9336_v63  ;;  %7008 = vmatprep.subr.bf16.mxu1 %v9339_v0  ;;  %v9425_v63 = vld [vmem:[%s9824_s28 + $0x1b68] ss:$16 sps:$4 sm:$0xff]   ;;  %v9426_v0 = vld [vmem:[%s9824_s28 + $0x1b84] ss:$16 sps:$4 sm:$0xff]  }
 0x3a8   : > { %6114 = vmatpush1.bf16.msra.mxu0 %v9338_v1  ;;  %7010 = vmatpush1.bf16.msra.mxu1 %v9341_v52  ;;  %v9429_v1 = vld [vmem:[%s9824_s28 + $0x1b8c] ss:$16 sps:$4 sm:$0xff]   ;;  %v9428_v52 = vld [vmem:[%s9824_s28 + $0x1b80] ss:$16 sps:$4 sm:$0xff]  }
 0x3a9   : > { %6116 = vmatprep.subr.bf16.mxu0 %v9342_v2  ;;  %7012 = vmatprep.subr.bf16.mxu1 %v9345_v58  ;;  %v9431_v2 = vld [vmem:[%s9824_s28 + $0x1b88] ss:$16 sps:$4 sm:$0xff]   ;;  %v9432_v58 = vld [vmem:[%s9824_s28 + $0x1ba4] ss:$16 sps:$4 sm:$0xff]  }
 0x3ac   : > { %6118 = vmatpush1.bf16.msra.mxu0 %v9344_v5  ;;  %7014 = vmatpush1.bf16.msra.mxu1 %v9347_v6  ;;  %v9435_v5 = vld [vmem:[%s9824_s28 + $0x1bac] ss:$16 sps:$4 sm:$0xff]   ;;  %v9434_v6 = vld [vmem:[%s9824_s28 + $0x1ba0] ss:$16 sps:$4 sm:$0xff]  }
 0x3ad   : > { %6120 = vmatprep.subr.bf16.mxu0 %v9348_v57  ;;  %7016 = vmatprep.subr.bf16.mxu1 %v9351_v8  ;;  %v9437_v57 = vld [vmem:[%s9824_s28 + $0x1ba8] ss:$16 sps:$4 sm:$0xff]   ;;  %v9438_v8 = vld [vmem:[%s9824_s28 + $0x1bc4] ss:$16 sps:$4 sm:$0xff]  }
 0x3b0   : > { %6122 = vmatpush1.bf16.msra.mxu0 %v9350_v10  ;;  %7018 = vmatpush1.bf16.msra.mxu1 %v9353_v11  ;;  %v9440_v10 = vld [vmem:[%s9824_s28 + $0x1bc0] ss:$16 sps:$4 sm:$0xff]   ;;  %v9443_v11 = vld [vmem:[%s9824_s28 + $0x1bc8] ss:$16 sps:$4 sm:$0xff]  }
 0x3b1   : > { %6124 = vmatprep.subr.bf16.mxu0 %v9354_v61  ;;  %7020 = vmatprep.subr.bf16.mxu1 %v9357_v13  ;;  %v9444_v61 = vld [vmem:[%s9824_s28 + $0x1be4] ss:$16 sps:$4 sm:$0xff]   ;;  %v9447_v13 = vld [vmem:[%s9824_s28 + $0x1bec] ss:$16 sps:$4 sm:$0xff]  }
 0x3b3   : > { %4051 = vmatmul.mubr.f32.vlgmr.msra.gmra.mrb[0].mxu0 %v10717_v7  ;;  %5045 = vmatmul.mubr.f32.vlgmr.msra.gmra.mrb[0].mxu1 %v10717_v7  ;;  %v9371_v7 = vld [vmem:[%s9824_s28 + $0x1a48] ss:$16 sps:$4 sm:$0xff]  }
 0x3b4   : > { %6126 = vmatpush1.bf16.msra.mxu0 %v9356_v15  ;;  %7022 = vmatpush1.bf16.msra.mxu1 %v9359_v4  ;;  %v9446_v15 = vld [vmem:[%s9824_s28 + $0x1be0] ss:$16 sps:$4 sm:$0xff]   ;;  %v9449_v4 = vld [vmem:[%s9824_s28 + $0x1be8] ss:$16 sps:$4 sm:$0xff]  }
 0x3b5   : > { %6128 = vmatprep.subr.bf16.mxu0 %v9360_v16  ;;  %7024 = vmatprep.subr.bf16.mxu1 %v9363_v17  ;;  %v2962_v16 = vsub.s32 0, %v9869_v42  ;;  %v2970_v17 = vsub.s32 2, %v9869_v42 }
 0x3b6   : > { %4121 = vmatprep.mubr.f32.mxu0 %v3105_v3  ;;  %5115 = vmatprep.mubr.f32.mxu1 %v3105_v3  ;;  %v2958_v3 = vld [vmem:[%s229_s17] sm:$0xf] }
 0x3b8   : > { %6130 = vmatpush1.bf16.msra.mxu0 %v9362_v18  ;;  %7026 = vmatpush1.bf16.msra.mxu1 %v9365_v20  ;;  %v2966_v18 = vsub.s32 1, %v9869_v42  ;;  %v2974_v20 = vsub.s32 3, %v9869_v42 }
 0x3b9   : > { %6132 = vmatprep.subr.bf16.mxu0 %v9366_v21  ;;  %7028 = vmatprep.subr.bf16.mxu1 %v9369_v23  ;;  %v2963_v21 = vrot.slane %v2958_v3, %v2962_v16  ;;  %v2971_v23 = vrot.slane %v2958_v3, %v2970_v17 }
 0x3bc   : > { %6134 = vmatpush1.bf16.msra.mxu0 %v9368_v24  ;;  %7030 = vmatpush1.bf16.msra.mxu1 %v9371_v7  ;;  %v2967_v24 = vrot.slane %v2958_v3, %v2966_v18  ;;  %v2975_v7 = vrot.slane %v2958_v3, %v2974_v20 }
 0x3bd   : > { %6136 = vmatprep.subr.bf16.mxu0 %v9372_v26  ;;  %7032 = vmatprep.subr.bf16.mxu1 %v9375_v27 }
 0x3c0   : > { %6138 = vmatpush1.bf16.msra.mxu0 %v9374_v12  ;;  %7034 = vmatpush1.bf16.msra.mxu1 %v9377_v28 }
 0x3c1   : > { %6140 = vmatprep.subr.bf16.mxu0 %v9378_v30  ;;  %7036 = vmatprep.subr.bf16.mxu1 %v9381_v31 }
 0x3c4   : > { %6142 = vmatpush1.bf16.msra.mxu0 %v9380_v32  ;;  %7038 = vmatpush1.bf16.msra.mxu1 %v9383_v33 }
 0x3c5   : > { %6144 = vmatprep.subr.bf16.mxu0 %v9384_v22  ;;  %7040 = vmatprep.subr.bf16.mxu1 %v9387_v34 }
 0x3c8   : > { %6146 = vmatpush1.bf16.msra.mxu0 %v9386_v37  ;;  %7042 = vmatpush1.bf16.msra.mxu1 %v9389_v19 }
 0x3c9   : > { %6148 = vmatprep.subr.bf16.mxu0 %v9390_v38  ;;  %7044 = vmatprep.subr.bf16.mxu1 %v9393_v25 }
 0x3cc   : > { %6150 = vmatpush1.bf16.msra.mxu0 %v9392_v39  ;;  %7046 = vmatpush1.bf16.msra.mxu1 %v9395_v41 }
 0x3cd   : > { %6152 = vmatprep.subr.bf16.mxu0 %v9396_v43  ;;  %7048 = vmatprep.subr.bf16.mxu1 %v9399_v44 }
 0x3d0   : > { %6154 = vmatpush1.bf16.msra.mxu0 %v9398_v29  ;;  %7050 = vmatpush1.bf16.msra.mxu1 %v9401_v45 }
 0x3d1   : > { %6156 = vmatprep.subr.bf16.mxu0 %v9402_v48  ;;  %7052 = vmatprep.subr.bf16.mxu1 %v9405_v35 }
 0x3d4   : > { %6158 = vmatpush1.bf16.msra.mxu0 %v9404_v50  ;;  %7054 = vmatpush1.bf16.msra.mxu1 %v9407_v36 }
 0x3d5   : > { %6160 = vmatprep.subr.bf16.mxu0 %v9408_v51  ;;  %7056 = vmatprep.subr.bf16.mxu1 %v9411_v53 }
 0x3d8   : > { %6162 = vmatpush1.bf16.msra.mxu0 %v9410_v54  ;;  %7058 = vmatpush1.bf16.msra.mxu1 %v9413_v55 }
 0x3d9   : > { %6164 = vmatprep.subr.bf16.mxu0 %v9414_v40  ;;  %7060 = vmatprep.subr.bf16.mxu1 %v9417_v56 }
 0x3dc   : > { %6166 = vmatpush1.bf16.msra.mxu0 %v9416_v46  ;;  %7062 = vmatpush1.bf16.msra.mxu1 %v9419_v59 }
 0x3dd   : > { %6168 = vmatprep.subr.bf16.mxu0 %v9420_v60  ;;  %7064 = vmatprep.subr.bf16.mxu1 %v9423_v47 }
 0x3e0   : > { %6170 = vmatpush1.bf16.msra.mxu0 %v9422_v62  ;;  %7066 = vmatpush1.bf16.msra.mxu1 %v9425_v63 }
 0x3e1   : > { %6172 = vmatprep.subr.bf16.mxu0 %v9426_v0  ;;  %7068 = vmatprep.subr.bf16.mxu1 %v9429_v1 }
 0x3e4   : > { %6174 = vmatpush1.bf16.msra.mxu0 %v9428_v52  ;;  %7070 = vmatpush1.bf16.msra.mxu1 %v9431_v2 }
 0x3e5   : > { %6176 = vmatprep.subr.bf16.mxu0 %v9432_v58  ;;  %7072 = vmatprep.subr.bf16.mxu1 %v9435_v5 }
 0x3e8   : > { %6178 = vmatpush1.bf16.msra.mxu0 %v9434_v6  ;;  %7074 = vmatpush1.bf16.msra.mxu1 %v9437_v57 }
 0x3e9   : > { %6180 = vmatprep.subr.bf16.mxu0 %v9438_v8  ;;  %7076 = vmatprep.subr.bf16.mxu1 %v9441_v9 }
 0x3ec   : > { %6182 = vmatpush1.bf16.msra.mxu0 %v9440_v10  ;;  %7078 = vmatpush1.bf16.msra.mxu1 %v9443_v11 }
 0x3ed   : > { %6184 = vmatprep.subr.bf16.mxu0 %v9444_v61  ;;  %7080 = vmatprep.subr.bf16.mxu1 %v9447_v13 }
 0x3f0   : > { %6186 = vmatpush1.bf16.msra.mxu0 %v9446_v15  ;;  %7082 = vmatpush1.bf16.msra.mxu1 %v9449_v4 }
 0x3f3   : > { %4122 = vmatmul.mubr.f32.vlgmr.msra.gmra.mrb[0].mxu0 %v10790_v14  ;;  %5116 = vmatmul.mubr.f32.vlgmr.msra.gmra.mrb[0].mxu1 %v10790_v14 }
 0x4c6   : > { %v4123_v26 = vpop.f32.mrb[0].mxu0  ;;  %v5117_v27 = vpop.f32.mrb[0].mxu1 }
 0x4c7   : > { %v7083_v14 = vadd.f32 %v4123_v26, %v2963_v21  ;;  %v7085_v12 = vadd.f32 %v5117_v27, %v2971_v23  ;;  %v4125_v28 = vpop.f32.mrb[1].mxu0  ;;  %v5119_v30 = vpop.f32.mrb[1].mxu1 }
 0x4c8   : > { %v7084_v31 = vadd.f32 %v4125_v28, %v2967_v24  ;;  %v7086_v32 = vadd.f32 %v5119_v30, %v2975_v7 }
 0x4ca   : > { %v5126_v33 = vcombine.low %v7083_v14, %v7084_v31  ;;  %v5127_v22 = vcombine.low %v7085_v12, %v7086_v32 }
 0x4cc   : > { %v5134_v42 = vrot.slane %v5126_v33, %v9877_v49  ;;  %v5141_v34 = vrot.slane %v5127_v22, %v9877_v49 }
 0x4ce   : > { %v5142_v37 = vcombine.low %v5134_v42, %v5141_v34 }
 0x4d0   : > { %5144 = vst [vmem:[%s261_s9] sm:$0xff] %v5142_v37 }
 0x4d1   : > { %9554 = shalt.err (!%p9551_p10)
}
 0x4d2   : > { %s9555_s10 = scalar_lea.hbm %s10872_s20, 128  ;;  %s9559_s19 = scalar_lea.hbm %s10919_s3, 256 }
 0x4d3   : > { %p9556_p11 = scmp.ne.s32.totalorder %s10872_s20, %s9555_s10  ;;  %p9560_p5 = scmp.lt.u32.totalorder %s10872_s20, %s10919_s3 }
 0x4d4   : > { %p9561_p1 = scmp.lt.u32.totalorder %s9559_s19, %s9555_s10  ;;  %p9563_p2 = scmp.lt.u32.totalorder %s9555_s10, %s10872_s20 }
 0x4d5   : > { %p9557_p4 = pnand %p9556_p11, %p10934_p7 }
 0x4d6   : > { %p9562_p13 = por %p9561_p1, %p9560_p5 }
 0x4d7   : > { %p9558_p3 = pneg %p9557_p4 }
 0x4d8   : > { %p9564_p9 = por %p9563_p2, %p9562_p13 }
 0x4da   : > { %p9565_p6 = pnand %p9564_p9, %p9558_p3 }
 0x4dc   : > { %9568 = shalt.err (!%p9565_p6)
}
 0x4dd   : > { %8047 = dma.vmem_to_hbm [thread:$0]  (%p10934_p7), %s10874_s7, 128, %s10872_s20, %s5146_s27  }
 0x4de PF: > { %s5172_s17 = sand.u32 1, %s9599_s12   ;;  %p10935_p12 = scmp.ne.s32.totalorder %s10925_s24, 0 }
 0x4df   : > { %p10936_p0 = scmp.ge.s32.totalorder %s9611_s15, 2  ;;  %s5173_s4 = scalar_lea.sflag [#allocation4], %s5172_s17 }
 0x4e1   : > { %p8060_p8 = pnand %p10936_p0, %p10935_p12 }
 0x4e3   : > { %9594 = dma.done.wait (!%p8060_p8), %s5173_s4, 128  }
 0x4e4   : > { %9596 = vsyncadd (!%p8060_p8), %s5173_s4, 4294967168  ;;  %p19_p10 = scmp.ge.s32.totalorder %s9665_s18, 4   ;;  %s10937_s12 = smov %s9603_s13 }
 0x4e5   : > { %s10938_s13 = smov %s9607_s14  ;;  %s10939_s14 = smov %s9677_s21 }
 0x4e6   : > { %s10940_s15 = smov %s9665_s18  ;;  %21 = sbr.rel (!%p19_p10) target bundleno = 7 (0x7), region = 101 }
 0x4ed   :  { %5178 = vsyncpa [#allocation3], 1 }
 0x4ee   :  { %5180 = vsyncpa [#allocation3 + $0x1], 1 }
 0x4ef   :  { %5181 = vsyncpa [#allocation6], 1 }
 0x4f0   :  { %5183 = vsyncpa [#allocation6 + $0x1], 1 }
 0x4f1   :  { %5184 = vsyncpa [#allocation4], 1 }
 0x4f2   :  { %5186 = vsyncpa [#allocation4 + $0x1], 1 }

</bundles_post_ra>
